<compile_context>
chip_gen: v7x
topology: tpu7x:2x2x1
jax: 0.10.0
libtpu: 0.0.40
codegen_flags: <defaults>
</compile_context>

<pallas_src>
import functools
import math
import numpy as np
import jax
import jax.numpy as jnp
from jax import lax
from jax.experimental import pallas as pl
from jax.experimental.pallas import tpu as pltpu

MAP_ATTR = 3
NUM_HEADS = 8
LN_EPS = 1e-5
MAX_TILE_ROWS = 256          # packed rows per grid step (= p * MAX_TILE_ROWS segments)


# --------------------------------------------------------------------------- kernel

def _lane_selectors(width, group, count, dtype):
    """count selectors of shape (1, width); selector s is 1 on lanes [s*group, (s+1)*group)."""
    lane = lax.broadcasted_iota(jnp.int32, (1, width), 1)
    return [((lane >= s * group) & (lane < (s + 1) * group)).astype(dtype)
            for s in range(count)]


def _grouped_layernorm(x, p, d_k, gamma, beta):
    """LayerNorm applied independently to each of the p consecutive d_k-lane groups (exact f32)."""
    sels = _lane_selectors(p * d_k, d_k, p, x.dtype)
    mu = jnp.zeros_like(x)
    for s in range(p):
        xs = x[:, s * d_k:(s + 1) * d_k]
        mu = mu + jnp.mean(xs, axis=-1, keepdims=True) * sels[s]
    xc = x - mu
    var = jnp.zeros_like(x)
    for s in range(p):
        xcs = xc[:, s * d_k:(s + 1) * d_k]
        var = var + jnp.mean(xcs * xcs, axis=-1, keepdims=True) * sels[s]
    return xc * lax.rsqrt(var + LN_EPS) * gamma + beta


def _map_encoder_kernel(roads_ref, maskp_ref, agents_ref,
                        wkb_ref, bkb_ref, wvb_ref, bvb_ref, wqb_ref, bqb_ref,
                        mexp_ref, rsum_ref, ones_ref, bexp_ref, wof_ref, bob_ref,
                        expand_ref,
                        g1_ref, be1_ref, wm1_ref, bm1_ref, wm2_ref, bm2_ref,
                        g2_ref, be2_ref,
                        out_ref, *, p, approx_recip):
    f32 = jnp.float32
    cdt = wkb_ref.dtype                       # matmul operand dtype (bf16 or f32)
    n_b = expand_ref.shape[1]                 # batches covered by this tile
    d_k = wqb_ref.shape[0]
    seg_sc = rsum_ref.shape[1] // p           # H*P score lanes per packed segment

    roads = roads_ref[...]                                                   # (T, p*P*A1)

    # ---- K / V: road_pts_lin folded with the MHA in-projection, block-diag per point.
    k = (jnp.dot(roads, wkb_ref[...], preferred_element_type=f32) + bkb_ref[...]).astype(cdt)
    v = (jnp.dot(roads, wvb_ref[...], preferred_element_type=f32) + bvb_ref[...]).astype(cdt)

    # ---- query: agents_emb[-1][batch] broadcast over that batch's packed rows / slots.
    i = pl.program_id(0)
    q_blk = agents_ref[pl.ds(i * n_b, n_b), :]                               # (n_b, d_k)
    q_rows = jnp.dot(expand_ref[...], q_blk, preferred_element_type=f32)     # (T, d_k)
    q_t = (jnp.dot(q_rows.astype(cdt), wqb_ref[...],
                   preferred_element_type=f32) + bqb_ref[...]).astype(cdt)   # (T, p*P*d_k), pre-scaled

    # ---- fused multi-head scores: one lane-dense matmul over all segments x heads.
    qk = k * q_t                                                             # (T, p*P*d_k) cdt
    s_all = jnp.dot(qk, rsum_ref[...], preferred_element_type=f32)           # (T, p*H*P) f32

    # ---- key-padding mask (fixup already applied in the wrapper), broadcast over heads.
    maskb = jnp.dot(maskp_ref[...], mexp_ref[...], preferred_element_type=f32)
    s_all = jnp.where(maskb > 0.5, jnp.float32(-1e30), s_all)

    # ---- softmax over the P points of each (segment, head) group.
    # Exact per-segment max shift; a head underflowing >~88 below its segment's max
    # is guarded by the denominator clamp below (reviewer-sanctioned clamp option).
    sels = _lane_selectors(s_all.shape[1], seg_sc, p, f32)
    m_b = jnp.zeros_like(s_all)
    for s in range(p):
        seg = s_all[:, s * seg_sc:(s + 1) * seg_sc]
        m_b = m_b + jnp.max(seg, axis=-1, keepdims=True) * sels[s]
    e = jnp.exp(s_all - m_b)                                                 # (T, p*H*P) f32

    denom = jnp.dot(e.astype(cdt), ones_ref[...], preferred_element_type=f32)  # per-group sums, broadcast
    denom = jnp.maximum(denom, 1e-30)                                        # NaN guard
    inv = pl.reciprocal(denom, approx=True) if approx_recip else 1.0 / denom
    a = (e * inv).astype(cdt)                                                # attention weights

    # ---- weights -> value lanes, weighted sum over points + out-projection (folded).
    attn = jnp.dot(a, bexp_ref[...], preferred_element_type=f32)             # (T, p*P*d_k)
    weighted = (attn * v).astype(cdt)
    x = jnp.dot(weighted, wof_ref[...], preferred_element_type=f32) + bob_ref[...]   # (T, p*d_k)

    # ---- norm1 -> map_feats MLP (+ residual) -> norm2 (dropout = identity at inference).
    x1 = _grouped_layernorm(x, p, d_k, g1_ref[...], be1_ref[...])
    h1 = jnp.maximum(jnp.dot(x1.astype(cdt), wm1_ref[...],
                             preferred_element_type=f32) + bm1_ref[...], 0.0)
    y = jnp.dot(h1.astype(cdt), wm2_ref[...], preferred_element_type=f32) + bm2_ref[...]
    out = _grouped_layernorm(x1 + y, p, d_k, g2_ref[...], be2_ref[...])

    out_ref[...] = out.astype(out_ref.dtype)


# --------------------------------------------------------------- host-side weight folding

def _build_constants(params, *, P, d_k, H, p, n_b, rows_per_batch, cdt):
    """Fold module weights into lane-dense, per-packed-row block matrices."""
    f32c = jnp.float32
    wlin = np.asarray(params["wlin"], np.float32).copy()      # (map_attr+1, d_k)
    A1 = wlin.shape[0]
    wlin[A1 - 1:] = 0.0                                        # valid channel never feeds the embedding
    hd = d_k // H
    nP = p * P
    Win, Wk, Ws, Wo = nP * A1, nP * d_k, p * H * P, p * d_k

    get = lambda name: np.asarray(params[name], np.float32)
    blin = get("blin").reshape(1, d_k)
    wk, bk = get("wk"), get("bk").reshape(1, d_k)
    wv, bv = get("wv"), get("bv").reshape(1, d_k)
    wq, bq = get("wq"), get("bq").reshape(1, d_k)
    wo, bo = get("wo"), get("bo").reshape(1, d_k)

    lk, lv = wlin @ wk, wlin @ wv
    wkb = np.zeros((Win, Wk), np.float32)
    wvb = np.zeros((Win, Wk), np.float32)
    for t in range(nP):
        wkb[t * A1:(t + 1) * A1, t * d_k:(t + 1) * d_k] = lk
        wvb[t * A1:(t + 1) * A1, t * d_k:(t + 1) * d_k] = lv
    bkb = np.tile(blin @ wk + bk, (1, nP))
    bvb = np.tile(blin @ wv + bv, (1, nP))

    scale = 1.0 / math.sqrt(hd)
    wqb = np.tile(wq * scale, (1, nP))                         # (d_k, Wk)
    bqb = np.tile(bq * scale, (1, nP))

    # fused score / mask / weight-expansion matrices
    mexp = np.zeros((nP, Ws), np.float32)     # point mask -> all heads of that point
    rsum = np.zeros((Wk, Ws), np.float32)     # qk lanes -> per-(segment, head, point) score
    bexp = np.zeros((Ws, Wk), np.float32)     # attention weight -> its value lanes
    for s in range(p):
        for h in range(H):
            for pt in range(P):
                sc = s * H * P + h * P + pt
                mexp[s * P + pt, sc] = 1.0
                for j in range(hd):
                    vl = s * P * d_k + pt * d_k + h * hd + j
                    rsum[vl, sc] = 1.0
                    bexp[sc, vl] = 1.0

    ones_bd = np.zeros((Ws, Ws), np.float32)  # per-(segment, head) group-sum + broadcast
    for g in range(p * H):
        ones_bd[g * P:(g + 1) * P, g * P:(g + 1) * P] = 1.0

    wof = np.zeros((Wk, Wo), np.float32)      # sum over points folded with out_proj
    for s in range(p):
        for pt in range(P):
            r0 = s * P * d_k + pt * d_k
            wof[r0:r0 + d_k, s * d_k:(s + 1) * d_k] = wo
    bob = np.tile(bo, (1, p))

    expand = np.zeros((n_b * rows_per_batch, n_b), np.float32)   # packed row -> its batch
    for r in range(n_b * rows_per_batch):
        expand[r, r // rows_per_batch] = 1.0

    def bd(m):                                # per-slot block-diagonal for the LN/MLP tail
        out = np.zeros((Wo, Wo), np.float32)
        for s in range(p):
            out[s * d_k:(s + 1) * d_k, s * d_k:(s + 1) * d_k] = m
        return out

    tilev = lambda name: np.tile(get(name).reshape(1, d_k), (1, p))

    ordered = [
        (wkb, cdt), (bkb, f32c), (wvb, cdt), (bvb, f32c),
        (wqb, cdt), (bqb, f32c),
        (mexp, cdt), (rsum, cdt), (ones_bd, cdt), (bexp, cdt),
        (wof, cdt), (bob, f32c),
        (expand, cdt),
        (tilev("g1"), f32c), (tilev("be1"), f32c),
        (bd(get("wm1")), cdt), (tilev("bm1"), f32c),
        (bd(get("wm2")), cdt), (tilev("bm2"), f32c),
        (tilev("g2"), f32c), (tilev("be2"), f32c),
    ]
    return [jnp.asarray(a, dtype=d) for a, d in ordered]


# ------------------------------------------------------------------------------- wrapper

def _pick_pack(S, p):
    if p is not None:
        assert S % p == 0, "pack factor must divide S"
        return p
    for cand in (4, 2, 1):        # p=4 -> K=128 matmuls, 128-lane tail & dense output stores
        if S % cand == 0:
            return cand


def _pick_n_b(B, rows_per_batch, rows, max_rows=MAX_TILE_ROWS):
    valid = []
    for nb in range(1, B + 1):
        if B % nb:
            continue
        t = nb * rows_per_batch
        if t % 8 == 0 or t == rows:
            valid.append((nb, t))
    # largest tile <= max_rows that still leaves >= 2 grid steps (second TC on v7x),
    # else largest tile <= max_rows, else the smallest valid tile.
    two_step = [nb for nb, t in valid if t <= max_rows and rows // t >= 2]
    small = [nb for nb, t in valid if t <= max_rows]
    if two_step:
        return max(two_step)
    if small:
        return max(small)
    return min(nb for nb, _ in valid)


def map_encoder_pts_forward(roads, agents_emb, params, *, p=None, n_b=None,
                            compute_dtype=jnp.bfloat16):
    """roads: (B, S, P, map_attr+1); agents_emb: (T_obs, B, d_k).
    Returns (road_seg_emb (S, B, d_k) f32, road_segment_mask (B, S) bool)."""
    B, S, P, A1 = roads.shape
    d_k = params["wq"].shape[0]
    assert d_k % NUM_HEADS == 0
    N = B * S

    valid = roads[..., -1]
    road_segment_mask = jnp.sum(valid, axis=2) == 0                          # (B, S)

    p = _pick_pack(S, p)
    rows = N // p
    rows_per_batch = S // p

    # get_road_pts_mask point mask (+ first-point fixup), computed in XLA and packed.
    pts_mask = (valid == 0.0).reshape(N, P)
    all_masked = jnp.all(pts_mask, axis=-1)
    pts_mask = pts_mask.at[:, 0].set(jnp.where(all_masked, False, pts_mask[:, 0]))
    maskp = pts_mask.astype(compute_dtype).reshape(rows, p * P)

    roads_packed = roads.reshape(rows, p * P * A1).astype(compute_dtype)     # lane-dense input
    agents_last = agents_emb[-1].astype(compute_dtype)                       # (B, d_k)

    if n_b is None:
        n_b = _pick_n_b(B, rows_per_batch, rows)
    tile_rows = n_b * rows_per_batch
    assert B % n_b == 0 and rows % tile_rows == 0
    assert tile_rows % 8 == 0 or tile_rows == rows

    consts = _build_constants(params, P=P, d_k=d_k, H=NUM_HEADS, p=p,
                              n_b=n_b, rows_per_batch=rows_per_batch,
                              cdt=compute_dtype)

    def const_spec(x):
        nd = x.ndim
        return pl.BlockSpec(x.shape, lambda i, _nd=nd: (0,) * _nd)

    kern = functools.partial(_map_encoder_kernel, p=p,
                             approx_recip=(compute_dtype != jnp.float32))

    emb_packed = pl.pallas_call(
        kern,
        out_shape=jax.ShapeDtypeStruct((rows, p * d_k), jnp.float32),
        grid_spec=pltpu.PrefetchScalarGridSpec(
            num_scalar_prefetch=0,
            grid=(rows // tile_rows,),
            in_specs=[pl.BlockSpec((tile_rows, p * P * A1), lambda i: (i, 0)),
                      pl.BlockSpec((tile_rows, p * P), lambda i: (i, 0)),
                      pl.BlockSpec((B, d_k), lambda i: (0, 0))]
                     + [const_spec(c) for c in consts],
            out_specs=pl.BlockSpec((tile_rows, p * d_k), lambda i: (i, 0)),
        ),
        compiler_params=pltpu.CompilerParams(
            dimension_semantics=("parallel",),
            vmem_limit_bytes=32 * 1024 * 1024),
    )(roads_packed, maskp, agents_last, *consts)

    # TODO(synk): the (S, B, d_k) permute is kept to match the module's output layout;
    # fold it into the consumer if the downstream op accepts (B, S, d_k).
    road_seg_emb = emb_packed.reshape(B, S, d_k).transpose(1, 0, 2)
    return road_seg_emb, road_segment_mask


# ----------------------------------------------------------------------- params / reference

def init_params(key, d_k, map_attr=MAP_ATTR):
    ks = jax.random.split(key, 18)

    def xavier(k, shape, gain=1.0):
        std = gain * math.sqrt(2.0 / (shape[0] + shape[1]))
        return std * jax.random.normal(k, shape, dtype=jnp.float32)

    g = math.sqrt(2.0)
    A1 = map_attr + 1
    wlin = jnp.zeros((A1, d_k), jnp.float32).at[:map_attr].set(
        xavier(ks[0], (map_attr, d_k), g))
    small = lambda k: 0.01 * jax.random.normal(k, (1, d_k), dtype=jnp.float32)
    return dict(
        wlin=wlin, blin=small(ks[1]),
        wq=xavier(ks[2], (d_k, d_k)), bq=small(ks[3]),
        wk=xavier(ks[4], (d_k, d_k)), bk=small(ks[5]),
        wv=xavier(ks[6], (d_k, d_k)), bv=small(ks[7]),
        wo=xavier(ks[8], (d_k, d_k)), bo=small(ks[9]),
        g1=jnp.ones((1, d_k), jnp.float32) + 0.05 * jax.random.normal(ks[10], (1, d_k)),
        be1=0.05 * jax.random.normal(ks[11], (1, d_k)),
        wm1=xavier(ks[12], (d_k, d_k), g), bm1=small(ks[13]),
        wm2=xavier(ks[14], (d_k, d_k), g), bm2=small(ks[15]),
        g2=jnp.ones((1, d_k), jnp.float32) + 0.05 * jax.random.normal(ks[16], (1, d_k)),
        be2=0.05 * jax.random.normal(ks[17], (1, d_k)),
    )


def reference_forward(roads, agents_emb, params):
    """Pure-JAX f32 reference mirroring the PyTorch module (eval mode)."""
    B, S, P, A1 = roads.shape
    d_k = params["wq"].shape[0]
    H, hd = NUM_HEADS, params["wq"].shape[0] // NUM_HEADS
    valid = roads[..., -1]
    seg_mask = jnp.sum(valid, axis=2) == 0

    pts_mask = (valid == 0.0).reshape(B * S, P)
    all_masked = jnp.sum(pts_mask, axis=-1) == P
    pts_mask = pts_mask.at[:, 0].set(jnp.where(all_masked, False, pts_mask[:, 0]))

    feats = roads[..., :MAP_ATTR].reshape(-1, MAP_ATTR) @ params["wlin"][:MAP_ATTR] \
        + params["blin"]
    feats = feats.reshape(B * S, P, d_k)
    q_in = jnp.repeat(agents_emb[-1], S, axis=0)

    q = (q_in @ params["wq"] + params["bq"]).reshape(B * S, H, hd)
    k = (feats.reshape(-1, d_k) @ params["wk"] + params["bk"]).reshape(B * S, P, H, hd)
    v = (feats.reshape(-1, d_k) @ params["wv"] + params["bv"]).reshape(B * S, P, H, hd)
    scores = jnp.einsum("nhd,nphd->nhp", q, k) / math.sqrt(hd)
    scores = jnp.where(pts_mask[:, None, :], -jnp.inf, scores)
    w = jax.nn.softmax(scores, axis=-1)
    o = jnp.einsum("nhp,nphd->nhd", w, v).reshape(B * S, d_k)
    x = o @ params["wo"] + params["bo"]

    def ln(z, gamma, beta):
        mu = z.mean(-1, keepdims=True)
        var = ((z - mu) ** 2).mean(-1, keepdims=True)
        return (z - mu) / jnp.sqrt(var + LN_EPS) * gamma + beta

    x1 = ln(x, params["g1"], params["be1"])
    h = jax.nn.relu(x1 @ params["wm1"] + params["bm1"])
    x2 = ln(x1 + h @ params["wm2"] + params["bm2"], params["g2"], params["be2"])
    return x2.reshape(B, S, d_k).transpose(1, 0, 2), seg_mask


if __name__ == "__main__":
    key = jax.random.PRNGKey(0)
    B, S, P, d_k, T_obs = 2, 8, 8, 32, 4          # N = B*S = 16 segments, pack p=4
    kp, kr, km, ka = jax.random.split(key, 4)

    params = init_params(kp, d_k)
    xyz = jax.random.normal(kr, (B, S, P, MAP_ATTR), dtype=jnp.float32)
    valid = (jax.random.uniform(km, (B, S, P)) > 0.3).astype(jnp.float32)
    valid = valid.at[0, 0].set(0.0)               # fully empty segment -> exercises mask fixup
    valid = valid.at[1, 3].set(0.0)
    roads = jnp.concatenate([xyz, valid[..., None]], axis=-1)           # (B, S, P, 4)
    agents_emb = jax.random.normal(ka, (T_obs, B, d_k), dtype=jnp.float32)

    ref_emb, ref_mask = reference_forward(roads, agents_emb, params)

    # f32 matmul path: tight numerical check of the fused kernel (exact reciprocal/LN).
    emb32, mask32 = map_encoder_pts_forward(roads, agents_emb, params,
                                            compute_dtype=jnp.float32)
    jax.block_until_ready((emb32, mask32))
    np.testing.assert_allclose(np.asarray(emb32), np.asarray(ref_emb),
                               rtol=2e-2, atol=2e-2)
    assert bool(jnp.all(mask32 == ref_mask))

    # bf16 matmul path (default on all TPU generations) with looser tolerance.
    emb, seg_mask = map_encoder_pts_forward(roads, agents_emb, params)
    jax.block_until_ready((emb, seg_mask))
    np.testing.assert_allclose(np.asarray(emb), np.asarray(ref_emb),
                               rtol=6e-2, atol=6e-2)
    assert bool(jnp.all(seg_mask == ref_mask))
    assert emb.shape == (S, B, d_k) and seg_mask.shape == (B, S)
    print("KERNEL_OK")
</pallas_src>

<mosaic_0001>
module attributes {stable_mosaic.version = 11 : i64} {
  func.func @_map_encoder_kernel(%arg0: i32, %arg1: memref<4x128xf32, #tpu.memory_space<vmem>>, %arg2: memref<4x32xf32, #tpu.memory_space<vmem>>, %arg3: memref<2x32xf32, #tpu.memory_space<vmem>>, %arg4: memref<128x1024xf32, #tpu.memory_space<vmem>>, %arg5: memref<1x1024xf32, #tpu.memory_space<vmem>>, %arg6: memref<128x1024xf32, #tpu.memory_space<vmem>>, %arg7: memref<1x1024xf32, #tpu.memory_space<vmem>>, %arg8: memref<32x1024xf32, #tpu.memory_space<vmem>>, %arg9: memref<1x1024xf32, #tpu.memory_space<vmem>>, %arg10: memref<32x256xf32, #tpu.memory_space<vmem>>, %arg11: memref<1024x256xf32, #tpu.memory_space<vmem>>, %arg12: memref<256x256xf32, #tpu.memory_space<vmem>>, %arg13: memref<256x1024xf32, #tpu.memory_space<vmem>>, %arg14: memref<1024x128xf32, #tpu.memory_space<vmem>>, %arg15: memref<1x128xf32, #tpu.memory_space<vmem>>, %arg16: memref<4x2xf32, #tpu.memory_space<vmem>>, %arg17: memref<1x128xf32, #tpu.memory_space<vmem>>, %arg18: memref<1x128xf32, #tpu.memory_space<vmem>>, %arg19: memref<128x128xf32, #tpu.memory_space<vmem>>, %arg20: memref<1x128xf32, #tpu.memory_space<vmem>>, %arg21: memref<128x128xf32, #tpu.memory_space<vmem>>, %arg22: memref<1x128xf32, #tpu.memory_space<vmem>>, %arg23: memref<1x128xf32, #tpu.memory_space<vmem>>, %arg24: memref<1x128xf32, #tpu.memory_space<vmem>>, %arg25: memref<4x128xf32, #tpu.memory_space<vmem>>) attributes {dimension_semantics = [#tpu.dimension_semantics<parallel>], iteration_bounds = array<i64: 1>, scalar_prefetch = 0 : i64, scratch_operands = 0 : i64, tpu.core_type = #tpu.core_type<tc>, window_params = [{transform_indices = @transform_0, window_bounds = array<i64: 4, 128>}, {transform_indices = @transform_1, window_bounds = array<i64: 4, 32>}, {pipeline_mode = #tpu.pipeline_mode<synchronous>, transform_indices = @transform_2, window_bounds = array<i64: 2, 32>}, {pipeline_mode = #tpu.pipeline_mode<synchronous>, transform_indices = @transform_3, window_bounds = array<i64: 128, 1024>}, {pipeline_mode = #tpu.pipeline_mode<synchronous>, transform_indices = @transform_4, window_bounds = array<i64: 1, 1024>}, {pipeline_mode = #tpu.pipeline_mode<synchronous>, transform_indices = @transform_5, window_bounds = array<i64: 128, 1024>}, {pipeline_mode = #tpu.pipeline_mode<synchronous>, transform_indices = @transform_6, window_bounds = array<i64: 1, 1024>}, {pipeline_mode = #tpu.pipeline_mode<synchronous>, transform_indices = @transform_7, window_bounds = array<i64: 32, 1024>}, {pipeline_mode = #tpu.pipeline_mode<synchronous>, transform_indices = @transform_8, window_bounds = array<i64: 1, 1024>}, {pipeline_mode = #tpu.pipeline_mode<synchronous>, transform_indices = @transform_9, window_bounds = array<i64: 32, 256>}, {pipeline_mode = #tpu.pipeline_mode<synchronous>, transform_indices = @transform_10, window_bounds = array<i64: 1024, 256>}, {pipeline_mode = #tpu.pipeline_mode<synchronous>, transform_indices = @transform_11, window_bounds = array<i64: 256, 256>}, {pipeline_mode = #tpu.pipeline_mode<synchronous>, transform_indices = @transform_12, window_bounds = array<i64: 256, 1024>}, {pipeline_mode = #tpu.pipeline_mode<synchronous>, transform_indices = @transform_13, window_bounds = array<i64: 1024, 128>}, {pipeline_mode = #tpu.pipeline_mode<synchronous>, transform_indices = @transform_14, window_bounds = array<i64: 1, 128>}, {pipeline_mode = #tpu.pipeline_mode<synchronous>, transform_indices = @transform_15, window_bounds = array<i64: 4, 2>}, {pipeline_mode = #tpu.pipeline_mode<synchronous>, transform_indices = @transform_16, window_bounds = array<i64: 1, 128>}, {pipeline_mode = #tpu.pipeline_mode<synchronous>, transform_indices = @transform_17, window_bounds = array<i64: 1, 128>}, {pipeline_mode = #tpu.pipeline_mode<synchronous>, transform_indices = @transform_18, window_bounds = array<i64: 128, 128>}, {pipeline_mode = #tpu.pipeline_mode<synchronous>, transform_indices = @transform_19, window_bounds = array<i64: 1, 128>}, {pipeline_mode = #tpu.pipeline_mode<synchronous>, transform_indices = @transform_20, window_bounds = array<i64: 128, 128>}, {pipeline_mode = #tpu.pipeline_mode<synchronous>, transform_indices = @transform_21, window_bounds = array<i64: 1, 128>}, {pipeline_mode = #tpu.pipeline_mode<synchronous>, transform_indices = @transform_22, window_bounds = array<i64: 1, 128>}, {pipeline_mode = #tpu.pipeline_mode<synchronous>, transform_indices = @transform_23, window_bounds = array<i64: 1, 128>}, {transform_indices = @transform_24, window_bounds = array<i64: 4, 128>}]} {
    %c0 = arith.constant 0 : index
    %c0_0 = arith.constant 0 : index
    %0 = vector.load %arg1[%c0, %c0_0] : memref<4x128xf32, #tpu.memory_space<vmem>>, vector<4x128xf32>
    %c0_1 = arith.constant 0 : index
    %c0_2 = arith.constant 0 : index
    %1 = vector.load %arg4[%c0_1, %c0_2] : memref<128x1024xf32, #tpu.memory_space<vmem>>, vector<128x1024xf32>
    %cst = arith.constant dense<0.000000e+00> : vector<4x1024xf32>
    %2 = tpu.matmul %0, %1, %cst {dimension_numbers = #tpu.dot_dimension_numbers<[1], [0], [0], [1], [0, 0, 1, 1], [], []>} : vector<4x128xf32>, vector<128x1024xf32>, vector<4x1024xf32> -> vector<4x1024xf32>
    %c0_3 = arith.constant 0 : index
    %c0_4 = arith.constant 0 : index
    %3 = vector.load %arg5[%c0_3, %c0_4] : memref<1x1024xf32, #tpu.memory_space<vmem>>, vector<1x1024xf32>
    %4 = vector.broadcast %3 : vector<1x1024xf32> to vector<4x1024xf32>
    %5 = arith.addf %2, %4 : vector<4x1024xf32>
    %c0_5 = arith.constant 0 : index
    %c0_6 = arith.constant 0 : index
    %6 = vector.load %arg6[%c0_5, %c0_6] : memref<128x1024xf32, #tpu.memory_space<vmem>>, vector<128x1024xf32>
    %cst_7 = arith.constant dense<0.000000e+00> : vector<4x1024xf32>
    %7 = tpu.matmul %0, %6, %cst_7 {dimension_numbers = #tpu.dot_dimension_numbers<[1], [0], [0], [1], [0, 0, 1, 1], [], []>} : vector<4x128xf32>, vector<128x1024xf32>, vector<4x1024xf32> -> vector<4x1024xf32>
    %c0_8 = arith.constant 0 : index
    %c0_9 = arith.constant 0 : index
    %8 = vector.load %arg7[%c0_8, %c0_9] : memref<1x1024xf32, #tpu.memory_space<vmem>>, vector<1x1024xf32>
    %9 = vector.broadcast %8 : vector<1x1024xf32> to vector<4x1024xf32>
    %10 = arith.addf %7, %9 : vector<4x1024xf32>
    %c2_i32 = arith.constant 2 : i32
    %11 = arith.muli %arg0, %c2_i32 : i32
    %12 = arith.index_cast %11 : i32 to index
    %c0_10 = arith.constant 0 : index
    %13 = vector.load %arg3[%12, %c0_10] : memref<2x32xf32, #tpu.memory_space<vmem>>, vector<2x32xf32>
    %c0_11 = arith.constant 0 : index
    %c0_12 = arith.constant 0 : index
    %14 = vector.load %arg16[%c0_11, %c0_12] : memref<4x2xf32, #tpu.memory_space<vmem>>, vector<4x2xf32>
    %cst_13 = arith.constant dense<0.000000e+00> : vector<4x32xf32>
    %15 = tpu.matmul %14, %13, %cst_13 {dimension_numbers = #tpu.dot_dimension_numbers<[1], [0], [0], [1], [0, 0, 1, 1], [], []>} : vector<4x2xf32>, vector<2x32xf32>, vector<4x32xf32> -> vector<4x32xf32>
    %c0_14 = arith.constant 0 : index
    %c0_15 = arith.constant 0 : index
    %16 = vector.load %arg8[%c0_14, %c0_15] : memref<32x1024xf32, #tpu.memory_space<vmem>>, vector<32x1024xf32>
    %cst_16 = arith.constant dense<0.000000e+00> : vector<4x1024xf32>
    %17 = tpu.matmul %15, %16, %cst_16 {dimension_numbers = #tpu.dot_dimension_numbers<[1], [0], [0], [1], [0, 0, 1, 1], [], []>} : vector<4x32xf32>, vector<32x1024xf32>, vector<4x1024xf32> -> vector<4x1024xf32>
    %c0_17 = arith.constant 0 : index
    %c0_18 = arith.constant 0 : index
    %18 = vector.load %arg9[%c0_17, %c0_18] : memref<1x1024xf32, #tpu.memory_space<vmem>>, vector<1x1024xf32>
    %19 = vector.broadcast %18 : vector<1x1024xf32> to vector<4x1024xf32>
    %20 = arith.addf %17, %19 : vector<4x1024xf32>
    %21 = arith.mulf %5, %20 : vector<4x1024xf32>
    %c0_19 = arith.constant 0 : index
    %c0_20 = arith.constant 0 : index
    %22 = vector.load %arg11[%c0_19, %c0_20] : memref<1024x256xf32, #tpu.memory_space<vmem>>, vector<1024x256xf32>
    %cst_21 = arith.constant dense<0.000000e+00> : vector<4x256xf32>
    %23 = tpu.matmul %21, %22, %cst_21 {dimension_numbers = #tpu.dot_dimension_numbers<[1], [0], [0], [1], [0, 0, 1, 1], [], []>} : vector<4x1024xf32>, vector<1024x256xf32>, vector<4x256xf32> -> vector<4x256xf32>
    %c0_22 = arith.constant 0 : index
    %c0_23 = arith.constant 0 : index
    %24 = vector.load %arg2[%c0_22, %c0_23] : memref<4x32xf32, #tpu.memory_space<vmem>>, vector<4x32xf32>
    %c0_24 = arith.constant 0 : index
    %c0_25 = arith.constant 0 : index
    %25 = vector.load %arg10[%c0_24, %c0_25] : memref<32x256xf32, #tpu.memory_space<vmem>>, vector<32x256xf32>
    %cst_26 = arith.constant dense<0.000000e+00> : vector<4x256xf32>
    %26 = tpu.matmul %24, %25, %cst_26 {dimension_numbers = #tpu.dot_dimension_numbers<[1], [0], [0], [1], [0, 0, 1, 1], [], []>} : vector<4x32xf32>, vector<32x256xf32>, vector<4x256xf32> -> vector<4x256xf32>
    %cst_27 = arith.constant 5.000000e-01 : f32
    %27 = vector.broadcast %cst_27 : f32 to vector<4x256xf32>
    %28 = arith.cmpf ogt, %26, %27 : vector<4x256xf32>
    %cst_28 = arith.constant -1.000000e+30 : f32
    %29 = vector.broadcast %cst_28 : f32 to vector<4x256xf32>
    %30 = arith.select %28, %29, %23 : vector<4x256xi1>, vector<4x256xf32>
    %31 = tpu.iota {dimensions = array<i32: 1>} : vector<1x256xi32>
    %c0_i32 = arith.constant 0 : i32
    %32 = vector.broadcast %c0_i32 : i32 to vector<1x256xi32>
    %33 = arith.cmpi sge, %31, %32 : vector<1x256xi32>
    %c64_i32 = arith.constant 64 : i32
    %34 = vector.broadcast %c64_i32 : i32 to vector<1x256xi32>
    %35 = arith.cmpi slt, %31, %34 : vector<1x256xi32>
    %36 = arith.andi %33, %35 : vector<1x256xi1>
    %37 = arith.extui %36 : vector<1x256xi1> to vector<1x256xi32>
    %38 = arith.sitofp %37 : vector<1x256xi32> to vector<1x256xf32>
    %c64_i32_29 = arith.constant 64 : i32
    %39 = vector.broadcast %c64_i32_29 : i32 to vector<1x256xi32>
    %40 = arith.cmpi sge, %31, %39 : vector<1x256xi32>
    %c128_i32 = arith.constant 128 : i32
    %41 = vector.broadcast %c128_i32 : i32 to vector<1x256xi32>
    %42 = arith.cmpi slt, %31, %41 : vector<1x256xi32>
    %43 = arith.andi %40, %42 : vector<1x256xi1>
    %44 = arith.extui %43 : vector<1x256xi1> to vector<1x256xi32>
    %45 = arith.sitofp %44 : vector<1x256xi32> to vector<1x256xf32>
    %c128_i32_30 = arith.constant 128 : i32
    %46 = vector.broadcast %c128_i32_30 : i32 to vector<1x256xi32>
    %47 = arith.cmpi sge, %31, %46 : vector<1x256xi32>
    %c192_i32 = arith.constant 192 : i32
    %48 = vector.broadcast %c192_i32 : i32 to vector<1x256xi32>
    %49 = arith.cmpi slt, %31, %48 : vector<1x256xi32>
    %50 = arith.andi %47, %49 : vector<1x256xi1>
    %51 = arith.extui %50 : vector<1x256xi1> to vector<1x256xi32>
    %52 = arith.sitofp %51 : vector<1x256xi32> to vector<1x256xf32>
    %c192_i32_31 = arith.constant 192 : i32
    %53 = vector.broadcast %c192_i32_31 : i32 to vector<1x256xi32>
    %54 = arith.cmpi sge, %31, %53 : vector<1x256xi32>
    %c256_i32 = arith.constant 256 : i32
    %55 = vector.broadcast %c256_i32 : i32 to vector<1x256xi32>
    %56 = arith.cmpi slt, %31, %55 : vector<1x256xi32>
    %57 = arith.andi %54, %56 : vector<1x256xi1>
    %58 = arith.extui %57 : vector<1x256xi1> to vector<1x256xi32>
    %59 = arith.sitofp %58 : vector<1x256xi32> to vector<1x256xf32>
    %cst_32 = arith.constant 0.000000e+00 : f32
    %60 = vector.broadcast %cst_32 : f32 to vector<4x256xf32>
    %61 = vector.extract_strided_slice %30 {offsets = [0, 0], sizes = [4, 64], strides = [1, 1]} : vector<4x256xf32> to vector<4x64xf32>
    %cst_33 = arith.constant dense<0xFF800000> : vector<4xf32>
    %62 = vector.multi_reduction <maximumf>, %61, %cst_33 [1] : vector<4x64xf32> to vector<4xf32>
    %63 = vector.shape_cast %62 : vector<4xf32> to vector<4x1xf32>
    %64 = vector.broadcast %63 : vector<4x1xf32> to vector<4x256xf32>
    %65 = vector.broadcast %38 : vector<1x256xf32> to vector<4x256xf32>
    %66 = arith.mulf %64, %65 : vector<4x256xf32>
    %67 = arith.addf %60, %66 : vector<4x256xf32>
    %68 = vector.extract_strided_slice %30 {offsets = [0, 64], sizes = [4, 64], strides = [1, 1]} : vector<4x256xf32> to vector<4x64xf32>
    %cst_34 = arith.constant dense<0xFF800000> : vector<4xf32>
    %69 = vector.multi_reduction <maximumf>, %68, %cst_34 [1] : vector<4x64xf32> to vector<4xf32>
    %70 = vector.shape_cast %69 : vector<4xf32> to vector<4x1xf32>
    %71 = vector.broadcast %70 : vector<4x1xf32> to vector<4x256xf32>
    %72 = vector.broadcast %45 : vector<1x256xf32> to vector<4x256xf32>
    %73 = arith.mulf %71, %72 : vector<4x256xf32>
    %74 = arith.addf %67, %73 : vector<4x256xf32>
    %75 = vector.extract_strided_slice %30 {offsets = [0, 128], sizes = [4, 64], strides = [1, 1]} : vector<4x256xf32> to vector<4x64xf32>
    %cst_35 = arith.constant dense<0xFF800000> : vector<4xf32>
    %76 = vector.multi_reduction <maximumf>, %75, %cst_35 [1] : vector<4x64xf32> to vector<4xf32>
    %77 = vector.shape_cast %76 : vector<4xf32> to vector<4x1xf32>
    %78 = vector.broadcast %77 : vector<4x1xf32> to vector<4x256xf32>
    %79 = vector.broadcast %52 : vector<1x256xf32> to vector<4x256xf32>
    %80 = arith.mulf %78, %79 : vector<4x256xf32>
    %81 = arith.addf %74, %80 : vector<4x256xf32>
    %82 = vector.extract_strided_slice %30 {offsets = [0, 192], sizes = [4, 64], strides = [1, 1]} : vector<4x256xf32> to vector<4x64xf32>
    %cst_36 = arith.constant dense<0xFF800000> : vector<4xf32>
    %83 = vector.multi_reduction <maximumf>, %82, %cst_36 [1] : vector<4x64xf32> to vector<4xf32>
    %84 = vector.shape_cast %83 : vector<4xf32> to vector<4x1xf32>
    %85 = vector.broadcast %84 : vector<4x1xf32> to vector<4x256xf32>
    %86 = vector.broadcast %59 : vector<1x256xf32> to vector<4x256xf32>
    %87 = arith.mulf %85, %86 : vector<4x256xf32>
    %88 = arith.addf %81, %87 : vector<4x256xf32>
    %89 = arith.subf %30, %88 : vector<4x256xf32>
    %90 = math.exp %89 : vector<4x256xf32>
    %c0_37 = arith.constant 0 : index
    %c0_38 = arith.constant 0 : index
    %91 = vector.load %arg12[%c0_37, %c0_38] : memref<256x256xf32, #tpu.memory_space<vmem>>, vector<256x256xf32>
    %cst_39 = arith.constant dense<0.000000e+00> : vector<4x256xf32>
    %92 = tpu.matmul %90, %91, %cst_39 {dimension_numbers = #tpu.dot_dimension_numbers<[1], [0], [0], [1], [0, 0, 1, 1], [], []>} : vector<4x256xf32>, vector<256x256xf32>, vector<4x256xf32> -> vector<4x256xf32>
    %cst_40 = arith.constant 1.000000e-30 : f32
    %93 = vector.broadcast %cst_40 : f32 to vector<4x256xf32>
    %94 = arith.maximumf %92, %93 : vector<4x256xf32>
    %cst_41 = arith.constant 1.000000e+00 : f32
    %95 = vector.broadcast %cst_41 : f32 to vector<4x256xf32>
    %96 = arith.divf %95, %94 : vector<4x256xf32>
    %97 = arith.mulf %90, %96 : vector<4x256xf32>
    %c0_42 = arith.constant 0 : index
    %c0_43 = arith.constant 0 : index
    %98 = vector.load %arg13[%c0_42, %c0_43] : memref<256x1024xf32, #tpu.memory_space<vmem>>, vector<256x1024xf32>
    %cst_44 = arith.constant dense<0.000000e+00> : vector<4x1024xf32>
    %99 = tpu.matmul %97, %98, %cst_44 {dimension_numbers = #tpu.dot_dimension_numbers<[1], [0], [0], [1], [0, 0, 1, 1], [], []>} : vector<4x256xf32>, vector<256x1024xf32>, vector<4x1024xf32> -> vector<4x1024xf32>
    %100 = arith.mulf %99, %10 : vector<4x1024xf32>
    %c0_45 = arith.constant 0 : index
    %c0_46 = arith.constant 0 : index
    %101 = vector.load %arg14[%c0_45, %c0_46] : memref<1024x128xf32, #tpu.memory_space<vmem>>, vector<1024x128xf32>
    %cst_47 = arith.constant dense<0.000000e+00> : vector<4x128xf32>
    %102 = tpu.matmul %100, %101, %cst_47 {dimension_numbers = #tpu.dot_dimension_numbers<[1], [0], [0], [1], [0, 0, 1, 1], [], []>} : vector<4x1024xf32>, vector<1024x128xf32>, vector<4x128xf32> -> vector<4x128xf32>
    %c0_48 = arith.constant 0 : index
    %c0_49 = arith.constant 0 : index
    %103 = vector.load %arg15[%c0_48, %c0_49] : memref<1x128xf32, #tpu.memory_space<vmem>>, vector<1x128xf32>
    %104 = vector.broadcast %103 : vector<1x128xf32> to vector<4x128xf32>
    %105 = arith.addf %102, %104 : vector<4x128xf32>
    %c0_50 = arith.constant 0 : index
    %c0_51 = arith.constant 0 : index
    %106 = vector.load %arg17[%c0_50, %c0_51] : memref<1x128xf32, #tpu.memory_space<vmem>>, vector<1x128xf32>
    %c0_52 = arith.constant 0 : index
    %c0_53 = arith.constant 0 : index
    %107 = vector.load %arg18[%c0_52, %c0_53] : memref<1x128xf32, #tpu.memory_space<vmem>>, vector<1x128xf32>
    %108 = tpu.iota {dimensions = array<i32: 1>} : vector<1x128xi32>
    %c0_i32_54 = arith.constant 0 : i32
    %109 = vector.broadcast %c0_i32_54 : i32 to vector<1x128xi32>
    %110 = arith.cmpi sge, %108, %109 : vector<1x128xi32>
    %c32_i32 = arith.constant 32 : i32
    %111 = vector.broadcast %c32_i32 : i32 to vector<1x128xi32>
    %112 = arith.cmpi slt, %108, %111 : vector<1x128xi32>
    %113 = arith.andi %110, %112 : vector<1x128xi1>
    %114 = arith.extui %113 : vector<1x128xi1> to vector<1x128xi32>
    %115 = arith.sitofp %114 : vector<1x128xi32> to vector<1x128xf32>
    %c32_i32_55 = arith.constant 32 : i32
    %116 = vector.broadcast %c32_i32_55 : i32 to vector<1x128xi32>
    %117 = arith.cmpi sge, %108, %116 : vector<1x128xi32>
    %c64_i32_56 = arith.constant 64 : i32
    %118 = vector.broadcast %c64_i32_56 : i32 to vector<1x128xi32>
    %119 = arith.cmpi slt, %108, %118 : vector<1x128xi32>
    %120 = arith.andi %117, %119 : vector<1x128xi1>
    %121 = arith.extui %120 : vector<1x128xi1> to vector<1x128xi32>
    %122 = arith.sitofp %121 : vector<1x128xi32> to vector<1x128xf32>
    %c64_i32_57 = arith.constant 64 : i32
    %123 = vector.broadcast %c64_i32_57 : i32 to vector<1x128xi32>
    %124 = arith.cmpi sge, %108, %123 : vector<1x128xi32>
    %c96_i32 = arith.constant 96 : i32
    %125 = vector.broadcast %c96_i32 : i32 to vector<1x128xi32>
    %126 = arith.cmpi slt, %108, %125 : vector<1x128xi32>
    %127 = arith.andi %124, %126 : vector<1x128xi1>
    %128 = arith.extui %127 : vector<1x128xi1> to vector<1x128xi32>
    %129 = arith.sitofp %128 : vector<1x128xi32> to vector<1x128xf32>
    %c96_i32_58 = arith.constant 96 : i32
    %130 = vector.broadcast %c96_i32_58 : i32 to vector<1x128xi32>
    %131 = arith.cmpi sge, %108, %130 : vector<1x128xi32>
    %c128_i32_59 = arith.constant 128 : i32
    %132 = vector.broadcast %c128_i32_59 : i32 to vector<1x128xi32>
    %133 = arith.cmpi slt, %108, %132 : vector<1x128xi32>
    %134 = arith.andi %131, %133 : vector<1x128xi1>
    %135 = arith.extui %134 : vector<1x128xi1> to vector<1x128xi32>
    %136 = arith.sitofp %135 : vector<1x128xi32> to vector<1x128xf32>
    %cst_60 = arith.constant 0.000000e+00 : f32
    %137 = vector.broadcast %cst_60 : f32 to vector<4x128xf32>
    %138 = vector.extract_strided_slice %105 {offsets = [0, 0], sizes = [4, 32], strides = [1, 1]} : vector<4x128xf32> to vector<4x32xf32>
    %cst_61 = arith.constant dense<0.000000e+00> : vector<4xf32>
    %139 = vector.multi_reduction <add>, %138, %cst_61 [1] : vector<4x32xf32> to vector<4xf32>
    %140 = vector.shape_cast %139 : vector<4xf32> to vector<4x1xf32>
    %cst_62 = arith.constant 3.200000e+01 : f32
    %141 = vector.broadcast %cst_62 : f32 to vector<4x1xf32>
    %142 = arith.divf %140, %141 : vector<4x1xf32>
    %143 = vector.broadcast %142 : vector<4x1xf32> to vector<4x128xf32>
    %144 = vector.broadcast %115 : vector<1x128xf32> to vector<4x128xf32>
    %145 = arith.mulf %143, %144 : vector<4x128xf32>
    %146 = arith.addf %137, %145 : vector<4x128xf32>
    %147 = vector.extract_strided_slice %105 {offsets = [0, 32], sizes = [4, 32], strides = [1, 1]} : vector<4x128xf32> to vector<4x32xf32>
    %cst_63 = arith.constant dense<0.000000e+00> : vector<4xf32>
    %148 = vector.multi_reduction <add>, %147, %cst_63 [1] : vector<4x32xf32> to vector<4xf32>
    %149 = vector.shape_cast %148 : vector<4xf32> to vector<4x1xf32>
    %cst_64 = arith.constant 3.200000e+01 : f32
    %150 = vector.broadcast %cst_64 : f32 to vector<4x1xf32>
    %151 = arith.divf %149, %150 : vector<4x1xf32>
    %152 = vector.broadcast %151 : vector<4x1xf32> to vector<4x128xf32>
    %153 = vector.broadcast %122 : vector<1x128xf32> to vector<4x128xf32>
    %154 = arith.mulf %152, %153 : vector<4x128xf32>
    %155 = arith.addf %146, %154 : vector<4x128xf32>
    %156 = vector.extract_strided_slice %105 {offsets = [0, 64], sizes = [4, 32], strides = [1, 1]} : vector<4x128xf32> to vector<4x32xf32>
    %cst_65 = arith.constant dense<0.000000e+00> : vector<4xf32>
    %157 = vector.multi_reduction <add>, %156, %cst_65 [1] : vector<4x32xf32> to vector<4xf32>
    %158 = vector.shape_cast %157 : vector<4xf32> to vector<4x1xf32>
    %cst_66 = arith.constant 3.200000e+01 : f32
    %159 = vector.broadcast %cst_66 : f32 to vector<4x1xf32>
    %160 = arith.divf %158, %159 : vector<4x1xf32>
    %161 = vector.broadcast %160 : vector<4x1xf32> to vector<4x128xf32>
    %162 = vector.broadcast %129 : vector<1x128xf32> to vector<4x128xf32>
    %163 = arith.mulf %161, %162 : vector<4x128xf32>
    %164 = arith.addf %155, %163 : vector<4x128xf32>
    %165 = vector.extract_strided_slice %105 {offsets = [0, 96], sizes = [4, 32], strides = [1, 1]} : vector<4x128xf32> to vector<4x32xf32>
    %cst_67 = arith.constant dense<0.000000e+00> : vector<4xf32>
    %166 = vector.multi_reduction <add>, %165, %cst_67 [1] : vector<4x32xf32> to vector<4xf32>
    %167 = vector.shape_cast %166 : vector<4xf32> to vector<4x1xf32>
    %cst_68 = arith.constant 3.200000e+01 : f32
    %168 = vector.broadcast %cst_68 : f32 to vector<4x1xf32>
    %169 = arith.divf %167, %168 : vector<4x1xf32>
    %170 = vector.broadcast %169 : vector<4x1xf32> to vector<4x128xf32>
    %171 = vector.broadcast %136 : vector<1x128xf32> to vector<4x128xf32>
    %172 = arith.mulf %170, %171 : vector<4x128xf32>
    %173 = arith.addf %164, %172 : vector<4x128xf32>
    %174 = arith.subf %105, %173 : vector<4x128xf32>
    %cst_69 = arith.constant 0.000000e+00 : f32
    %175 = vector.broadcast %cst_69 : f32 to vector<4x128xf32>
    %176 = vector.extract_strided_slice %174 {offsets = [0, 0], sizes = [4, 32], strides = [1, 1]} : vector<4x128xf32> to vector<4x32xf32>
    %177 = arith.mulf %176, %176 : vector<4x32xf32>
    %cst_70 = arith.constant dense<0.000000e+00> : vector<4xf32>
    %178 = vector.multi_reduction <add>, %177, %cst_70 [1] : vector<4x32xf32> to vector<4xf32>
    %179 = vector.shape_cast %178 : vector<4xf32> to vector<4x1xf32>
    %cst_71 = arith.constant 3.200000e+01 : f32
    %180 = vector.broadcast %cst_71 : f32 to vector<4x1xf32>
    %181 = arith.divf %179, %180 : vector<4x1xf32>
    %182 = vector.broadcast %181 : vector<4x1xf32> to vector<4x128xf32>
    %183 = vector.broadcast %115 : vector<1x128xf32> to vector<4x128xf32>
    %184 = arith.mulf %182, %183 : vector<4x128xf32>
    %185 = arith.addf %175, %184 : vector<4x128xf32>
    %186 = vector.extract_strided_slice %174 {offsets = [0, 32], sizes = [4, 32], strides = [1, 1]} : vector<4x128xf32> to vector<4x32xf32>
    %187 = arith.mulf %186, %186 : vector<4x32xf32>
    %cst_72 = arith.constant dense<0.000000e+00> : vector<4xf32>
    %188 = vector.multi_reduction <add>, %187, %cst_72 [1] : vector<4x32xf32> to vector<4xf32>
    %189 = vector.shape_cast %188 : vector<4xf32> to vector<4x1xf32>
    %cst_73 = arith.constant 3.200000e+01 : f32
    %190 = vector.broadcast %cst_73 : f32 to vector<4x1xf32>
    %191 = arith.divf %189, %190 : vector<4x1xf32>
    %192 = vector.broadcast %191 : vector<4x1xf32> to vector<4x128xf32>
    %193 = vector.broadcast %122 : vector<1x128xf32> to vector<4x128xf32>
    %194 = arith.mulf %192, %193 : vector<4x128xf32>
    %195 = arith.addf %185, %194 : vector<4x128xf32>
    %196 = vector.extract_strided_slice %174 {offsets = [0, 64], sizes = [4, 32], strides = [1, 1]} : vector<4x128xf32> to vector<4x32xf32>
    %197 = arith.mulf %196, %196 : vector<4x32xf32>
    %cst_74 = arith.constant dense<0.000000e+00> : vector<4xf32>
    %198 = vector.multi_reduction <add>, %197, %cst_74 [1] : vector<4x32xf32> to vector<4xf32>
    %199 = vector.shape_cast %198 : vector<4xf32> to vector<4x1xf32>
    %cst_75 = arith.constant 3.200000e+01 : f32
    %200 = vector.broadcast %cst_75 : f32 to vector<4x1xf32>
    %201 = arith.divf %199, %200 : vector<4x1xf32>
    %202 = vector.broadcast %201 : vector<4x1xf32> to vector<4x128xf32>
    %203 = vector.broadcast %129 : vector<1x128xf32> to vector<4x128xf32>
    %204 = arith.mulf %202, %203 : vector<4x128xf32>
    %205 = arith.addf %195, %204 : vector<4x128xf32>
    %206 = vector.extract_strided_slice %174 {offsets = [0, 96], sizes = [4, 32], strides = [1, 1]} : vector<4x128xf32> to vector<4x32xf32>
    %207 = arith.mulf %206, %206 : vector<4x32xf32>
    %cst_76 = arith.constant dense<0.000000e+00> : vector<4xf32>
    %208 = vector.multi_reduction <add>, %207, %cst_76 [1] : vector<4x32xf32> to vector<4xf32>
    %209 = vector.shape_cast %208 : vector<4xf32> to vector<4x1xf32>
    %cst_77 = arith.constant 3.200000e+01 : f32
    %210 = vector.broadcast %cst_77 : f32 to vector<4x1xf32>
    %211 = arith.divf %209, %210 : vector<4x1xf32>
    %212 = vector.broadcast %211 : vector<4x1xf32> to vector<4x128xf32>
    %213 = vector.broadcast %136 : vector<1x128xf32> to vector<4x128xf32>
    %214 = arith.mulf %212, %213 : vector<4x128xf32>
    %215 = arith.addf %205, %214 : vector<4x128xf32>
    %cst_78 = arith.constant 9.99999974E-6 : f32
    %216 = vector.broadcast %cst_78 : f32 to vector<4x128xf32>
    %217 = arith.addf %215, %216 : vector<4x128xf32>
    %218 = math.rsqrt %217 : vector<4x128xf32>
    %219 = arith.mulf %174, %218 : vector<4x128xf32>
    %220 = vector.broadcast %106 : vector<1x128xf32> to vector<4x128xf32>
    %221 = arith.mulf %219, %220 : vector<4x128xf32>
    %222 = vector.broadcast %107 : vector<1x128xf32> to vector<4x128xf32>
    %223 = arith.addf %221, %222 : vector<4x128xf32>
    %c0_79 = arith.constant 0 : index
    %c0_80 = arith.constant 0 : index
    %224 = vector.load %arg19[%c0_79, %c0_80] : memref<128x128xf32, #tpu.memory_space<vmem>>, vector<128x128xf32>
    %cst_81 = arith.constant dense<0.000000e+00> : vector<4x128xf32>
    %225 = tpu.matmul %223, %224, %cst_81 {dimension_numbers = #tpu.dot_dimension_numbers<[1], [0], [0], [1], [0, 0, 1, 1], [], []>} : vector<4x128xf32>, vector<128x128xf32>, vector<4x128xf32> -> vector<4x128xf32>
    %c0_82 = arith.constant 0 : index
    %c0_83 = arith.constant 0 : index
    %226 = vector.load %arg20[%c0_82, %c0_83] : memref<1x128xf32, #tpu.memory_space<vmem>>, vector<1x128xf32>
    %227 = vector.broadcast %226 : vector<1x128xf32> to vector<4x128xf32>
    %228 = arith.addf %225, %227 : vector<4x128xf32>
    %cst_84 = arith.constant 0.000000e+00 : f32
    %229 = vector.broadcast %cst_84 : f32 to vector<4x128xf32>
    %230 = arith.maximumf %228, %229 : vector<4x128xf32>
    %c0_85 = arith.constant 0 : index
    %c0_86 = arith.constant 0 : index
    %231 = vector.load %arg21[%c0_85, %c0_86] : memref<128x128xf32, #tpu.memory_space<vmem>>, vector<128x128xf32>
    %cst_87 = arith.constant dense<0.000000e+00> : vector<4x128xf32>
    %232 = tpu.matmul %230, %231, %cst_87 {dimension_numbers = #tpu.dot_dimension_numbers<[1], [0], [0], [1], [0, 0, 1, 1], [], []>} : vector<4x128xf32>, vector<128x128xf32>, vector<4x128xf32> -> vector<4x128xf32>
    %c0_88 = arith.constant 0 : index
    %c0_89 = arith.constant 0 : index
    %233 = vector.load %arg22[%c0_88, %c0_89] : memref<1x128xf32, #tpu.memory_space<vmem>>, vector<1x128xf32>
    %234 = vector.broadcast %233 : vector<1x128xf32> to vector<4x128xf32>
    %235 = arith.addf %232, %234 : vector<4x128xf32>
    %236 = arith.addf %223, %235 : vector<4x128xf32>
    %c0_90 = arith.constant 0 : index
    %c0_91 = arith.constant 0 : index
    %237 = vector.load %arg23[%c0_90, %c0_91] : memref<1x128xf32, #tpu.memory_space<vmem>>, vector<1x128xf32>
    %c0_92 = arith.constant 0 : index
    %c0_93 = arith.constant 0 : index
    %238 = vector.load %arg24[%c0_92, %c0_93] : memref<1x128xf32, #tpu.memory_space<vmem>>, vector<1x128xf32>
    %239 = tpu.iota {dimensions = array<i32: 1>} : vector<1x128xi32>
    %c0_i32_94 = arith.constant 0 : i32
    %240 = vector.broadcast %c0_i32_94 : i32 to vector<1x128xi32>
    %241 = arith.cmpi sge, %239, %240 : vector<1x128xi32>
    %c32_i32_95 = arith.constant 32 : i32
    %242 = vector.broadcast %c32_i32_95 : i32 to vector<1x128xi32>
    %243 = arith.cmpi slt, %239, %242 : vector<1x128xi32>
    %244 = arith.andi %241, %243 : vector<1x128xi1>
    %245 = arith.extui %244 : vector<1x128xi1> to vector<1x128xi32>
    %246 = arith.sitofp %245 : vector<1x128xi32> to vector<1x128xf32>
    %c32_i32_96 = arith.constant 32 : i32
    %247 = vector.broadcast %c32_i32_96 : i32 to vector<1x128xi32>
    %248 = arith.cmpi sge, %239, %247 : vector<1x128xi32>
    %c64_i32_97 = arith.constant 64 : i32
    %249 = vector.broadcast %c64_i32_97 : i32 to vector<1x128xi32>
    %250 = arith.cmpi slt, %239, %249 : vector<1x128xi32>
    %251 = arith.andi %248, %250 : vector<1x128xi1>
    %252 = arith.extui %251 : vector<1x128xi1> to vector<1x128xi32>
    %253 = arith.sitofp %252 : vector<1x128xi32> to vector<1x128xf32>
    %c64_i32_98 = arith.constant 64 : i32
    %254 = vector.broadcast %c64_i32_98 : i32 to vector<1x128xi32>
    %255 = arith.cmpi sge, %239, %254 : vector<1x128xi32>
    %c96_i32_99 = arith.constant 96 : i32
    %256 = vector.broadcast %c96_i32_99 : i32 to vector<1x128xi32>
    %257 = arith.cmpi slt, %239, %256 : vector<1x128xi32>
    %258 = arith.andi %255, %257 : vector<1x128xi1>
    %259 = arith.extui %258 : vector<1x128xi1> to vector<1x128xi32>
    %260 = arith.sitofp %259 : vector<1x128xi32> to vector<1x128xf32>
    %c96_i32_100 = arith.constant 96 : i32
    %261 = vector.broadcast %c96_i32_100 : i32 to vector<1x128xi32>
    %262 = arith.cmpi sge, %239, %261 : vector<1x128xi32>
    %c128_i32_101 = arith.constant 128 : i32
    %263 = vector.broadcast %c128_i32_101 : i32 to vector<1x128xi32>
    %264 = arith.cmpi slt, %239, %263 : vector<1x128xi32>
    %265 = arith.andi %262, %264 : vector<1x128xi1>
    %266 = arith.extui %265 : vector<1x128xi1> to vector<1x128xi32>
    %267 = arith.sitofp %266 : vector<1x128xi32> to vector<1x128xf32>
    %cst_102 = arith.constant 0.000000e+00 : f32
    %268 = vector.broadcast %cst_102 : f32 to vector<4x128xf32>
    %269 = vector.extract_strided_slice %236 {offsets = [0, 0], sizes = [4, 32], strides = [1, 1]} : vector<4x128xf32> to vector<4x32xf32>
    %cst_103 = arith.constant dense<0.000000e+00> : vector<4xf32>
    %270 = vector.multi_reduction <add>, %269, %cst_103 [1] : vector<4x32xf32> to vector<4xf32>
    %271 = vector.shape_cast %270 : vector<4xf32> to vector<4x1xf32>
    %cst_104 = arith.constant 3.200000e+01 : f32
    %272 = vector.broadcast %cst_104 : f32 to vector<4x1xf32>
    %273 = arith.divf %271, %272 : vector<4x1xf32>
    %274 = vector.broadcast %273 : vector<4x1xf32> to vector<4x128xf32>
    %275 = vector.broadcast %246 : vector<1x128xf32> to vector<4x128xf32>
    %276 = arith.mulf %274, %275 : vector<4x128xf32>
    %277 = arith.addf %268, %276 : vector<4x128xf32>
    %278 = vector.extract_strided_slice %236 {offsets = [0, 32], sizes = [4, 32], strides = [1, 1]} : vector<4x128xf32> to vector<4x32xf32>
    %cst_105 = arith.constant dense<0.000000e+00> : vector<4xf32>
    %279 = vector.multi_reduction <add>, %278, %cst_105 [1] : vector<4x32xf32> to vector<4xf32>
    %280 = vector.shape_cast %279 : vector<4xf32> to vector<4x1xf32>
    %cst_106 = arith.constant 3.200000e+01 : f32
    %281 = vector.broadcast %cst_106 : f32 to vector<4x1xf32>
    %282 = arith.divf %280, %281 : vector<4x1xf32>
    %283 = vector.broadcast %282 : vector<4x1xf32> to vector<4x128xf32>
    %284 = vector.broadcast %253 : vector<1x128xf32> to vector<4x128xf32>
    %285 = arith.mulf %283, %284 : vector<4x128xf32>
    %286 = arith.addf %277, %285 : vector<4x128xf32>
    %287 = vector.extract_strided_slice %236 {offsets = [0, 64], sizes = [4, 32], strides = [1, 1]} : vector<4x128xf32> to vector<4x32xf32>
    %cst_107 = arith.constant dense<0.000000e+00> : vector<4xf32>
    %288 = vector.multi_reduction <add>, %287, %cst_107 [1] : vector<4x32xf32> to vector<4xf32>
    %289 = vector.shape_cast %288 : vector<4xf32> to vector<4x1xf32>
    %cst_108 = arith.constant 3.200000e+01 : f32
    %290 = vector.broadcast %cst_108 : f32 to vector<4x1xf32>
    %291 = arith.divf %289, %290 : vector<4x1xf32>
    %292 = vector.broadcast %291 : vector<4x1xf32> to vector<4x128xf32>
    %293 = vector.broadcast %260 : vector<1x128xf32> to vector<4x128xf32>
    %294 = arith.mulf %292, %293 : vector<4x128xf32>
    %295 = arith.addf %286, %294 : vector<4x128xf32>
    %296 = vector.extract_strided_slice %236 {offsets = [0, 96], sizes = [4, 32], strides = [1, 1]} : vector<4x128xf32> to vector<4x32xf32>
    %cst_109 = arith.constant dense<0.000000e+00> : vector<4xf32>
    %297 = vector.multi_reduction <add>, %296, %cst_109 [1] : vector<4x32xf32> to vector<4xf32>
    %298 = vector.shape_cast %297 : vector<4xf32> to vector<4x1xf32>
    %cst_110 = arith.constant 3.200000e+01 : f32
    %299 = vector.broadcast %cst_110 : f32 to vector<4x1xf32>
    %300 = arith.divf %298, %299 : vector<4x1xf32>
    %301 = vector.broadcast %300 : vector<4x1xf32> to vector<4x128xf32>
    %302 = vector.broadcast %267 : vector<1x128xf32> to vector<4x128xf32>
    %303 = arith.mulf %301, %302 : vector<4x128xf32>
    %304 = arith.addf %295, %303 : vector<4x128xf32>
    %305 = arith.subf %236, %304 : vector<4x128xf32>
    %cst_111 = arith.constant 0.000000e+00 : f32
    %306 = vector.broadcast %cst_111 : f32 to vector<4x128xf32>
    %307 = vector.extract_strided_slice %305 {offsets = [0, 0], sizes = [4, 32], strides = [1, 1]} : vector<4x128xf32> to vector<4x32xf32>
    %308 = arith.mulf %307, %307 : vector<4x32xf32>
    %cst_112 = arith.constant dense<0.000000e+00> : vector<4xf32>
    %309 = vector.multi_reduction <add>, %308, %cst_112 [1] : vector<4x32xf32> to vector<4xf32>
    %310 = vector.shape_cast %309 : vector<4xf32> to vector<4x1xf32>
    %cst_113 = arith.constant 3.200000e+01 : f32
    %311 = vector.broadcast %cst_113 : f32 to vector<4x1xf32>
    %312 = arith.divf %310, %311 : vector<4x1xf32>
    %313 = vector.broadcast %312 : vector<4x1xf32> to vector<4x128xf32>
    %314 = vector.broadcast %246 : vector<1x128xf32> to vector<4x128xf32>
    %315 = arith.mulf %313, %314 : vector<4x128xf32>
    %316 = arith.addf %306, %315 : vector<4x128xf32>
    %317 = vector.extract_strided_slice %305 {offsets = [0, 32], sizes = [4, 32], strides = [1, 1]} : vector<4x128xf32> to vector<4x32xf32>
    %318 = arith.mulf %317, %317 : vector<4x32xf32>
    %cst_114 = arith.constant dense<0.000000e+00> : vector<4xf32>
    %319 = vector.multi_reduction <add>, %318, %cst_114 [1] : vector<4x32xf32> to vector<4xf32>
    %320 = vector.shape_cast %319 : vector<4xf32> to vector<4x1xf32>
    %cst_115 = arith.constant 3.200000e+01 : f32
    %321 = vector.broadcast %cst_115 : f32 to vector<4x1xf32>
    %322 = arith.divf %320, %321 : vector<4x1xf32>
    %323 = vector.broadcast %322 : vector<4x1xf32> to vector<4x128xf32>
    %324 = vector.broadcast %253 : vector<1x128xf32> to vector<4x128xf32>
    %325 = arith.mulf %323, %324 : vector<4x128xf32>
    %326 = arith.addf %316, %325 : vector<4x128xf32>
    %327 = vector.extract_strided_slice %305 {offsets = [0, 64], sizes = [4, 32], strides = [1, 1]} : vector<4x128xf32> to vector<4x32xf32>
    %328 = arith.mulf %327, %327 : vector<4x32xf32>
    %cst_116 = arith.constant dense<0.000000e+00> : vector<4xf32>
    %329 = vector.multi_reduction <add>, %328, %cst_116 [1] : vector<4x32xf32> to vector<4xf32>
    %330 = vector.shape_cast %329 : vector<4xf32> to vector<4x1xf32>
    %cst_117 = arith.constant 3.200000e+01 : f32
    %331 = vector.broadcast %cst_117 : f32 to vector<4x1xf32>
    %332 = arith.divf %330, %331 : vector<4x1xf32>
    %333 = vector.broadcast %332 : vector<4x1xf32> to vector<4x128xf32>
    %334 = vector.broadcast %260 : vector<1x128xf32> to vector<4x128xf32>
    %335 = arith.mulf %333, %334 : vector<4x128xf32>
    %336 = arith.addf %326, %335 : vector<4x128xf32>
    %337 = vector.extract_strided_slice %305 {offsets = [0, 96], sizes = [4, 32], strides = [1, 1]} : vector<4x128xf32> to vector<4x32xf32>
    %338 = arith.mulf %337, %337 : vector<4x32xf32>
    %cst_118 = arith.constant dense<0.000000e+00> : vector<4xf32>
    %339 = vector.multi_reduction <add>, %338, %cst_118 [1] : vector<4x32xf32> to vector<4xf32>
    %340 = vector.shape_cast %339 : vector<4xf32> to vector<4x1xf32>
    %cst_119 = arith.constant 3.200000e+01 : f32
    %341 = vector.broadcast %cst_119 : f32 to vector<4x1xf32>
    %342 = arith.divf %340, %341 : vector<4x1xf32>
    %343 = vector.broadcast %342 : vector<4x1xf32> to vector<4x128xf32>
    %344 = vector.broadcast %267 : vector<1x128xf32> to vector<4x128xf32>
    %345 = arith.mulf %343, %344 : vector<4x128xf32>
    %346 = arith.addf %336, %345 : vector<4x128xf32>
    %cst_120 = arith.constant 9.99999974E-6 : f32
    %347 = vector.broadcast %cst_120 : f32 to vector<4x128xf32>
    %348 = arith.addf %346, %347 : vector<4x128xf32>
    %349 = math.rsqrt %348 : vector<4x128xf32>
    %350 = arith.mulf %305, %349 : vector<4x128xf32>
    %351 = vector.broadcast %237 : vector<1x128xf32> to vector<4x128xf32>
    %352 = arith.mulf %350, %351 : vector<4x128xf32>
    %353 = vector.broadcast %238 : vector<1x128xf32> to vector<4x128xf32>
    %354 = arith.addf %352, %353 : vector<4x128xf32>
    %c0_121 = arith.constant 0 : index
    %c0_122 = arith.constant 0 : index
    %355 = vector.load %arg25[%c0_121, %c0_122] : memref<4x128xf32, #tpu.memory_space<vmem>>, vector<4x128xf32>
    tpu.vector_store %arg25[%c0_121, %c0_122], %354 {strides = array<i32>} : memref<4x128xf32, #tpu.memory_space<vmem>>, vector<4x128xf32>,
    return
  }
  func.func @transform_0(%arg0: i32) -> (i32, i32) {
    %c0_i32 = arith.constant 0 : i32
    %c0_i32_0 = arith.constant 0 : i32
    return %arg0, %c0_i32 : i32, i32
  }
  func.func @transform_1(%arg0: i32) -> (i32, i32) {
    %c0_i32 = arith.constant 0 : i32
    %c0_i32_0 = arith.constant 0 : i32
    return %arg0, %c0_i32 : i32, i32
  }
  func.func @transform_2(%arg0: i32) -> (i32, i32) {
    %c0_i32 = arith.constant 0 : i32
    %c0_i32_0 = arith.constant 0 : i32
    %c0_i32_1 = arith.constant 0 : i32
    return %c0_i32, %c0_i32_0 : i32, i32
  }
  func.func @transform_3(%arg0: i32) -> (i32, i32) {
    %c0_i32 = arith.constant 0 : i32
    %c0_i32_0 = arith.constant 0 : i32
    %c0_i32_1 = arith.constant 0 : i32
    return %c0_i32, %c0_i32_0 : i32, i32
  }
  func.func @transform_4(%arg0: i32) -> (i32, i32) {
    %c0_i32 = arith.constant 0 : i32
    %c0_i32_0 = arith.constant 0 : i32
    %c0_i32_1 = arith.constant 0 : i32
    return %c0_i32, %c0_i32_0 : i32, i32
  }
  func.func @transform_5(%arg0: i32) -> (i32, i32) {
    %c0_i32 = arith.constant 0 : i32
    %c0_i32_0 = arith.constant 0 : i32
    %c0_i32_1 = arith.constant 0 : i32
    return %c0_i32, %c0_i32_0 : i32, i32
  }
  func.func @transform_6(%arg0: i32) -> (i32, i32) {
    %c0_i32 = arith.constant 0 : i32
    %c0_i32_0 = arith.constant 0 : i32
    %c0_i32_1 = arith.constant 0 : i32
    return %c0_i32, %c0_i32_0 : i32, i32
  }
  func.func @transform_7(%arg0: i32) -> (i32, i32) {
    %c0_i32 = arith.constant 0 : i32
    %c0_i32_0 = arith.constant 0 : i32
    %c0_i32_1 = arith.constant 0 : i32
    return %c0_i32, %c0_i32_0 : i32, i32
  }
  func.func @transform_8(%arg0: i32) -> (i32, i32) {
    %c0_i32 = arith.constant 0 : i32
    %c0_i32_0 = arith.constant 0 : i32
    %c0_i32_1 = arith.constant 0 : i32
    return %c0_i32, %c0_i32_0 : i32, i32
  }
  func.func @transform_9(%arg0: i32) -> (i32, i32) {
    %c0_i32 = arith.constant 0 : i32
    %c0_i32_0 = arith.constant 0 : i32
    %c0_i32_1 = arith.constant 0 : i32
    return %c0_i32, %c0_i32_0 : i32, i32
  }
  func.func @transform_10(%arg0: i32) -> (i32, i32) {
    %c0_i32 = arith.constant 0 : i32
    %c0_i32_0 = arith.constant 0 : i32
    %c0_i32_1 = arith.constant 0 : i32
    return %c0_i32, %c0_i32_0 : i32, i32
  }
  func.func @transform_11(%arg0: i32) -> (i32, i32) {
    %c0_i32 = arith.constant 0 : i32
    %c0_i32_0 = arith.constant 0 : i32
    %c0_i32_1 = arith.constant 0 : i32
    return %c0_i32, %c0_i32_0 : i32, i32
  }
  func.func @transform_12(%arg0: i32) -> (i32, i32) {
    %c0_i32 = arith.constant 0 : i32
    %c0_i32_0 = arith.constant 0 : i32
    %c0_i32_1 = arith.constant 0 : i32
    return %c0_i32, %c0_i32_0 : i32, i32
  }
  func.func @transform_13(%arg0: i32) -> (i32, i32) {
    %c0_i32 = arith.constant 0 : i32
    %c0_i32_0 = arith.constant 0 : i32
    %c0_i32_1 = arith.constant 0 : i32
    return %c0_i32, %c0_i32_0 : i32, i32
  }
  func.func @transform_14(%arg0: i32) -> (i32, i32) {
    %c0_i32 = arith.constant 0 : i32
    %c0_i32_0 = arith.constant 0 : i32
    %c0_i32_1 = arith.constant 0 : i32
    return %c0_i32, %c0_i32_0 : i32, i32
  }
  func.func @transform_15(%arg0: i32) -> (i32, i32) {
    %c0_i32 = arith.constant 0 : i32
    %c0_i32_0 = arith.constant 0 : i32
    %c0_i32_1 = arith.constant 0 : i32
    return %c0_i32, %c0_i32_0 : i32, i32
  }
  func.func @transform_16(%arg0: i32) -> (i32, i32) {
    %c0_i32 = arith.constant 0 : i32
    %c0_i32_0 = arith.constant 0 : i32
    %c0_i32_1 = arith.constant 0 : i32
    return %c0_i32, %c0_i32_0 : i32, i32
  }
  func.func @transform_17(%arg0: i32) -> (i32, i32) {
    %c0_i32 = arith.constant 0 : i32
    %c0_i32_0 = arith.constant 0 : i32
    %c0_i32_1 = arith.constant 0 : i32
    return %c0_i32, %c0_i32_0 : i32, i32
  }
  func.func @transform_18(%arg0: i32) -> (i32, i32) {
    %c0_i32 = arith.constant 0 : i32
    %c0_i32_0 = arith.constant 0 : i32
    %c0_i32_1 = arith.constant 0 : i32
    return %c0_i32, %c0_i32_0 : i32, i32
  }
  func.func @transform_19(%arg0: i32) -> (i32, i32) {
    %c0_i32 = arith.constant 0 : i32
    %c0_i32_0 = arith.constant 0 : i32
    %c0_i32_1 = arith.constant 0 : i32
    return %c0_i32, %c0_i32_0 : i32, i32
  }
  func.func @transform_20(%arg0: i32) -> (i32, i32) {
    %c0_i32 = arith.constant 0 : i32
    %c0_i32_0 = arith.constant 0 : i32
    %c0_i32_1 = arith.constant 0 : i32
    return %c0_i32, %c0_i32_0 : i32, i32
  }
  func.func @transform_21(%arg0: i32) -> (i32, i32) {
    %c0_i32 = arith.constant 0 : i32
    %c0_i32_0 = arith.constant 0 : i32
    %c0_i32_1 = arith.constant 0 : i32
    return %c0_i32, %c0_i32_0 : i32, i32
  }
  func.func @transform_22(%arg0: i32) -> (i32, i32) {
    %c0_i32 = arith.constant 0 : i32
    %c0_i32_0 = arith.constant 0 : i32
    %c0_i32_1 = arith.constant 0 : i32
    return %c0_i32, %c0_i32_0 : i32, i32
  }
  func.func @transform_23(%arg0: i32) -> (i32, i32) {
    %c0_i32 = arith.constant 0 : i32
    %c0_i32_0 = arith.constant 0 : i32
    %c0_i32_1 = arith.constant 0 : i32
    return %c0_i32, %c0_i32_0 : i32, i32
  }
  func.func @transform_24(%arg0: i32) -> (i32, i32) {
    %c0_i32 = arith.constant 0 : i32
    %c0_i32_0 = arith.constant 0 : i32
    return %arg0, %c0_i32 : i32, i32
  }
}

</mosaic_0001>

<bundles_post_ra>
// kernel: tpu_custom_call.1
= control target key start
LH: loop header
LB: loop body
LE: loop exit
PB: predicated region body
PF: predicated region fallthrough
CT: control target
= control target key end

     0   :  { %s6226_s0 = inlined_call_operand.hbm [shape: f32[4,128], index: 0, kind: input, shape index: {}]   ;;  %s6227_s1 = inlined_call_operand.hbm [shape: f32[4,32], index: 1, kind: input, shape index: {}]   ;;  %s6228_s2 = inlined_call_operand.hbm [shape: f32[2,32], index: 2, kind: input, shape index: {}]   ;;  %s6229_s3 = inlined_call_operand.hbm [shape: f32[128,1024], index: 3, kind: input, shape index: {}]   ;;  %s6230_s4 = inlined_call_operand.vmem [shape: f32[1,1024], index: 4, kind: input, shape index: {}]   ;;  %s6231_s5 = inlined_call_operand.hbm [shape: f32[128,1024], index: 5, kind: input, shape index: {}]   ;;  %s6232_s6 = inlined_call_operand.vmem [shape: f32[1,1024], index: 6, kind: input, shape index: {}]   ;;  %s6233_s7 = inlined_call_operand.hbm [shape: f32[32,1024], index: 7, kind: input, shape index: {}]   ;;  %s6234_s8 = inlined_call_operand.vmem [shape: f32[1,1024], index: 8, kind: input, shape index: {}]   ;;  %s6235_s9 = inlined_call_operand.hbm [shape: f32[32,256], index: 9, kind: input, shape index: {}]   ;;  %s6236_s10 = inlined_call_operand.hbm [shape: f32[1024,256], index: 10, kind: input, shape index: {}]   ;;  %s6237_s11 = inlined_call_operand.hbm [shape: f32[256,256], index: 11, kind: input, shape index: {}]   ;;  %s6238_s12 = inlined_call_operand.hbm [shape: f32[256,1024], index: 12, kind: input, shape index: {}]   ;;  %s6239_s13 = inlined_call_operand.hbm [shape: f32[1024,128], index: 13, kind: input, shape index: {}]   ;;  %s6240_s14 = inlined_call_operand.vmem [shape: f32[1,128], index: 14, kind: input, shape index: {}]   ;;  %s6241_s15 = inlined_call_operand.vmem [shape: f32[4,2], index: 15, kind: input, shape index: {}]   ;;  %s6242_s16 = inlined_call_operand.vmem [shape: f32[1,128], index: 16, kind: input, shape index: {}]   ;;  %s6243_s17 = inlined_call_operand.vmem [shape: f32[1,128], index: 17, kind: input, shape index: {}]   ;;  %s6244_s18 = inlined_call_operand.hbm [shape: f32[128,128], index: 18, kind: input, shape index: {}]   ;;  %s6245_s19 = inlined_call_operand.vmem [shape: f32[1,128], index: 19, kind: input, shape index: {}]   ;;  %s6246_s20 = inlined_call_operand.hbm [shape: f32[128,128], index: 20, kind: input, shape index: {}]   ;;  %s6247_s21 = inlined_call_operand.vmem [shape: f32[1,128], index: 21, kind: input, shape index: {}]   ;;  %s6248_s22 = inlined_call_operand.vmem [shape: f32[1,128], index: 22, kind: input, shape index: {}]   ;;  %s6249_s23 = inlined_call_operand.vmem [shape: f32[1,128], index: 23, kind: input, shape index: {}]   ;;  %s6250_s24 = inlined_call_operand.hbm [shape: f32[4,128], index: 24, kind: output, shape index: {}]  }
   0x1   :  { %6263 = sst [smem:[#allocation32_spill]] %s6226_s0 }
   0x2   :  { %6264 = sst [smem:[#allocation33_spill]] %s6227_s1 }
   0x3   :  { %6265 = sst [smem:[#allocation34_spill]] %s6228_s2 }
   0x4   :  { %6266 = sst [smem:[#allocation35_spill]] %s6229_s3 }
   0x5   :  { %6267 = sst [smem:[#allocation36_spill]] %s6230_s4 }
   0x6   :  { %6268 = sst [smem:[#allocation37_spill]] %s6231_s5 }
   0x7   :  { %6269 = sst [smem:[#allocation38_spill]] %s6232_s6 }
   0x8   :  { %6270 = sst [smem:[#allocation39_spill]] %s6233_s7 }
   0x9   :  { %6271 = sst [smem:[#allocation40_spill]] %s6234_s8 }
   0xa   :  { %6272 = sst [smem:[#allocation41_spill]] %s6249_s23 }
   0xb   :  { %6273 = sst [smem:[#allocation42_spill]] %s6250_s24 }
   0xc   :  { %29 = vsyncpa [#allocation3], 0 }
   0xd   :  { %30 = vsyncpa [#allocation6], 0 }
   0xe   :  { %31 = vsyncpa [#allocation9], 0 }
   0xf   :  { %32 = vsyncpa [#allocation12], 0 }
  0x10   :  { %33 = vsyncpa [#allocation15], 0 }
  0x11   :  { %34 = vsyncpa [#allocation18], 0 }
  0x12   :  { %35 = vsyncpa [#allocation21], 0 }
  0x13   :  { %36 = vsyncpa [#allocation4], 0  ;;  %s5516_s5 = smov [#allocation5]   ;;  %s5517_s27 = smov [#allocation8]  }
  0x14   :  { %s53_s26 = sshll.u32 %s5516_s5, 4  ;;  %s72_s28 = sshll.u32 %s5517_s27, 4  ;;  %s54_s26 = int_to_ptr.vmem [resolvable:$true] %s53_s26  ;;  %s5666_s28 = int_to_ptr.vmem [resolvable:$true] %s72_s28 }
  0x15   :  { %s6274_s29 = sld [smem:[#allocation33_spill]] }
  0x1b   :  { %s5192_s0 = scalar_lea.hbm %s6274_s29, 64 }
  0x1c   :  { %p5193_p0 = scmp.ne.s32.totalorder %s6274_s29, %s5192_s0  ;;  %p5196_p1 = scmp.lt.u32.totalorder %s5192_s0, %s6274_s29 }
  0x1e   :  { %p5198_p2 = pnand %p5196_p1, %p5193_p0 }
  0x20   :  { %5201 = shalt.err (!%p5198_p2)
}
  0x21   :  { %s5202_s8 = scalar_lea.vmem %s54_s26, 64  ;;  %p5207_p4 = scmp.lt.s32.totalorder %s54_s26, %s54_s26 }
  0x22   :  { %p5203_p3 = scmp.ne.s32.totalorder %s54_s26, %s5202_s8  ;;  %p5208_p5 = scmp.lt.s32.totalorder %s5202_s8, %s5202_s8 }
  0x24   :  { %p5209_p6 = por %p5208_p5, %p5207_p4 }
  0x26   :  { %p5210_p7 = pnand %p5209_p6, %p5203_p3 }
  0x28   :  { %5213 = shalt.err (!%p5210_p7)
}
  0x29   :  { %56 = dma.hbm_to_vmem [thread:$0]  %s6274_s29, 64, %s54_s26, [#allocation6]  }
  0x2a   :  { %s6275_s6 = sld [smem:[#allocation35_spill]] }
  0x30   :  { %s5214_s2 = scalar_lea.hbm %s6275_s6, 16384 }
  0x31   :  { %p5215_p8 = scmp.ne.s32.totalorder %s6275_s6, %s5214_s2  ;;  %p5218_p9 = scmp.lt.u32.totalorder %s5214_s2, %s6275_s6 }
  0x33   :  { %p5220_p10 = pnand %p5218_p9, %p5215_p8 }
  0x35   :  { %5223 = shalt.err (!%p5220_p10)
}
  0x36   :  { %s5224_s25 = scalar_lea.vmem %s5666_s28, 16384  ;;  %p5229_p12 = scmp.lt.s32.totalorder %s5666_s28, %s5666_s28 }
  0x37   :  { %p5225_p11 = scmp.ne.s32.totalorder %s5666_s28, %s5224_s25  ;;  %p5230_p13 = scmp.lt.s32.totalorder %s5224_s25, %s5224_s25 }
  0x39   :  { %p5231_p0 = por %p5230_p13, %p5229_p12 }
  0x3b   :  { %p5232_p1 = pnand %p5231_p0, %p5225_p11 }
  0x3d   :  { %5235 = shalt.err (!%p5232_p1)
}
  0x3e   :  { %s5518_s26 = smov 1024   ;;  %s5519_s29 = smov 64  }
  0x3f   :  { %78 = dma.hbm_to_vmem [thread:$0]  %s6275_s6, 16384, %s5666_s28, [#allocation9], %s5518_s26, %s5518_s26, %s5519_s29  }
  0x40   :  { %s5520_s1 = smov [#allocation11]   ;;  %s6276_s7 = sld [smem:[#allocation39_spill]] }
  0x41   :  { %s100_s5 = sshll.u32 %s5520_s1, 4  ;;  %s101_s5 = int_to_ptr.vmem [resolvable:$true] %s100_s5 }
  0x46   :  { %s5236_s30 = scalar_lea.hbm %s6276_s7, 4096 }
  0x47   :  { %p5237_p2 = scmp.ne.s32.totalorder %s6276_s7, %s5236_s30  ;;  %p5240_p3 = scmp.lt.u32.totalorder %s5236_s30, %s6276_s7 }
  0x49   :  { %p5242_p4 = pnand %p5240_p3, %p5237_p2 }
  0x4b   :  { %5245 = shalt.err (!%p5242_p4)
}
  0x4c   :  { %s5246_s23 = scalar_lea.vmem %s101_s5, 4096  ;;  %p5251_p6 = scmp.lt.s32.totalorder %s101_s5, %s101_s5 }
  0x4d   :  { %p5247_p5 = scmp.ne.s32.totalorder %s101_s5, %s5246_s23  ;;  %p5252_p7 = scmp.lt.s32.totalorder %s5246_s23, %s5246_s23 }
  0x4f   :  { %p5253_p8 = por %p5252_p7, %p5251_p6 }
  0x51   :  { %p5254_p9 = pnand %p5253_p8, %p5247_p5 }
  0x53   :  { %5257 = shalt.err (!%p5254_p9)
}
  0x54   :  { %106 = dma.hbm_to_vmem [thread:$0]  %s6276_s7, 4096, %s101_s5, [#allocation12], %s5518_s26, %s5518_s26, %s5519_s29  }
  0x55   :  { %s5521_s8 = smov [#allocation14]   ;;  %s5522_s24 = smov [#allocation17]  }
  0x56   :  { %s126_s4 = sshll.u32 %s5521_s8, 4  ;;  %s150_s1 = sshll.u32 %s5522_s24, 4  ;;  %s127_s4 = int_to_ptr.vmem [resolvable:$true] %s126_s4  ;;  %s151_s1 = int_to_ptr.vmem [resolvable:$true] %s150_s1 }
  0x57   :  { %s5258_s30 = scalar_lea.hbm %s6236_s10, 32768 }
  0x58   :  { %p5259_p10 = scmp.ne.s32.totalorder %s6236_s10, %s5258_s30  ;;  %p5262_p11 = scmp.lt.u32.totalorder %s5258_s30, %s6236_s10 }
  0x5a   :  { %p5264_p12 = pnand %p5262_p11, %p5259_p10 }
  0x5c   :  { %5267 = shalt.err (!%p5264_p12)
}
  0x5d   :  { %s5268_s5 = scalar_lea.vmem %s127_s4, 32768  ;;  %p5273_p0 = scmp.lt.s32.totalorder %s127_s4, %s127_s4 }
  0x5e   :  { %p5269_p13 = scmp.ne.s32.totalorder %s127_s4, %s5268_s5  ;;  %p5274_p1 = scmp.lt.s32.totalorder %s5268_s5, %s5268_s5 }
  0x60   :  { %p5275_p2 = por %p5274_p1, %p5273_p0 }
  0x62   :  { %p5276_p3 = pnand %p5275_p2, %p5269_p13 }
  0x64   :  { %5279 = shalt.err (!%p5276_p3)
}
  0x65   :  { %s5523_s7 = smov 256   ;;  %s5524_s28 = smov 16  }
  0x66   :  { %132 = dma.hbm_to_vmem [thread:$0]  %s6236_s10, 32768, %s127_s4, [#allocation15], %s5523_s7, %s5523_s7, %s5524_s28  }
  0x67   :  { %s5280_s2 = scalar_lea.hbm %s6238_s12, 32768 }
  0x68   :  { %p5281_p4 = scmp.ne.s32.totalorder %s6238_s12, %s5280_s2  ;;  %p5284_p5 = scmp.lt.u32.totalorder %s5280_s2, %s6238_s12 }
  0x6a   :  { %p5286_p6 = pnand %p5284_p5, %p5281_p4 }
  0x6c   :  { %5289 = shalt.err (!%p5286_p6)
}
  0x6d   :  { %s5290_s25 = scalar_lea.vmem %s151_s1, 32768  ;;  %p5295_p8 = scmp.lt.s32.totalorder %s151_s1, %s151_s1 }
  0x6e   :  { %p5291_p7 = scmp.ne.s32.totalorder %s151_s1, %s5290_s25  ;;  %p5296_p9 = scmp.lt.s32.totalorder %s5290_s25, %s5290_s25 }
  0x70   :  { %p5297_p10 = por %p5296_p9, %p5295_p8 }
  0x72   :  { %p5298_p11 = pnand %p5297_p10, %p5291_p7 }
  0x74   :  { %5301 = shalt.err (!%p5298_p11)
}
  0x75   :  { %156 = dma.hbm_to_vmem [thread:$0]  %s6238_s12, 32768, %s151_s1, [#allocation18], %s5518_s26, %s5518_s26, %s5519_s29  }
  0x76   :  { %s5525_s5 = smov [#allocation20]   ;;  %s5526_s8 = smov [#allocation2]  }
  0x77   :  { %s182_s6 = sshll.u32 %s5525_s5, 4  ;;  %s43_s24 = sshll.u32 %s5526_s8, 4  ;;  %s183_s6 = int_to_ptr.vmem [resolvable:$true] %s182_s6  ;;  %s44_s24 = int_to_ptr.vmem [resolvable:$true] %s43_s24 }
  0x78   :  { %s5302_s30 = scalar_lea.hbm %s6244_s18, 2048 }
  0x79   :  { %p5303_p12 = scmp.ne.s32.totalorder %s6244_s18, %s5302_s30  ;;  %p5306_p13 = scmp.lt.u32.totalorder %s5302_s30, %s6244_s18 }
  0x7b   :  { %p5308_p0 = pnand %p5306_p13, %p5303_p12 }
  0x7d   :  { %5311 = shalt.err (!%p5308_p0)
}
  0x7e   :  { %s5312_s12 = scalar_lea.vmem %s183_s6, 2048  ;;  %p5317_p2 = scmp.lt.s32.totalorder %s183_s6, %s183_s6 }
  0x7f   :  { %p5313_p1 = scmp.ne.s32.totalorder %s183_s6, %s5312_s12  ;;  %p5318_p3 = scmp.lt.s32.totalorder %s5312_s12, %s5312_s12 }
  0x81   :  { %p5319_p4 = por %p5318_p3, %p5317_p2 }
  0x83   :  { %p5320_p5 = pnand %p5319_p4, %p5313_p1 }
  0x85   :  { %5323 = shalt.err (!%p5320_p5)
}
  0x86   :  { %s6259_s1 = smov 128   ;;  %s6261_s10 = smov 8  }
  0x87   :  { %188 = dma.hbm_to_vmem [thread:$0]  %s6244_s18, 2048, %s183_s6, [#allocation21], %s6259_s1, %s6259_s1, %s6261_s10  }
  0x88   :  { %s6277_s2 = sld [smem:[#allocation32_spill]] }
  0x8e   :  { %s5324_s30 = scalar_lea.hbm %s6277_s2, 64 }
  0x8f   :  { %p5325_p6 = scmp.ne.s32.totalorder %s6277_s2, %s5324_s30  ;;  %p5328_p7 = scmp.lt.u32.totalorder %s5324_s30, %s6277_s2 }
  0x91   :  { %p5330_p8 = pnand %p5328_p7, %p5325_p6 }
  0x93   :  { %5333 = shalt.err (!%p5330_p8)
}
  0x94   :  { %s5334_s12 = scalar_lea.vmem %s44_s24, 64  ;;  %p5339_p10 = scmp.lt.s32.totalorder %s44_s24, %s44_s24 }
  0x95   :  { %p5335_p9 = scmp.ne.s32.totalorder %s44_s24, %s5334_s12  ;;  %p5340_p11 = scmp.lt.s32.totalorder %s5334_s12, %s5334_s12 }
  0x97   :  { %p5341_p12 = por %p5340_p11, %p5339_p10 }
  0x99   :  { %p5342_p13 = pnand %p5341_p12, %p5335_p9 }
  0x9b   :  { %5345 = shalt.err (!%p5342_p13)
}
  0x9c   :  { %46 = dma.hbm_to_vmem [thread:$0]  %s6277_s2, 64, %s44_s24, [#allocation3]  }
  0x9d   :  { %s5529_s4 = smov [#allocation7]   ;;  %s5530_s8 = smov [#allocation10]  }
  0x9e   :  { %s63_s5 = sshll.u32 %s5529_s4, 4  ;;  %s86_s27 = sshll.u32 %s5530_s8, 4  ;;  %s64_s5 = int_to_ptr.vmem [resolvable:$true] %s63_s5  ;;  %s87_s27 = int_to_ptr.vmem [resolvable:$true] %s86_s27 }
  0x9f   :  { %s6278_s0 = sld [smem:[#allocation34_spill]] }
  0xa5   :  { %s5346_s3 = scalar_lea.hbm %s6278_s0, 32 }
  0xa6   :  { %p5347_p0 = scmp.ne.s32.totalorder %s6278_s0, %s5346_s3  ;;  %p5350_p1 = scmp.lt.u32.totalorder %s5346_s3, %s6278_s0 }
  0xa8   :  { %p5352_p2 = pnand %p5350_p1, %p5347_p0 }
  0xaa   :  { %5355 = shalt.err (!%p5352_p2)
}
  0xab   :  { %s5356_s24 = scalar_lea.vmem %s64_s5, 32  ;;  %p5361_p4 = scmp.lt.s32.totalorder %s64_s5, %s64_s5 }
  0xac   :  { %p5357_p3 = scmp.ne.s32.totalorder %s64_s5, %s5356_s24  ;;  %p5362_p5 = scmp.lt.s32.totalorder %s5356_s24, %s5356_s24 }
  0xae   :  { %p5363_p6 = por %p5362_p5, %p5361_p4 }
  0xb0   :  { %p5364_p7 = pnand %p5363_p6, %p5357_p3 }
  0xb2   :  { %5367 = shalt.err (!%p5364_p7)
}
  0xb3   :  { %66 = dma.hbm_to_vmem [thread:$0]  %s6278_s0, 32, %s64_s5, [#allocation6]  }
  0xb4   :  { %s6279_s4 = sld [smem:[#allocation37_spill]] }
  0xba   :  { %s5368_s8 = scalar_lea.hbm %s6279_s4, 16384 }
  0xbb   :  { %p5369_p8 = scmp.ne.s32.totalorder %s6279_s4, %s5368_s8  ;;  %p5372_p9 = scmp.lt.u32.totalorder %s5368_s8, %s6279_s4 }
  0xbd   :  { %p5374_p10 = pnand %p5372_p9, %p5369_p8 }
  0xbf   :  { %5377 = shalt.err (!%p5374_p10)
}
  0xc0   :  { %s5378_s25 = scalar_lea.vmem %s87_s27, 16384  ;;  %p5383_p12 = scmp.lt.s32.totalorder %s87_s27, %s87_s27 }
  0xc1   :  { %p5379_p11 = scmp.ne.s32.totalorder %s87_s27, %s5378_s25  ;;  %p5384_p13 = scmp.lt.s32.totalorder %s5378_s25, %s5378_s25 }
  0xc3   :  { %p5385_p0 = por %p5384_p13, %p5383_p12 }
  0xc5   :  { %p5386_p1 = pnand %p5385_p0, %p5379_p11 }
  0xc7   :  { %5389 = shalt.err (!%p5386_p1)
}
  0xc8   :  { %92 = dma.hbm_to_vmem [thread:$0]  %s6279_s4, 16384, %s87_s27, [#allocation9], %s5518_s26, %s5518_s26, %s5519_s29  }
  0xc9   :  { %s5531_s12 = smov [#allocation13]   ;;  %s5532_s2 = smov [#allocation16]  }
  0xca   :  { %s114_s24 = sshll.u32 %s5531_s12, 4  ;;  %s138_s18 = sshll.u32 %s5532_s2, 4  ;;  %s115_s24 = int_to_ptr.vmem [resolvable:$true] %s114_s24  ;;  %s139_s18 = int_to_ptr.vmem [resolvable:$true] %s138_s18 }
  0xcb   :  { %s5390_s8 = scalar_lea.hbm %s6235_s9, 1024 }
  0xcc   :  { %p5391_p2 = scmp.ne.s32.totalorder %s6235_s9, %s5390_s8  ;;  %p5394_p3 = scmp.lt.u32.totalorder %s5390_s8, %s6235_s9 }
  0xce   :  { %p5396_p4 = pnand %p5394_p3, %p5391_p2 }
  0xd0   :  { %5399 = shalt.err (!%p5396_p4)
}
  0xd1   :  { %s5400_s26 = scalar_lea.vmem %s115_s24, 1024  ;;  %p5405_p6 = scmp.lt.s32.totalorder %s115_s24, %s115_s24 }
  0xd2   :  { %p5401_p5 = scmp.ne.s32.totalorder %s115_s24, %s5400_s26  ;;  %p5406_p7 = scmp.lt.s32.totalorder %s5400_s26, %s5400_s26 }
  0xd4   :  { %p5407_p8 = por %p5406_p7, %p5405_p6 }
  0xd6   :  { %p5408_p9 = pnand %p5407_p8, %p5401_p5 }
  0xd8   :  { %5411 = shalt.err (!%p5408_p9)
}
  0xd9   :  { %120 = dma.hbm_to_vmem [thread:$0]  %s6235_s9, 1024, %s115_s24, [#allocation12], %s5523_s7, %s5523_s7, %s5524_s28  }
  0xda   :  { %s5412_s0 = scalar_lea.hbm %s6237_s11, 8192 }
  0xdb   :  { %p5413_p10 = scmp.ne.s32.totalorder %s6237_s11, %s5412_s0  ;;  %p5416_p11 = scmp.lt.u32.totalorder %s5412_s0, %s6237_s11 }
  0xdd   :  { %p5418_p12 = pnand %p5416_p11, %p5413_p10 }
  0xdf   :  { %5421 = shalt.err (!%p5418_p12)
}
  0xe0   :  { %s5422_s8 = scalar_lea.vmem %s139_s18, 8192  ;;  %p5427_p0 = scmp.lt.s32.totalorder %s139_s18, %s139_s18 }
  0xe1   :  { %p5423_p13 = scmp.ne.s32.totalorder %s139_s18, %s5422_s8  ;;  %p5428_p1 = scmp.lt.s32.totalorder %s5422_s8, %s5422_s8 }
  0xe3   :  { %p5429_p2 = por %p5428_p1, %p5427_p0 }
  0xe5   :  { %p5430_p3 = pnand %p5429_p2, %p5423_p13 }
  0xe7   :  { %5433 = shalt.err (!%p5430_p3)
}
  0xe8   :  { %144 = dma.hbm_to_vmem [thread:$0]  %s6237_s11, 8192, %s139_s18, [#allocation15], %s5523_s7, %s5523_s7, %s5524_s28  }
  0xe9   :  { %s5533_s10 = smov [#allocation19]   ;;  %s5534_s30 = smov [#allocation22]  }
  0xea   :  { %s162_s23 = sshll.u32 %s5533_s10, 4  ;;  %s196_s3 = sshll.u32 %s5534_s30, 4  ;;  %s163_s23 = int_to_ptr.vmem [resolvable:$true] %s162_s23  ;;  %s197_s3 = int_to_ptr.vmem [resolvable:$true] %s196_s3 }
  0xeb   :  { %s5434_s4 = scalar_lea.hbm %s6239_s13, 16384 }
  0xec   :  { %p5435_p4 = scmp.ne.s32.totalorder %s6239_s13, %s5434_s4  ;;  %p5438_p5 = scmp.lt.u32.totalorder %s5434_s4, %s6239_s13 }
  0xee   :  { %p5440_p6 = pnand %p5438_p5, %p5435_p4 }
  0xf0   :  { %5443 = shalt.err (!%p5440_p6)
}
  0xf1   :  { %s5444_s11 = scalar_lea.vmem %s163_s23, 16384  ;;  %p5449_p8 = scmp.lt.s32.totalorder %s163_s23, %s163_s23 }
  0xf2   :  { %p5445_p7 = scmp.ne.s32.totalorder %s163_s23, %s5444_s11  ;;  %p5450_p9 = scmp.lt.s32.totalorder %s5444_s11, %s5444_s11 }
  0xf4   :  { %p5451_p10 = por %p5450_p9, %p5449_p8 }
  0xf6   :  { %p5452_p11 = pnand %p5451_p10, %p5445_p7 }
  0xf8   :  { %5455 = shalt.err (!%p5452_p11)
}
  0xf9   :  { %s6280_s7 = smov 8   ;;  %s6281_s28 = smov 128  }
  0xfa   :  { %168 = dma.hbm_to_vmem [thread:$0]  %s6239_s13, 16384, %s163_s23, [#allocation18], %s6281_s28, %s6281_s28, %s6280_s7  }
  0xfb   :  { %s5456_s8 = scalar_lea.hbm %s6246_s20, 2048 }
  0xfc   :  { %p5457_p12 = scmp.ne.s32.totalorder %s6246_s20, %s5456_s8  ;;  %p5460_p13 = scmp.lt.u32.totalorder %s5456_s8, %s6246_s20 }
  0xfe   :  { %p5462_p0 = pnand %p5460_p13, %p5457_p12 }
 0x100   :  { %5465 = shalt.err (!%p5462_p0)
}
 0x101   :  { %s5466_s26 = scalar_lea.vmem %s197_s3, 2048  ;;  %p5471_p2 = scmp.lt.s32.totalorder %s197_s3, %s197_s3 }
 0x102   :  { %p5467_p1 = scmp.ne.s32.totalorder %s197_s3, %s5466_s26  ;;  %p5472_p3 = scmp.lt.s32.totalorder %s5466_s26, %s5466_s26 }
 0x104   :  { %p5473_p4 = por %p5472_p3, %p5471_p2 }
 0x106   :  { %p5474_p5 = pnand %p5473_p4, %p5467_p1 }
 0x108   :  { %5477 = shalt.err (!%p5474_p5)
}
 0x109   :  { %202 = dma.hbm_to_vmem [thread:$0]  %s6246_s20, 2048, %s197_s3, [#allocation21], %s6281_s28, %s6281_s28, %s6280_s7  }
 0x10a   :  { %5500 = dma.done.wait [#allocation3], 64  }
 0x10b   :  { %5501 = vsyncadd [#allocation3], 4294967232 }
 0x10c   :  { %5502 = dma.done.wait [#allocation6], 96  }
 0x10d   :  { %5503 = vsyncadd [#allocation6], 4294967200 }
 0x10e   :  { %5504 = dma.done.wait [#allocation9], 32768  }
 0x10f   :  { %5505 = vsyncadd [#allocation9], 4294934528 }
 0x110   :  { %5506 = dma.done.wait [#allocation12], 5120  }
 0x111   :  { %5507 = vsyncadd [#allocation12], 4294962176 }
 0x112   :  { %5508 = dma.done.wait [#allocation15], 40960  }
 0x113   :  { %5509 = vsyncadd [#allocation15], 4294926336 }
 0x114   :  { %5510 = dma.done.wait [#allocation18], 49152  }
 0x115   :  { %5511 = vsyncadd [#allocation18], 4294918144 }
 0x116   :  { %5512 = dma.done.wait [#allocation21], 4096  }
 0x117   :  { %5513 = vsyncadd [#allocation21], 4294963200  ;;  %v5535_v0 = vmov 0.0   ;;  %v252_v1 = vld [vmem:[#allocation8 + $0x18] sm:$0xff]  ;;  %v251_v3 = vld [vmem:[#allocation8 + $0x10] sm:$0xff]  ;;  %vm1165_vm0 = vcmask 1041408  }
 0x118   :  { %554 = vmatprep.mubr.f32.mxu1 %v5535_v0  ;;  %483 = vmatprep.mubr.f32.mxu0 %v5535_v0  ;;  %v260_v2 = vld [vmem:[#allocation8 + $0x58] sm:$0xff]  ;;  %v259_v5 = vld [vmem:[#allocation8 + $0x50] sm:$0xff]  ;;  %vm5536_vm1 = vmmov 0   ;;  %vm1161_vm2 = vcmask 15360   ;;  %vm1313_vm3 = vcmask 261120   ;;  %s6282_s4 = sld [smem:[#allocation38_spill]] }
 0x119   :  { %v4132_v4 = vpack.c.bf16 %v260_v2, %v252_v1  ;;  %v268_v6 = vld [vmem:[#allocation8 + $0x98] sm:$0xff]  ;;  %v4134_v8 = vpack.c.bf16 %v259_v5, %v251_v3  ;;  %v267_v10 = vld [vmem:[#allocation8 + $0x90] sm:$0xff]  ;;  %s6283_s0 = sld [smem:[#allocation36_spill]]  ;;  %s6284_s7 = sld [smem:[#allocation40_spill]]  ;;  %vm2279_vm6 = vcmask 519168   ;;  %vm2287_vm7 = vcmask 1043968  }
 0x11a   :  { %v276_v7 = vld [vmem:[#allocation8 + $0xd8] sm:$0xff]  ;;  %v275_v11 = vld [vmem:[#allocation8 + $0xd0] sm:$0xff]  ;;  %s5537_s6 = smov 96   ;;  %s5538_s8 = smov 32   ;;  %vm3439_vm12 = vcmask 257024  }
 0x11b   :  { %v4136_v9 = vpack.c.bf16 %v276_v7, %v268_v6  ;;  %v284_v12 = vld [vmem:[#allocation8 + $0x118] sm:$0xff]  ;;  %4133 = vmatprep.subr.bf16.mxu1 %v4132_v4  ;;  %v4138_v14 = vpack.c.bf16 %v275_v11, %v267_v10  ;;  %v283_v16 = vld [vmem:[#allocation8 + $0x110] sm:$0xff]  ;;  %s6285_s23 = sld [smem:[#allocation41_spill]]  ;;  %s5540_s20 = smov [#allocation23]  }
 0x11c   :  { %v292_v13 = vld [vmem:[#allocation8 + $0x158] sm:$0xff]  ;;  %4135 = vmatpush1.bf16.msra.mxu1 %v4134_v8  ;;  %v291_v17 = vld [vmem:[#allocation8 + $0x150] sm:$0xff]  ;;  %s3812_s3 = sshll.u32 %s5540_s20, 4  ;;  %s3813_s3 = int_to_ptr.vmem [resolvable:$true] %s3812_s3 }
 0x11d   :  { %4137 = vmatprep.subr.bf16.mxu1 %v4136_v9  ;;  %v4140_v15 = vpack.c.bf16 %v292_v13, %v284_v12  ;;  %v300_v18 = vld [vmem:[#allocation8 + $0x198] sm:$0xff]  ;;  %v4142_v20 = vpack.c.bf16 %v291_v17, %v283_v16  ;;  %v299_v22 = vld [vmem:[#allocation8 + $0x190] sm:$0xff]  ;;  %p5483_p7 = scmp.lt.s32.totalorder %s3813_s3, %s3813_s3 }
 0x11e   :  { %v308_v19 = vld [vmem:[#allocation8 + $0x1d8] sm:$0xff]  ;;  %v307_v23 = vld [vmem:[#allocation8 + $0x1d0] sm:$0xff] }
 0x11f   :  { %v4144_v21 = vpack.c.bf16 %v308_v19, %v300_v18  ;;  %v316_v24 = vld [vmem:[#allocation8 + $0x218] sm:$0xff]  ;;  %v4146_v26 = vpack.c.bf16 %v307_v23, %v299_v22  ;;  %v315_v28 = vld [vmem:[#allocation8 + $0x210] sm:$0xff]  ;;  %v258_v18 = vld [vmem:[#allocation8 + $0x48] sm:$0xff] }
 0x120   :  { %4139 = vmatpush1.bf16.msra.mxu1 %v4138_v14  ;;  %v324_v25 = vld [vmem:[#allocation8 + $0x258] sm:$0xff]  ;;  %v323_v29 = vld [vmem:[#allocation8 + $0x250] sm:$0xff]  ;;  %v250_v14 = vld [vmem:[#allocation8 + $0x8] sm:$0xff] }
 0x121   :  { %4141 = vmatprep.subr.bf16.mxu1 %v4140_v15  ;;  %v4148_v27 = vpack.c.bf16 %v324_v25, %v316_v24  ;;  %v332_v30 = vld [vmem:[#allocation8 + $0x298] sm:$0xff]  ;;  %v4150_v32 = vpack.c.bf16 %v323_v29, %v315_v28  ;;  %v331_v34 = vld [vmem:[#allocation8 + $0x290] sm:$0xff]  ;;  %v249_v19 = vld [vmem:[#allocation8] sm:$0xff]  ;;  %v4100_v22 = vpack.c.bf16 %v258_v18, %v250_v14 }
 0x122   :  { %v340_v31 = vld [vmem:[#allocation8 + $0x2d8] sm:$0xff]  ;;  %v339_v35 = vld [vmem:[#allocation8 + $0x2d0] sm:$0xff]  ;;  %v266_v24 = vld [vmem:[#allocation8 + $0x88] sm:$0xff] }
 0x123   :  { %v4152_v33 = vpack.c.bf16 %v340_v31, %v332_v30  ;;  %v348_v36 = vld [vmem:[#allocation8 + $0x318] sm:$0xff]  ;;  %v4154_v38 = vpack.c.bf16 %v339_v35, %v331_v34  ;;  %v347_v40 = vld [vmem:[#allocation8 + $0x310] sm:$0xff]  ;;  %v274_v25 = vld [vmem:[#allocation8 + $0xc8] sm:$0xff]  ;;  %4101 = vmatprep.subr.bf16.mxu0 %v4100_v22 }
 0x124   :  { %4143 = vmatpush1.bf16.msra.mxu1 %v4142_v20  ;;  %v356_v37 = vld [vmem:[#allocation8 + $0x358] sm:$0xff]  ;;  %v355_v41 = vld [vmem:[#allocation8 + $0x350] sm:$0xff]  ;;  %v257_v20 = vld [vmem:[#allocation8 + $0x40] sm:$0xff] }
 0x125   :  { %4145 = vmatprep.subr.bf16.mxu1 %v4144_v21  ;;  %v4156_v39 = vpack.c.bf16 %v356_v37, %v348_v36  ;;  %v364_v42 = vld [vmem:[#allocation8 + $0x398] sm:$0xff]  ;;  %v4158_v44 = vpack.c.bf16 %v355_v41, %v347_v40  ;;  %v363_v46 = vld [vmem:[#allocation8 + $0x390] sm:$0xff]  ;;  %v4102_v23 = vpack.c.bf16 %v257_v20, %v249_v19  ;;  %v273_v28 = vld [vmem:[#allocation8 + $0xc0] sm:$0xff] }
 0x126   :  { %v372_v43 = vld [vmem:[#allocation8 + $0x3d8] sm:$0xff]  ;;  %v371_v47 = vld [vmem:[#allocation8 + $0x3d0] sm:$0xff]  ;;  %v282_v29 = vld [vmem:[#allocation8 + $0x108] sm:$0xff] }
 0x127   :  { %v4160_v45 = vpack.c.bf16 %v372_v43, %v364_v42  ;;  %v256_v48 = vld [vmem:[#allocation8 + $0x38] sm:$0xff]  ;;  %v4162_v50 = vpack.c.bf16 %v371_v47, %v363_v46  ;;  %v255_v52 = vld [vmem:[#allocation8 + $0x30] sm:$0xff]  ;;  %v290_v30 = vld [vmem:[#allocation8 + $0x148] sm:$0xff]  ;;  %4103 = vmatpush1.bf16.msra.mxu0 %v4102_v23 }
 0x128   :  { %4147 = vmatpush1.bf16.msra.mxu1 %v4146_v26  ;;  %v264_v49 = vld [vmem:[#allocation8 + $0x78] sm:$0xff]  ;;  %v263_v53 = vld [vmem:[#allocation8 + $0x70] sm:$0xff]  ;;  %v265_v26 = vld [vmem:[#allocation8 + $0x80] sm:$0xff]  ;;  %v4108_v37 = vpack.c.bf16 %v290_v30, %v282_v29 }
 0x129   :  { %4149 = vmatprep.subr.bf16.mxu1 %v4148_v27  ;;  %v4196_v51 = vpack.c.bf16 %v264_v49, %v256_v48  ;;  %v272_v54 = vld [vmem:[#allocation8 + $0xb8] sm:$0xff]  ;;  %v4198_v57 = vpack.c.bf16 %v263_v53, %v255_v52  ;;  %v271_v59 = vld [vmem:[#allocation8 + $0xb0] sm:$0xff]  ;;  %v4104_v27 = vpack.c.bf16 %v274_v25, %v266_v24  ;;  %v4106_v34 = vpack.c.bf16 %v273_v28, %v265_v26  ;;  %v298_v41 = vld [vmem:[#allocation8 + $0x188] sm:$0xff] }
 0x12a   :  { %v280_v55 = vld [vmem:[#allocation8 + $0xf8] sm:$0xff]  ;;  %v279_v60 = vld [vmem:[#allocation8 + $0xf0] sm:$0xff]  ;;  %v306_v42 = vld [vmem:[#allocation8 + $0x1c8] sm:$0xff] }
 0x12b   :  { %v5861_v56 = vld [vmem:[#allocation2] sm:$0xf]  ;;  %v4200_v58 = vpack.c.bf16 %v280_v55, %v272_v54  ;;  %v4202_v63 = vpack.c.bf16 %v279_v60, %v271_v59  ;;  %4105 = vmatprep.subr.bf16.mxu0 %v4104_v27  ;;  %v4112_v49 = vpack.c.bf16 %v306_v42, %v298_v41  ;;  %v314_v53 = vld [vmem:[#allocation8 + $0x208] sm:$0xff]  ;;  %v337_v14 = vld [vmem:[#allocation8 + $0x2c0] sm:$0xff] }
 0x12c   :  { %4151 = vmatpush1.bf16.msra.mxu1 %v4150_v32  ;;  %v288_v61 = vld [vmem:[#allocation8 + $0x138] sm:$0xff]  ;;  %v287_v2 = vld [vmem:[#allocation8 + $0x130] sm:$0xff]  ;;  %4107 = vmatpush1.bf16.msra.mxu0 %v4106_v34  ;;  %v322_v54 = vld [vmem:[#allocation8 + $0x248] sm:$0xff] }
 0x12d   :  { %4153 = vmatprep.subr.bf16.mxu1 %v4152_v33  ;;  %v296_v62 = vld [vmem:[#allocation8 + $0x178] sm:$0xff]  ;;  %v295_v3 = vld [vmem:[#allocation8 + $0x170] sm:$0xff]  ;;  %4109 = vmatprep.subr.bf16.mxu0 %v4108_v37  ;;  %v345_v25 = vld [vmem:[#allocation8 + $0x300] sm:$0xff] }
 0x12e   :  { %v4204_v1 = vpack.c.bf16 %v296_v62, %v288_v61  ;;  %v304_v4 = vld [vmem:[#allocation8 + $0x1b8] sm:$0xff]  ;;  %v4206_v6 = vpack.c.bf16 %v295_v3, %v287_v2  ;;  %v303_v8 = vld [vmem:[#allocation8 + $0x1b0] sm:$0xff]  ;;  %v4116_v62 = vpack.c.bf16 %v322_v54, %v314_v53  ;;  %v330_v3 = vld [vmem:[#allocation8 + $0x288] sm:$0xff] }
 0x12f   :  { %v312_v5 = vld [vmem:[#allocation8 + $0x1f8] sm:$0xff]  ;;  %v311_v9 = vld [vmem:[#allocation8 + $0x1f0] sm:$0xff]  ;;  %v353_v26 = vld [vmem:[#allocation8 + $0x340] sm:$0xff] }
 0x130   :  { %4155 = vmatpush1.bf16.msra.mxu1 %v4154_v38  ;;  %v4208_v7 = vpack.c.bf16 %v312_v5, %v304_v4  ;;  %v320_v10 = vld [vmem:[#allocation8 + $0x238] sm:$0xff]  ;;  %v319_v12 = vld [vmem:[#allocation8 + $0x230] sm:$0xff]  ;;  %v4210_v15 = vpack.c.bf16 %v311_v9, %v303_v8  ;;  %v281_v38 = vld [vmem:[#allocation8 + $0x100] sm:$0xff]  ;;  %v4126_v34 = vpack.c.bf16 %v353_v26, %v345_v25 }
 0x131   :  { %4157 = vmatprep.subr.bf16.mxu1 %v4156_v39  ;;  %v328_v11 = vld [vmem:[#allocation8 + $0x278] sm:$0xff]  ;;  %v327_v13 = vld [vmem:[#allocation8 + $0x270] sm:$0xff]  ;;  %v289_v39 = vld [vmem:[#allocation8 + $0x140] sm:$0xff] }
 0x132   :  { %v336_v16 = vld [vmem:[#allocation8 + $0x2b8] sm:$0xff]  ;;  %v4212_v21 = vpack.c.bf16 %v328_v11, %v320_v10  ;;  %v4214_v31 = vpack.c.bf16 %v327_v13, %v319_v12  ;;  %v335_v32 = vld [vmem:[#allocation8 + $0x2b0] sm:$0xff]  ;;  %v4110_v46 = vpack.c.bf16 %v289_v39, %v281_v38  ;;  %v338_v4 = vld [vmem:[#allocation8 + $0x2c8] sm:$0xff] }
 0x133   :  { %v344_v17 = vld [vmem:[#allocation8 + $0x2f8] sm:$0xff]  ;;  %v343_v33 = vld [vmem:[#allocation8 + $0x2f0] sm:$0xff]  ;;  %v4120_v11 = vpack.c.bf16 %v338_v4, %v330_v3  ;;  %v329_v13 = vld [vmem:[#allocation8 + $0x280] sm:$0xff] }
 0x134   :  { %4159 = vmatpush1.bf16.msra.mxu1 %v4158_v44  ;;  %v4216_v35 = vpack.c.bf16 %v344_v17, %v336_v16  ;;  %v352_v36 = vld [vmem:[#allocation8 + $0x338] sm:$0xff]  ;;  %v4218_v43 = vpack.c.bf16 %v343_v33, %v335_v32  ;;  %v351_v44 = vld [vmem:[#allocation8 + $0x330] sm:$0xff]  ;;  %4111 = vmatpush1.bf16.msra.mxu0 %v4110_v46  ;;  %v354_v16 = vld [vmem:[#allocation8 + $0x348] sm:$0xff]  ;;  %v4122_v22 = vpack.c.bf16 %v337_v14, %v329_v13 }
 0x135   :  { %4161 = vmatprep.subr.bf16.mxu1 %v4160_v45  ;;  %v360_v40 = vld [vmem:[#allocation8 + $0x378] sm:$0xff]  ;;  %v359_v45 = vld [vmem:[#allocation8 + $0x370] sm:$0xff]  ;;  %4113 = vmatprep.subr.bf16.mxu0 %v4112_v49  ;;  %v362_v27 = vld [vmem:[#allocation8 + $0x388] sm:$0xff] }
 0x136   :  { %v4220_v47 = vpack.c.bf16 %v360_v40, %v352_v36  ;;  %v368_v48 = vld [vmem:[#allocation8 + $0x3b8] sm:$0xff]  ;;  %v4222_v55 = vpack.c.bf16 %v359_v45, %v351_v44  ;;  %v705_v8 = vld [vmem:[#allocation10 + $0x10] sm:$0xff]  ;;  %v370_v28 = vld [vmem:[#allocation8 + $0x3c8] sm:$0xff] }
 0x137   :  { %v376_v52 = vld [vmem:[#allocation8 + $0x3f8] sm:$0xff]  ;;  %v713_v9 = vld [vmem:[#allocation10 + $0x50] sm:$0xff]  ;;  %v4128_v36 = vpack.c.bf16 %v370_v28, %v362_v27  ;;  %v361_v37 = vld [vmem:[#allocation8 + $0x380] sm:$0xff] }
 0x138   :  { %4163 = vmatpush1.bf16.msra.mxu1 %v4162_v50  ;;  %v297_v50 = vld [vmem:[#allocation8 + $0x180] sm:$0xff]  ;;  %v4224_v60 = vpack.c.bf16 %v376_v52, %v368_v48  ;;  %v706_v61 = vld [vmem:[#allocation10 + $0x18] sm:$0xff]  ;;  %v4262_v17 = vpack.c.bf16 %v713_v9, %v705_v8  ;;  %v721_v19 = vld [vmem:[#allocation10 + $0x90] sm:$0xff] }
 0x139   :  { %4197 = vmatprep.subr.bf16.mxu1 %v4196_v51  ;;  %v305_v51 = vld [vmem:[#allocation8 + $0x1c0] sm:$0xff]  ;;  %v714_v2 = vld [vmem:[#allocation10 + $0x58] sm:$0xff]  ;;  %v729_v20 = vld [vmem:[#allocation10 + $0xd0] sm:$0xff] }
 0x13a   :  { %v4114_v59 = vpack.c.bf16 %v305_v51, %v297_v50  ;;  %v722_v10 = vld [vmem:[#allocation10 + $0x98] sm:$0xff]  ;;  %v4266_v29 = vpack.c.bf16 %v729_v20, %v721_v19  ;;  %v745_v32 = vld [vmem:[#allocation10 + $0x150] sm:$0xff]  ;;  %v369_v38 = vld [vmem:[#allocation8 + $0x3c0] sm:$0xff] }
 0x13b   :  { %555 = vmatmul.mubr.f32.vlgmr.msra.gmra.mrb[0].mxu1 %v5861_v56  ;;  %v730_v12 = vld [vmem:[#allocation10 + $0xd8] sm:$0xff]  ;;  %v254_v39 = vld [vmem:[#allocation8 + $0x28] sm:$0xff]  ;;  %v761_v44 = vld [vmem:[#allocation10 + $0x1d0] sm:$0xff]  ;;  %v4130_v46 = vpack.c.bf16 %v369_v38, %v361_v37 }
 0x13c   :  { %4199 = vmatpush1.bf16.msra.mxu1 %v4198_v57  ;;  %696 = vmatprep.mubr.f32.mxu1 %v5535_v0  ;;  %v367_v57 = vld [vmem:[#allocation8 + $0x3b0] sm:$0xff]  ;;  %v4264_v18 = vpack.c.bf16 %v730_v12, %v722_v10  ;;  %v746_v23 = vld [vmem:[#allocation10 + $0x158] sm:$0xff]  ;;  %v262_v40 = vld [vmem:[#allocation8 + $0x68] sm:$0xff] }
 0x13d   :  { %4201 = vmatprep.subr.bf16.mxu1 %v4200_v58  ;;  %v375_v58 = vld [vmem:[#allocation8 + $0x3f0] sm:$0xff]  ;;  %4115 = vmatpush1.bf16.msra.mxu0 %v4114_v59  ;;  %v754_v33 = vld [vmem:[#allocation10 + $0x198] sm:$0xff]  ;;  %v4164_v48 = vpack.c.bf16 %v262_v40, %v254_v39  ;;  %v253_v49 = vld [vmem:[#allocation8 + $0x20] sm:$0xff] }
 0x13e   :  { %v4226_v5 = vpack.c.bf16 %v375_v58, %v367_v57  ;;  %4117 = vmatprep.subr.bf16.mxu0 %v4116_v62  ;;  %v770_v45 = vld [vmem:[#allocation10 + $0x218] sm:$0xff]  ;;  %v261_v50 = vld [vmem:[#allocation8 + $0x60] sm:$0xff]  ;;  %v769_v53 = vld [vmem:[#allocation10 + $0x210] sm:$0xff] }
 0x13f   :  { %v777_v54 = vld [vmem:[#allocation10 + $0x250] sm:$0xff]  ;;  %v786_v57 = vld [vmem:[#allocation10 + $0x298] sm:$0xff] }
 0x140   :  { %4203 = vmatpush1.bf16.msra.mxu1 %v4202_v63  ;;  %v313_v63 = vld [vmem:[#allocation8 + $0x200] sm:$0xff]  ;;  %v794_v58 = vld [vmem:[#allocation10 + $0x2d8] sm:$0xff]  ;;  %v4278_v59 = vpack.c.bf16 %v777_v54, %v769_v53  ;;  %v793_v62 = vld [vmem:[#allocation10 + $0x2d0] sm:$0xff] }
 0x141   :  { %4205 = vmatprep.subr.bf16.mxu1 %v4204_v1  ;;  %v321_v1 = vld [vmem:[#allocation8 + $0x240] sm:$0xff]  ;;  %v801_v4 = vld [vmem:[#allocation10 + $0x310] sm:$0xff]  ;;  %v710_v12 = vld [vmem:[#allocation10 + $0x38] sm:$0xff] }
 0x142   :  { %v817_v10 = vld [vmem:[#allocation10 + $0x390] sm:$0xff]  ;;  %v718_v13 = vld [vmem:[#allocation10 + $0x78] sm:$0xff]  ;;  %v269_v54 = vld [vmem:[#allocation8 + $0xa0] sm:$0xff] }
 0x143   :  { %v734_v19 = vld [vmem:[#allocation10 + $0xf8] sm:$0xff]  ;;  %v741_v28 = vld [vmem:[#allocation10 + $0x130] sm:$0xff] }
 0x144   :  { %4207 = vmatpush1.bf16.msra.mxu1 %v4206_v6  ;;  %v4118_v6 = vpack.c.bf16 %v321_v1, %v313_v63  ;;  %v802_v63 = vld [vmem:[#allocation10 + $0x318] sm:$0xff]  ;;  %v773_v40 = vld [vmem:[#allocation10 + $0x230] sm:$0xff] }
 0x145   :  { %4209 = vmatprep.subr.bf16.mxu1 %v4208_v7  ;;  %v4260_v7 = vpack.c.bf16 %v714_v2, %v706_v61  ;;  %v785_v61 = vld [vmem:[#allocation10 + $0x290] sm:$0xff]  ;;  %v810_v1 = vld [vmem:[#allocation10 + $0x358] sm:$0xff] }
 0x146   :  { %4119 = vmatpush1.bf16.msra.mxu0 %v4118_v6  ;;  %v4282_v2 = vpack.c.bf16 %v793_v62, %v785_v61  ;;  %v4284_v3 = vpack.c.bf16 %v810_v1, %v802_v63  ;;  %v818_v6 = vld [vmem:[#allocation10 + $0x398] sm:$0xff]  ;;  %v821_v63 = vld [vmem:[#allocation10 + $0x3b0] sm:$0xff] }
 0x147   :  { %4121 = vmatprep.subr.bf16.mxu0 %v4120_v11  ;;  %v825_v11 = vld [vmem:[#allocation10 + $0x3d0] sm:$0xff]  ;;  %v750_v25 = vld [vmem:[#allocation10 + $0x178] sm:$0xff] }
 0x148   :  { %4211 = vmatpush1.bf16.msra.mxu1 %v4210_v15  ;;  %v346_v15 = vld [vmem:[#allocation8 + $0x308] sm:$0xff]  ;;  %v4290_v14 = vpack.c.bf16 %v825_v11, %v817_v10  ;;  %v782_v37 = vld [vmem:[#allocation10 + $0x278] sm:$0xff]  ;;  %v829_v1 = vld [vmem:[#allocation10 + $0x3f0] sm:$0xff] }
 0x149   :  { %4213 = vmatprep.subr.bf16.mxu1 %v4212_v21  ;;  %v738_v21 = vld [vmem:[#allocation10 + $0x118] sm:$0xff]  ;;  %v4124_v24 = vpack.c.bf16 %v354_v16, %v346_v15  ;;  %v4324_v15 = vpack.c.bf16 %v718_v13, %v710_v12  ;;  %v709_v16 = vld [vmem:[#allocation10 + $0x30] sm:$0xff]  ;;  %v310_v11 = vld [vmem:[#allocation8 + $0x1e8] sm:$0xff] }
 0x14a   :  { %v4268_v30 = vpack.c.bf16 %v746_v23, %v738_v21  ;;  %4123 = vmatpush1.bf16.msra.mxu0 %v4122_v22  ;;  %v725_v22 = vld [vmem:[#allocation10 + $0xb0] sm:$0xff]  ;;  %v822_v61 = vld [vmem:[#allocation10 + $0x3b8] sm:$0xff]  ;;  %v301_v12 = vld [vmem:[#allocation8 + $0x1a0] sm:$0xff] }
 0x14b   :  { %4125 = vmatprep.subr.bf16.mxu0 %v4124_v24  ;;  %v733_v23 = vld [vmem:[#allocation10 + $0xf0] sm:$0xff]  ;;  %v742_v24 = vld [vmem:[#allocation10 + $0x138] sm:$0xff]  ;;  %v309_v13 = vld [vmem:[#allocation8 + $0x1e0] sm:$0xff] }
 0x14c   :  { %4215 = vmatpush1.bf16.msra.mxu1 %v4214_v31  ;;  %v737_v31 = vld [vmem:[#allocation10 + $0x110] sm:$0xff]  ;;  %v4330_v26 = vpack.c.bf16 %v733_v23, %v725_v22  ;;  %v4332_v27 = vpack.c.bf16 %v750_v25, %v742_v24  ;;  %v830_v62 = vld [vmem:[#allocation10 + $0x3f8] sm:$0xff]  ;;  %v334_v22 = vld [vmem:[#allocation8 + $0x2a8] sm:$0xff] }
 0x14d   :  { %4217 = vmatprep.subr.bf16.mxu1 %v4216_v35  ;;  %v762_v35 = vld [vmem:[#allocation10 + $0x1d8] sm:$0xff]  ;;  %v4270_v41 = vpack.c.bf16 %v745_v32, %v737_v31  ;;  %v342_v23 = vld [vmem:[#allocation8 + $0x2e8] sm:$0xff]  ;;  %v333_v25 = vld [vmem:[#allocation8 + $0x2a0] sm:$0xff] }
 0x14e   :  { %v4272_v42 = vpack.c.bf16 %v762_v35, %v754_v33  ;;  %4127 = vmatpush1.bf16.msra.mxu0 %v4126_v34  ;;  %v766_v31 = vld [vmem:[#allocation10 + $0x1f8] sm:$0xff]  ;;  %v757_v34 = vld [vmem:[#allocation10 + $0x1b0] sm:$0xff] }
 0x14f   :  { %4129 = vmatprep.subr.bf16.mxu0 %v4128_v36  ;;  %v765_v35 = vld [vmem:[#allocation10 + $0x1f0] sm:$0xff]  ;;  %v774_v36 = vld [vmem:[#allocation10 + $0x238] sm:$0xff] }
 0x150   :  { %4219 = vmatpush1.bf16.msra.mxu1 %v4218_v43  ;;  %v753_v43 = vld [vmem:[#allocation10 + $0x190] sm:$0xff]  ;;  %v4338_v38 = vpack.c.bf16 %v765_v35, %v757_v34  ;;  %v4340_v39 = vpack.c.bf16 %v782_v37, %v774_v36  ;;  %v349_v34 = vld [vmem:[#allocation8 + $0x320] sm:$0xff]  ;;  %v366_v36 = vld [vmem:[#allocation8 + $0x3a8] sm:$0xff] }
 0x151   :  { %4221 = vmatprep.subr.bf16.mxu1 %v4220_v47  ;;  %v778_v47 = vld [vmem:[#allocation10 + $0x258] sm:$0xff]  ;;  %v4274_v51 = vpack.c.bf16 %v761_v44, %v753_v43  ;;  %v357_v35 = vld [vmem:[#allocation8 + $0x360] sm:$0xff]  ;;  %v374_v37 = vld [vmem:[#allocation8 + $0x3e8] sm:$0xff] }
 0x152   :  { %v4276_v52 = vpack.c.bf16 %v778_v47, %v770_v45  ;;  %4131 = vmatpush1.bf16.msra.mxu0 %v4130_v46  ;;  %v798_v43 = vld [vmem:[#allocation10 + $0x2f8] sm:$0xff]  ;;  %v789_v46 = vld [vmem:[#allocation10 + $0x2b0] sm:$0xff] }
 0x153   :  { %4165 = vmatprep.subr.bf16.mxu0 %v4164_v48  ;;  %v797_v47 = vld [vmem:[#allocation10 + $0x2f0] sm:$0xff]  ;;  %v806_v48 = vld [vmem:[#allocation10 + $0x338] sm:$0xff] }
 0x154   :  { %4223 = vmatpush1.bf16.msra.mxu1 %v4222_v55  ;;  %v4166_v55 = vpack.c.bf16 %v261_v50, %v253_v49  ;;  %v814_v49 = vld [vmem:[#allocation10 + $0x378] sm:$0xff]  ;;  %v270_v50 = vld [vmem:[#allocation8 + $0xa8] sm:$0xff] }
 0x155   :  { %4225 = vmatprep.subr.bf16.mxu1 %v4224_v60  ;;  %484 = vmatmul.mubr.f32.vlgmr.msra.gmra.mrb[0].mxu0 %v5861_v56  ;;  %v4280_v60 = vpack.c.bf16 %v794_v58, %v786_v57  ;;  %v4348_v57 = vpack.c.bf16 %v814_v49, %v806_v48  ;;  %v805_v58 = vld [vmem:[#allocation10 + $0x330] sm:$0xff]  ;;  %v720_v49 = vld [vmem:[#allocation10 + $0x88] sm:$0xff] }
 0x156   :  { %4167 = vmatpush1.bf16.msra.mxu0 %v4166_v55  ;;  %625 = vmatprep.mubr.f32.mxu0 %v5535_v0  ;;  %v277_v55 = vld [vmem:[#allocation8 + $0xe0] sm:$0xff] }
 0x158   :  { %4227 = vmatpush1.bf16.msra.mxu1 %v4226_v5  ;;  %v809_v5 = vld [vmem:[#allocation10 + $0x350] sm:$0xff] }
 0x159   :  { %4261 = vmatprep.subr.bf16.mxu1 %v4260_v7  ;;  %v826_v7 = vld [vmem:[#allocation10 + $0x3d8] sm:$0xff]  ;;  %v4286_v8 = vpack.c.bf16 %v809_v5, %v801_v4 }
 0x15a   :  { %v4288_v9 = vpack.c.bf16 %v826_v7, %v818_v6  ;;  %v285_v6 = vld [vmem:[#allocation8 + $0x120] sm:$0xff] }
 0x15b   :  { %697 = vmatmul.mubr.f32.vlgmr.msra.gmra.mrb[2].mxu1 %v5861_v56  ;;  %v293_v7 = vld [vmem:[#allocation8 + $0x160] sm:$0xff] }
 0x15c   :  { %4263 = vmatpush1.bf16.msra.mxu1 %v4262_v17  ;;  %1008 = vmatprep.mubr.f32.mxu1 %v5535_v0  ;;  %v717_v17 = vld [vmem:[#allocation10 + $0x70] sm:$0xff]  ;;  %v4174_v10 = vpack.c.bf16 %v293_v7, %v285_v6 }
 0x15d   :  { %4265 = vmatprep.subr.bf16.mxu1 %v4264_v18  ;;  %v726_v18 = vld [vmem:[#allocation10 + $0xb8] sm:$0xff]  ;;  %v4326_v20 = vpack.c.bf16 %v717_v17, %v709_v16  ;;  %v326_v16 = vld [vmem:[#allocation8 + $0x268] sm:$0xff]  ;;  %v4178_v17 = vpack.c.bf16 %v309_v13, %v301_v12 }
 0x15e   :  { %v4328_v21 = vpack.c.bf16 %v734_v19, %v726_v18  ;;  %v4354_v18 = vpack.c.bf16 %v829_v1, %v821_v63  ;;  %v760_v63 = vld [vmem:[#allocation10 + $0x1c8] sm:$0xff]  ;;  %v751_v1 = vld [vmem:[#allocation10 + $0x180] sm:$0xff] }
 0x160   :  { %4267 = vmatpush1.bf16.msra.mxu1 %v4266_v29  ;;  %v749_v29 = vld [vmem:[#allocation10 + $0x170] sm:$0xff] }
 0x161   :  { %4269 = vmatprep.subr.bf16.mxu1 %v4268_v30  ;;  %v758_v30 = vld [vmem:[#allocation10 + $0x1b8] sm:$0xff]  ;;  %v4334_v32 = vpack.c.bf16 %v749_v29, %v741_v28  ;;  %v4184_v28 = vpack.c.bf16 %v342_v23, %v334_v22  ;;  %v350_v29 = vld [vmem:[#allocation8 + $0x328] sm:$0xff] }
 0x162   :  { %v4336_v33 = vpack.c.bf16 %v766_v31, %v758_v30  ;;  %v358_v30 = vld [vmem:[#allocation8 + $0x368] sm:$0xff] }
 0x163   :  { %v816_v22 = vld [vmem:[#allocation10 + $0x388] sm:$0xff] }
 0x164   :  { %4271 = vmatpush1.bf16.msra.mxu1 %v4270_v41  ;;  %v781_v41 = vld [vmem:[#allocation10 + $0x270] sm:$0xff]  ;;  %v824_v23 = vld [vmem:[#allocation10 + $0x3c8] sm:$0xff] }
 0x165   :  { %4273 = vmatprep.subr.bf16.mxu1 %v4272_v42  ;;  %v790_v42 = vld [vmem:[#allocation10 + $0x2b8] sm:$0xff]  ;;  %v4342_v44 = vpack.c.bf16 %v781_v41, %v773_v40  ;;  %v365_v40 = vld [vmem:[#allocation8 + $0x3a0] sm:$0xff] }
 0x166   :  { %v4344_v45 = vpack.c.bf16 %v798_v43, %v790_v42  ;;  %v373_v41 = vld [vmem:[#allocation8 + $0x3e0] sm:$0xff]  ;;  %v704_v42 = vld [vmem:[#allocation10 + $0x8] sm:$0xff] }
 0x167   :  { %v712_v43 = vld [vmem:[#allocation10 + $0x48] sm:$0xff] }
 0x168   :  { %4275 = vmatpush1.bf16.msra.mxu1 %v4274_v51  ;;  %v278_v51 = vld [vmem:[#allocation8 + $0xe8] sm:$0xff] }
 0x169   :  { %4277 = vmatprep.subr.bf16.mxu1 %v4276_v52  ;;  %v4346_v52 = vpack.c.bf16 %v797_v47, %v789_v46  ;;  %v4168_v53 = vpack.c.bf16 %v278_v51, %v270_v50  ;;  %v703_v46 = vld [vmem:[#allocation10] sm:$0xff]  ;;  %v728_v50 = vld [vmem:[#allocation10 + $0xc8] sm:$0xff] }
 0x16a   :  { %v711_v47 = vld [vmem:[#allocation10 + $0x40] sm:$0xff]  ;;  %v4232_v51 = vpack.c.bf16 %v728_v50, %v720_v49 }
 0x16b   :  { %4169 = vmatprep.subr.bf16.mxu0 %v4168_v53  ;;  %v4230_v48 = vpack.c.bf16 %v711_v47, %v703_v46  ;;  %v727_v53 = vld [vmem:[#allocation10 + $0xc0] sm:$0xff]  ;;  %v756_v46 = vld [vmem:[#allocation10 + $0x1a8] sm:$0xff] }
 0x16c   :  { %4279 = vmatpush1.bf16.msra.mxu1 %v4278_v59  ;;  %v813_v59 = vld [vmem:[#allocation10 + $0x370] sm:$0xff]  ;;  %v755_v49 = vld [vmem:[#allocation10 + $0x1a0] sm:$0xff] }
 0x16d   :  { %4281 = vmatprep.subr.bf16.mxu1 %v4280_v60  ;;  %v4170_v60 = vpack.c.bf16 %v277_v55, %v269_v54  ;;  %v4350_v4 = vpack.c.bf16 %v813_v59, %v805_v58  ;;  %v736_v55 = vld [vmem:[#allocation10 + $0x108] sm:$0xff]  ;;  %v735_v59 = vld [vmem:[#allocation10 + $0x100] sm:$0xff] }
 0x16e   :  { %v763_v50 = vld [vmem:[#allocation10 + $0x1e0] sm:$0xff] }
 0x16f   :  { %4171 = vmatpush1.bf16.msra.mxu0 %v4170_v60  ;;  %v743_v60 = vld [vmem:[#allocation10 + $0x140] sm:$0xff] }
 0x170   :  { %4283 = vmatpush1.bf16.msra.mxu1 %v4282_v2  ;;  %v286_v2 = vld [vmem:[#allocation8 + $0x128] sm:$0xff] }
 0x171   :  { %4285 = vmatprep.subr.bf16.mxu1 %v4284_v3  ;;  %v294_v3 = vld [vmem:[#allocation8 + $0x168] sm:$0xff] }
 0x172   :  { %v4172_v5 = vpack.c.bf16 %v294_v3, %v286_v2  ;;  %v759_v2 = vld [vmem:[#allocation10 + $0x1c0] sm:$0xff] }
 0x173   :  { %v4242_v6 = vpack.c.bf16 %v759_v2, %v751_v1  ;;  %v787_v2 = vld [vmem:[#allocation10 + $0x2a0] sm:$0xff] }
 0x174   :  { %4287 = vmatpush1.bf16.msra.mxu1 %v4286_v8  ;;  %v302_v8 = vld [vmem:[#allocation8 + $0x1a8] sm:$0xff]  ;;  %4173 = vmatprep.subr.bf16.mxu0 %v4172_v5 }
 0x175   :  { %4289 = vmatprep.subr.bf16.mxu1 %v4288_v9  ;;  %v4352_v9 = vpack.c.bf16 %v830_v62, %v822_v61  ;;  %4175 = vmatpush1.bf16.msra.mxu0 %v4174_v10  ;;  %v752_v61 = vld [vmem:[#allocation10 + $0x188] sm:$0xff]  ;;  %v4238_v62 = vpack.c.bf16 %v743_v60, %v735_v59 }
 0x176   :  { %v4240_v3 = vpack.c.bf16 %v760_v63, %v752_v61  ;;  %v776_v5 = vld [vmem:[#allocation10 + $0x248] sm:$0xff] }
 0x177   :  { %v784_v10 = vld [vmem:[#allocation10 + $0x288] sm:$0xff] }
 0x178   :  { %4291 = vmatpush1.bf16.msra.mxu1 %v4290_v14  ;;  %v4176_v14 = vpack.c.bf16 %v310_v11, %v302_v8  ;;  %v767_v8 = vld [vmem:[#allocation10 + $0x200] sm:$0xff]  ;;  %v792_v11 = vld [vmem:[#allocation10 + $0x2c8] sm:$0xff] }
 0x179   :  { %4325 = vmatprep.subr.bf16.mxu1 %v4324_v15  ;;  %v318_v15 = vld [vmem:[#allocation8 + $0x228] sm:$0xff]  ;;  %v4248_v13 = vpack.c.bf16 %v792_v11, %v784_v10 }
 0x17a   :  { %4177 = vmatprep.subr.bf16.mxu0 %v4176_v14  ;;  %v4180_v19 = vpack.c.bf16 %v326_v16, %v318_v15  ;;  %v783_v14 = vld [vmem:[#allocation10 + $0x280] sm:$0xff]  ;;  %v800_v16 = vld [vmem:[#allocation10 + $0x308] sm:$0xff] }
 0x17b   :  { %1009 = vmatmul.mubr.f32.vlgmr.msra.gmra.mrb[4].mxu1 %v5861_v56  ;;  %4179 = vmatpush1.bf16.msra.mxu0 %v4178_v17  ;;  %v791_v15 = vld [vmem:[#allocation10 + $0x2c0] sm:$0xff]  ;;  %v808_v17 = vld [vmem:[#allocation10 + $0x348] sm:$0xff] }
 0x17c   :  { %4327 = vmatpush1.bf16.msra.mxu1 %v4326_v20  ;;  %1150 = vmatprep.mubr.f32.mxu1 %v5535_v0  ;;  %v317_v20 = vld [vmem:[#allocation8 + $0x220] sm:$0xff]  ;;  %v788_v59 = vld [vmem:[#allocation10 + $0x2a8] sm:$0xff] }
 0x17d   :  { %4329 = vmatprep.subr.bf16.mxu1 %v4328_v21  ;;  %v325_v21 = vld [vmem:[#allocation8 + $0x260] sm:$0xff]  ;;  %4181 = vmatprep.subr.bf16.mxu0 %v4180_v19  ;;  %v4252_v19 = vpack.c.bf16 %v808_v17, %v800_v16  ;;  %v796_v60 = vld [vmem:[#allocation10 + $0x2e8] sm:$0xff] }
 0x17e   :  { %v4182_v24 = vpack.c.bf16 %v325_v21, %v317_v20  ;;  %v799_v20 = vld [vmem:[#allocation10 + $0x300] sm:$0xff]  ;;  %v1248_v63 = vld [vmem:[#allocation11 + $0x48] sm:$0xff]  ;;  %v4312_v1 = vpack.c.bf16 %v796_v60, %v788_v59  ;;  %v1262_v60 = vld [vmem:[#allocation11 + $0xb8] sm:$0xff] }
 0x17f   :  { %v807_v21 = vld [vmem:[#allocation10 + $0x340] sm:$0xff]  ;;  %v1268_v59 = vld [vmem:[#allocation11 + $0xe8] sm:$0xff] }
 0x180   :  { %4331 = vmatpush1.bf16.msra.mxu1 %v4330_v26  ;;  %v341_v26 = vld [vmem:[#allocation8 + $0x2e0] sm:$0xff]  ;;  %4183 = vmatpush1.bf16.msra.mxu0 %v4182_v24  ;;  %v4254_v24 = vpack.c.bf16 %v807_v21, %v799_v20  ;;  %v1242_v20 = vld [vmem:[#allocation11 + $0x18] sm:$0xff] }
 0x181   :  { %4333 = vmatprep.subr.bf16.mxu1 %v4332_v27  ;;  %v1159_v27 = vld [vmem:[#allocation7] sm:$0x3]  ;;  %v4186_v31 = vpack.c.bf16 %v341_v26, %v333_v25  ;;  %4185 = vmatprep.subr.bf16.mxu0 %v4184_v28  ;;  %v4256_v25 = vpack.c.bf16 %v824_v23, %v816_v22  ;;  %v815_v26 = vld [vmem:[#allocation10 + $0x380] sm:$0xff]  ;;  %v708_v28 = vld [vmem:[#allocation10 + $0x28] sm:$0xff] }
 0x182   :  { %v1250_v21 = vld [vmem:[#allocation11 + $0x58] sm:$0xff] }
 0x183   :  { %v4364_v23 = vpack.c.bf16 %v1250_v21, %v1242_v20  ;;  %v1613_v21 = vld [vmem:[#allocation14 + $0x20] sm:$0xff] }
 0x184   :  { %4335 = vmatpush1.bf16.msra.mxu1 %v4334_v32  ;;  %v1160_v32 = vld [vmem:[%s6241_s15] sm:$0xf]  ;;  %4187 = vmatpush1.bf16.msra.mxu0 %v4186_v31  ;;  %s5478_s15 = scalar_lea.vmem %s3813_s3, 64 }
 0x185   :  { %4337 = vmatprep.subr.bf16.mxu1 %v4336_v33  ;;  %v4188_v33 = vpack.c.bf16 %v358_v30, %v350_v29  ;;  %v716_v29 = vld [vmem:[#allocation10 + $0x68] sm:$0xff]  ;;  %p5479_p6 = scmp.ne.s32.totalorder %s3813_s3, %s5478_s15  ;;  %p5484_p8 = scmp.lt.s32.totalorder %s5478_s15, %s5478_s15 }
 0x186   :  { %v4292_v31 = vpack.c.bf16 %v716_v29, %v708_v28  ;;  %v1264_v28 = vld [vmem:[#allocation11 + $0xc8] sm:$0xff]  ;;  %v1258_v29 = vld [vmem:[#allocation11 + $0x98] sm:$0xff] }
 0x187   :  { %4189 = vmatprep.subr.bf16.mxu0 %v4188_v33  ;;  %v715_v33 = vld [vmem:[#allocation10 + $0x60] sm:$0xff]  ;;  %p5485_p9 = por %p5484_p8, %p5483_p7 }
 0x188   :  { %4339 = vmatpush1.bf16.msra.mxu1 %v4338_v38  ;;  %v4190_v38 = vpack.c.bf16 %v357_v35, %v349_v34  ;;  %v724_v35 = vld [vmem:[#allocation10 + $0xa8] sm:$0xff] }
 0x189   :  { %4341 = vmatprep.subr.bf16.mxu1 %v4340_v39  ;;  %v4192_v39 = vpack.c.bf16 %v374_v37, %v366_v36  ;;  %v732_v36 = vld [vmem:[#allocation10 + $0xe8] sm:$0xff]  ;;  %p5486_p10 = pnand %p5485_p9, %p5479_p6 }
 0x18a   :  { %4191 = vmatpush1.bf16.msra.mxu0 %v4190_v38  ;;  %v4296_v37 = vpack.c.bf16 %v732_v36, %v724_v35  ;;  %v723_v38 = vld [vmem:[#allocation10 + $0xa0] sm:$0xff]  ;;  %v1257_v36 = vld [vmem:[#allocation11 + $0x90] sm:$0xff] }
 0x18b   :  { %4193 = vmatprep.subr.bf16.mxu0 %v4192_v39  ;;  %v731_v39 = vld [vmem:[#allocation10 + $0xe0] sm:$0xff] }
 0x18c   :  { %4343 = vmatpush1.bf16.msra.mxu1 %v4342_v44  ;;  %v4194_v44 = vpack.c.bf16 %v373_v41, %v365_v40  ;;  %v4298_v40 = vpack.c.bf16 %v731_v39, %v723_v38  ;;  %v740_v41 = vld [vmem:[#allocation10 + $0x128] sm:$0xff] }
 0x18d   :  { %4345 = vmatprep.subr.bf16.mxu1 %v4344_v45  ;;  %v4228_v45 = vpack.c.bf16 %v712_v43, %v704_v42  ;;  %v748_v42 = vld [vmem:[#allocation10 + $0x168] sm:$0xff] }
 0x18e   :  { %4195 = vmatpush1.bf16.msra.mxu0 %v4194_v44  ;;  %v4300_v43 = vpack.c.bf16 %v748_v42, %v740_v41  ;;  %v739_v44 = vld [vmem:[#allocation10 + $0x120] sm:$0xff]  ;;  %v1244_v39 = vld [vmem:[#allocation11 + $0x28] sm:$0xff]  ;;  %v1254_v42 = vld [vmem:[#allocation11 + $0x78] sm:$0xff] }
 0x18f   :  { %4229 = vmatprep.subr.bf16.mxu0 %v4228_v45  ;;  %v747_v45 = vld [vmem:[#allocation10 + $0x160] sm:$0xff] }
 0x190   :  { %4347 = vmatpush1.bf16.msra.mxu1 %v4346_v52  ;;  %v719_v52 = vld [vmem:[#allocation10 + $0x80] sm:$0xff]  ;;  %v4302_v47 = vpack.c.bf16 %v747_v45, %v739_v44 }
 0x191   :  { %4349 = vmatprep.subr.bf16.mxu1 %v4348_v57  ;;  %626 = vmatmul.mubr.f32.vlgmr.msra.gmra.mrb[2].mxu0 %v5861_v56  ;;  %v4234_v54 = vpack.c.bf16 %v727_v53, %v719_v52  ;;  %v744_v57 = vld [vmem:[#allocation10 + $0x148] sm:$0xff] }
 0x192   :  { %4231 = vmatpush1.bf16.msra.mxu0 %v4230_v48  ;;  %937 = vmatprep.mubr.f32.mxu0 %v5535_v0  ;;  %v4236_v58 = vpack.c.bf16 %v744_v57, %v736_v55  ;;  %v764_v48 = vld [vmem:[#allocation10 + $0x1e8] sm:$0xff]  ;;  %v771_v57 = vld [vmem:[#allocation10 + $0x220] sm:$0xff] }
 0x193   :  { %4233 = vmatprep.subr.bf16.mxu0 %v4232_v51  ;;  %v4304_v51 = vpack.c.bf16 %v764_v48, %v756_v46  ;;  %v772_v52 = vld [vmem:[#allocation10 + $0x228] sm:$0xff] }
 0x194   :  { %4351 = vmatpush1.bf16.msra.mxu1 %v4350_v4  ;;  %v768_v4 = vld [vmem:[#allocation10 + $0x208] sm:$0xff] }
 0x195   :  { %4353 = vmatprep.subr.bf16.mxu1 %v4352_v9  ;;  %v4244_v7 = vpack.c.bf16 %v776_v5, %v768_v4  ;;  %v775_v9 = vld [vmem:[#allocation10 + $0x240] sm:$0xff]  ;;  %v780_v53 = vld [vmem:[#allocation10 + $0x268] sm:$0xff] }
 0x196   :  { %4235 = vmatpush1.bf16.msra.mxu0 %v4234_v54  ;;  %v4246_v12 = vpack.c.bf16 %v775_v9, %v767_v8  ;;  %v4306_v54 = vpack.c.bf16 %v763_v50, %v755_v49  ;;  %v4308_v55 = vpack.c.bf16 %v780_v53, %v772_v52  ;;  %v1239_v5 = vld [vmem:[#allocation11] sm:$0xff] }
 0x197   :  { %4237 = vmatprep.subr.bf16.mxu0 %v4236_v58  ;;  %v779_v58 = vld [vmem:[#allocation10 + $0x260] sm:$0xff] }
 0x198   :  { %4355 = vmatpush1.bf16.msra.mxu1 %v4354_v18  ;;  %v4250_v18 = vpack.c.bf16 %v791_v15, %v783_v14  ;;  %v4310_v61 = vpack.c.bf16 %v779_v58, %v771_v57  ;;  %v1247_v8 = vld [vmem:[#allocation11 + $0x40] sm:$0xff]  ;;  %v820_v14 = vld [vmem:[#allocation10 + $0x3a8] sm:$0xff] }
 0x199   :  { %4025 = vmatprep.subr.mxu1 %v5535_v0  ;;  %v4358_v9 = vpack.c.bf16 %v1247_v8, %v1239_v5  ;;  %v828_v15 = vld [vmem:[#allocation10 + $0x3e8] sm:$0xff]  ;;  %v1243_v52 = vld [vmem:[#allocation11 + $0x20] sm:$0xff] }
 0x19a   :  { %4239 = vmatpush1.bf16.msra.mxu0 %v4238_v62  ;;  %v1240_v62 = vld [vmem:[#allocation11 + $0x8] sm:$0xff]  ;;  %v4320_v17 = vpack.c.bf16 %v828_v15, %v820_v14  ;;  %v1251_v53 = vld [vmem:[#allocation11 + $0x60] sm:$0xff] }
 0x19b   :  { %1151 = vmatmul.mubr.f32.vlgmr.msra.gmra.mrb[6].mxu1 %v5861_v56  ;;  %4241 = vmatprep.subr.bf16.mxu0 %v4240_v3  ;;  %v795_v3 = vld [vmem:[#allocation10 + $0x2e0] sm:$0xff]  ;;  %v4356_v4 = vpack.c.bf16 %v1248_v63, %v1240_v62  ;;  %v1260_v57 = vld [vmem:[#allocation11 + $0xa8] sm:$0xff]  ;;  %v4374_v63 = vpack.c.bf16 %v1251_v53, %v1243_v52 }
 0x19c   :  { %4026 = vmatpush3.msk.msra.mxu1 %vm1165_vm0, %v1159_v27  ;;  %4027 = vmatprep.mubr.msk.f32.mxu1 %vm5536_vm1, %v5535_v0  ;;  %v823_v27 = vld [vmem:[#allocation10 + $0x3c0] sm:$0xff]  ;;  %v4314_v10 = vpack.c.bf16 %v795_v3, %v787_v2  ;;  %v4376_v3 = vpack.c.bf16 %v1268_v59, %v1260_v57  ;;  %v1634_v57 = vld [vmem:[#allocation14 + $0xc8] sm:$0xff]  ;;  %v1636_v59 = vld [vmem:[#allocation14 + $0xd8] sm:$0xff] }
 0x19d   :  { %v4258_v30 = vpack.c.bf16 %v823_v27, %v815_v26  ;;  %4357 = vmatprep.subr.bf16.mxu1 %v4356_v4  ;;  %v1256_v27 = vld [vmem:[#allocation11 + $0x88] sm:$0xff]  ;;  %v1259_v2 = vld [vmem:[#allocation11 + $0xa0] sm:$0xff] }
 0x19e   :  { %4243 = vmatpush1.bf16.msra.mxu0 %v4242_v6  ;;  %v804_v6 = vld [vmem:[#allocation10 + $0x328] sm:$0xff]  ;;  %v1267_v5 = vld [vmem:[#allocation11 + $0xe0] sm:$0xff] }
 0x19f   :  { %4028 = vmatmul.mubr.msk.f32.vlgmr.msra.gmra.mrb[8].mxu1 %vm1161_vm2, %v1160_v32  ;;  %4245 = vmatprep.subr.bf16.mxu0 %v4244_v7  ;;  %v707_v32 = vld [vmem:[#allocation10 + $0x20] sm:$0xff]  ;;  %v812_v7 = vld [vmem:[#allocation10 + $0x368] sm:$0xff] }
 0x1a0   :  { %1381 = vmatprep.mubr.f32.mxu1 %v5535_v0  ;;  %v4294_v34 = vpack.c.bf16 %v715_v33, %v707_v32  ;;  %v4316_v11 = vpack.c.bf16 %v812_v7, %v804_v6  ;;  %4359 = vmatpush1.bf16.msra.mxu1 %v4358_v9  ;;  %v1255_v32 = vld [vmem:[#allocation11 + $0x80] sm:$0xff]  ;;  %v1261_v6 = vld [vmem:[#allocation11 + $0xb0] sm:$0xff]  ;;  %v1610_v9 = vld [vmem:[#allocation14 + $0x8] sm:$0xff] }
 0x1a1   :  { %v1263_v33 = vld [vmem:[#allocation11 + $0xc0] sm:$0xff]  ;;  %v1269_v7 = vld [vmem:[#allocation11 + $0xf0] sm:$0xff] }
 0x1a2   :  { %4247 = vmatpush1.bf16.msra.mxu0 %v4246_v12  ;;  %v803_v12 = vld [vmem:[#allocation10 + $0x320] sm:$0xff]  ;;  %v4362_v35 = vpack.c.bf16 %v1263_v33, %v1255_v32 }
 0x1a3   :  { %4249 = vmatprep.subr.bf16.mxu0 %v4248_v13  ;;  %v811_v13 = vld [vmem:[#allocation10 + $0x360] sm:$0xff] }
 0x1a4   :  { %v4318_v16 = vpack.c.bf16 %v811_v13, %v803_v12  ;;  %v4378_v12 = vpack.c.bf16 %v1267_v5, %v1259_v2  ;;  %v4386_v13 = vpack.c.bf16 %v1269_v7, %v1261_v6  ;;  %v1609_v15 = vld [vmem:[#allocation14] sm:$0xff]  ;;  %v1638_v2 = vld [vmem:[#allocation14 + $0xe8] sm:$0xff]  ;;  %v1639_v7 = vld [vmem:[#allocation14 + $0xf0] sm:$0xff] }
 0x1a5   :  { %v1637_v6 = vld [vmem:[#allocation14 + $0xe0] sm:$0xff] }
 0x1a6   :  { %4251 = vmatpush1.bf16.msra.mxu0 %v4250_v18  ;;  %v819_v18 = vld [vmem:[#allocation10 + $0x3a0] sm:$0xff] }
 0x1a7   :  { %4253 = vmatprep.subr.bf16.mxu0 %v4252_v19  ;;  %v827_v19 = vld [vmem:[#allocation10 + $0x3e0] sm:$0xff] }
 0x1a8   :  { %v4322_v22 = vpack.c.bf16 %v827_v19, %v819_v18  ;;  %v1616_v18 = vld [vmem:[#allocation14 + $0x38] sm:$0xff] }
 0x1aa   :  { %4255 = vmatpush1.bf16.msra.mxu0 %v4254_v24  ;;  %v1241_v24 = vld [vmem:[#allocation11 + $0x10] sm:$0xff] }
 0x1ab   :  { %4257 = vmatprep.subr.bf16.mxu0 %v4256_v25  ;;  %v1249_v25 = vld [vmem:[#allocation11 + $0x50] sm:$0xff] }
 0x1ac   :  { %v4366_v26 = vpack.c.bf16 %v1249_v25, %v1241_v24  ;;  %v1620_v24 = vld [vmem:[#allocation14 + $0x58] sm:$0xff] }
 0x1ae   :  { %4259 = vmatpush1.bf16.msra.mxu0 %v4258_v30  ;;  %v4360_v30 = vpack.c.bf16 %v1264_v28, %v1256_v27  ;;  %v1617_v27 = vld [vmem:[#allocation14 + $0x40] sm:$0xff]  ;;  %v1619_v28 = vld [vmem:[#allocation14 + $0x50] sm:$0xff] }
 0x1af   :  { %4293 = vmatprep.subr.bf16.mxu0 %v4292_v31  ;;  %v1266_v31 = vld [vmem:[#allocation11 + $0xd8] sm:$0xff]  ;;  %v4398_v33 = vpack.c.bf16 %v1619_v28, %v1617_v27 }
 0x1b0   :  { %4361 = vmatprep.subr.bf16.mxu1 %v4360_v30  ;;  %v1622_v30 = vld [vmem:[#allocation14 + $0x68] sm:$0xff] }
 0x1b1   :  { %938 = vmatmul.mubr.f32.vlgmr.msra.gmra.mrb[4].mxu0 %v5861_v56  ;;  %4363 = vmatpush1.bf16.msra.mxu1 %v4362_v35  ;;  %v1621_v35 = vld [vmem:[#allocation14 + $0x60] sm:$0xff] }
 0x1b2   :  { %4295 = vmatpush1.bf16.msra.mxu0 %v4294_v34  ;;  %1079 = vmatprep.mubr.f32.mxu0 %v5535_v0  ;;  %v4368_v34 = vpack.c.bf16 %v1266_v31, %v1258_v29  ;;  %v1624_v31 = vld [vmem:[#allocation14 + $0x78] sm:$0xff] }
 0x1b3   :  { %4297 = vmatprep.subr.bf16.mxu0 %v4296_v37  ;;  %v1265_v37 = vld [vmem:[#allocation11 + $0xd0] sm:$0xff] }
 0x1b4   :  { %v4370_v38 = vpack.c.bf16 %v1265_v37, %v1257_v36  ;;  %v1623_v36 = vld [vmem:[#allocation14 + $0x70] sm:$0xff]  ;;  %v1626_v37 = vld [vmem:[#allocation14 + $0x88] sm:$0xff] }
 0x1b6   :  { %4299 = vmatpush1.bf16.msra.mxu0 %v4298_v40  ;;  %v1246_v40 = vld [vmem:[#allocation11 + $0x38] sm:$0xff] }
 0x1b7   :  { %4301 = vmatprep.subr.bf16.mxu0 %v4300_v43  ;;  %v4380_v43 = vpack.c.bf16 %v1254_v42, %v1246_v40  ;;  %v1625_v40 = vld [vmem:[#allocation14 + $0x80] sm:$0xff]  ;;  %v1630_v42 = vld [vmem:[#allocation14 + $0xa8] sm:$0xff] }
 0x1ba   :  { %4303 = vmatpush1.bf16.msra.mxu0 %v4302_v47 }
 0x1bb   :  { %4305 = vmatprep.subr.bf16.mxu0 %v4304_v51 }
 0x1be   :  { %4307 = vmatpush1.bf16.msra.mxu0 %v4306_v54  ;;  %v1245_v54 = vld [vmem:[#allocation11 + $0x30] sm:$0xff] }
 0x1bf   :  { %4309 = vmatprep.subr.bf16.mxu0 %v4308_v55  ;;  %v1253_v55 = vld [vmem:[#allocation11 + $0x70] sm:$0xff] }
 0x1c2   :  { %4311 = vmatpush1.bf16.msra.mxu0 %v4310_v61  ;;  %v1270_v61 = vld [vmem:[#allocation11 + $0xf8] sm:$0xff] }
 0x1c3   :  { %4313 = vmatprep.subr.bf16.mxu0 %v4312_v1  ;;  %v4382_v1 = vpack.c.bf16 %v1253_v55, %v1245_v54  ;;  %v4384_v4 = vpack.c.bf16 %v1270_v61, %v1262_v60  ;;  %v1629_v54 = vld [vmem:[#allocation14 + $0xa0] sm:$0xff]  ;;  %v1631_v55 = vld [vmem:[#allocation14 + $0xb0] sm:$0xff]  ;;  %v4412_v61 = vpack.c.bf16 %v1636_v59, %v1634_v57  ;;  %v1664_v57 = vld [vmem:[#allocation14 + $0x1b8] sm:$0xff] }
 0x1c4   :  { %v4410_v60 = vpack.c.bf16 %v1631_v55, %v1629_v54  ;;  %v1659_v54 = vld [vmem:[#allocation14 + $0x190] sm:$0xff]  ;;  %v1662_v55 = vld [vmem:[#allocation14 + $0x1a8] sm:$0xff] }
 0x1c6   :  { %4315 = vmatpush1.bf16.msra.mxu0 %v4314_v10  ;;  %v1612_v10 = vld [vmem:[#allocation14 + $0x18] sm:$0xff] }
 0x1c7   :  { %4317 = vmatprep.subr.bf16.mxu0 %v4316_v11  ;;  %v4388_v14 = vpack.c.bf16 %v1612_v10, %v1610_v9  ;;  %v1642_v9 = vld [vmem:[#allocation14 + $0x108] sm:$0xff]  ;;  %v1644_v10 = vld [vmem:[#allocation14 + $0x118] sm:$0xff] }
 0x1ca   :  { %4319 = vmatpush1.bf16.msra.mxu0 %v4318_v16  ;;  %v1611_v16 = vld [vmem:[#allocation14 + $0x10] sm:$0xff] }
 0x1cb   :  { %4321 = vmatprep.subr.bf16.mxu0 %v4320_v17  ;;  %v1614_v17 = vld [vmem:[#allocation14 + $0x28] sm:$0xff]  ;;  %v4390_v19 = vpack.c.bf16 %v1611_v16, %v1609_v15 }
 0x1cc   :  { %v4392_v20 = vpack.c.bf16 %v1616_v18, %v1614_v17  ;;  %v1646_v16 = vld [vmem:[#allocation14 + $0x128] sm:$0xff]  ;;  %v1648_v17 = vld [vmem:[#allocation14 + $0x138] sm:$0xff] }
 0x1ce   :  { %4323 = vmatpush1.bf16.msra.mxu0 %v4322_v22  ;;  %v1615_v22 = vld [vmem:[#allocation14 + $0x30] sm:$0xff] }
 0x1cf   :  { %4365 = vmatprep.subr.bf16.mxu0 %v4364_v23  ;;  %v1618_v23 = vld [vmem:[#allocation14 + $0x48] sm:$0xff]  ;;  %v4394_v25 = vpack.c.bf16 %v1615_v22, %v1613_v21  ;;  %v4424_v21 = vpack.c.bf16 %v1648_v17, %v1646_v16  ;;  %v1645_v22 = vld [vmem:[#allocation14 + $0x120] sm:$0xff]  ;;  %v1671_v16 = vld [vmem:[#allocation14 + $0x1f0] sm:$0xff] }
 0x1d1   :  { %1080 = vmatmul.mubr.f32.vlgmr.msra.gmra.mrb[6].mxu0 %v5861_v56  ;;  %v1252_v56 = vld [vmem:[#allocation11 + $0x68] sm:$0xff] }
 0x1d2   :  { %4367 = vmatpush1.bf16.msra.mxu0 %v4366_v26  ;;  %1452 = vmatprep.mubr.f32.mxu0 %v5535_v0  ;;  %v4372_v41 = vpack.c.bf16 %v1252_v56, %v1244_v39  ;;  %v4396_v26 = vpack.c.bf16 %v1620_v24, %v1618_v23  ;;  %v4402_v39 = vpack.c.bf16 %v1623_v36, %v1621_v35  ;;  %v1647_v23 = vld [vmem:[#allocation14 + $0x130] sm:$0xff]  ;;  %v1650_v24 = vld [vmem:[#allocation14 + $0x148] sm:$0xff]  ;;  %v1656_v35 = vld [vmem:[#allocation14 + $0x178] sm:$0xff] }
 0x1d3   :  { %4369 = vmatprep.subr.bf16.mxu0 %v4368_v34  ;;  %v4400_v34 = vpack.c.bf16 %v1624_v31, %v1622_v30  ;;  %v4426_v27 = vpack.c.bf16 %v1647_v23, %v1645_v22  ;;  %v1649_v30 = vld [vmem:[#allocation14 + $0x140] sm:$0xff]  ;;  %v1651_v31 = vld [vmem:[#allocation14 + $0x150] sm:$0xff] }
 0x1d4   :  { %4373 = vmatprep.subr.bf16.mxu1 %v4372_v41  ;;  %v1627_v41 = vld [vmem:[#allocation14 + $0x90] sm:$0xff] }
 0x1d5   :  { %v4406_v52 = vpack.c.bf16 %v1627_v41, %v1625_v40  ;;  %v1655_v40 = vld [vmem:[#allocation14 + $0x170] sm:$0xff]  ;;  %v1658_v41 = vld [vmem:[#allocation14 + $0x188] sm:$0xff] }
 0x1d6   :  { %4371 = vmatpush1.bf16.msra.mxu0 %v4370_v38  ;;  %v1628_v38 = vld [vmem:[#allocation14 + $0x98] sm:$0xff] }
 0x1d7   :  { %4381 = vmatprep.subr.bf16.mxu0 %v4380_v43  ;;  %v4404_v56 = vpack.c.bf16 %v1628_v38, %v1626_v37  ;;  %v1632_v43 = vld [vmem:[#allocation14 + $0xb8] sm:$0xff]  ;;  %v4430_v38 = vpack.c.bf16 %v1651_v31, %v1649_v30 }
 0x1d8   :  { %v4408_v53 = vpack.c.bf16 %v1632_v43, %v1630_v42  ;;  %v1660_v42 = vld [vmem:[#allocation14 + $0x198] sm:$0xff] }
 0x20e   :  { %v5885_v44 = vpop.f32.mrb[0].mxu1 }
 0x20f   :  { %v5887_v45 = vpop.f32.mrb[1].mxu1 }
 0x228   :  { %v5893_v48 = vpop.f32.mrb[0].mxu0 }
 0x229   :  { %v5895_v49 = vpop.f32.mrb[1].mxu0 }
 0x22e   :  { %v5889_v46 = vpop.f32.mrb[2].mxu1 }
 0x22f   :  { %v5891_v47 = vpop.f32.mrb[3].mxu1 }
 0x24e   :  { %v5897_v50 = vpop.f32.mrb[4].mxu1 }
 0x24f   :  { %v5899_v51 = vpop.f32.mrb[5].mxu1 }
 0x264   :  { %v5912_v29 = vpop.f32.mrb[2].mxu0 }
 0x265   :  { %v5914_v32 = vpop.f32.mrb[3].mxu0 }
 0x26e   :  { %v5901_v58 = vpop.f32.mrb[6].mxu1 }
 0x26f   :  { %v5903_v62 = vpop.f32.mrb[7].mxu1 }
 0x272   :  { %v1235_v8 = vpop.f32.mrb[8].mxu1 }
 0x273   :  { %v4029_v11 = vpop.f32.mrb[9].mxu1  ;;  %3829 = vmatmul.mubr.msk.f32.vlgmr.msra.gmra.mrb[10].mxu1 %vm1313_vm3, %v1235_v8  ;;  %3830 = vmatmul.mubr.msk.f32.vlgmr.msra.gmra.mrb[8].mxu0 %vm1313_vm3, %v1235_v8 }
 0x274   :  { %4375 = vmatpush1.bf16.msra.mxu1 %v4374_v63  ;;  %4383 = vmatpush1.bf16.msra.mxu0 %v4382_v1  ;;  %v1633_v63 = vld [vmem:[#allocation14 + $0xc0] sm:$0xff]  ;;  %v1635_v1 = vld [vmem:[#allocation14 + $0xd0] sm:$0xff]  ;;  %v4418_v11 = vpack.c.bf16 %v1639_v7, %v1637_v6 }
 0x275   :  { %4377 = vmatprep.subr.bf16.mxu1 %v4376_v3  ;;  %4385 = vmatprep.subr.bf16.mxu0 %v4384_v4  ;;  %v1640_v3 = vld [vmem:[#allocation14 + $0xf8] sm:$0xff]  ;;  %v4414_v4 = vpack.c.bf16 %v1635_v1, %v1633_v63  ;;  %v1663_v63 = vld [vmem:[#allocation14 + $0x1b0] sm:$0xff]  ;;  %v1666_v1 = vld [vmem:[#allocation14 + $0x1c8] sm:$0xff] }
 0x276   :  { %1523 = vmatprep.mubr.f32.mxu1 %v5535_v0  ;;  %1594 = vmatprep.mubr.f32.mxu0 %v5535_v0  ;;  %v4416_v5 = vpack.c.bf16 %v1640_v3, %v1638_v2  ;;  %v1668_v2 = vld [vmem:[#allocation14 + $0x1d8] sm:$0xff]  ;;  %v1667_v6 = vld [vmem:[#allocation14 + $0x1d0] sm:$0xff] }
 0x278   :  { %4379 = vmatpush1.bf16.msra.mxu1 %v4378_v12  ;;  %4387 = vmatpush1.bf16.msra.mxu0 %v4386_v13  ;;  %v4420_v12 = vpack.c.bf16 %v1644_v10, %v1642_v9  ;;  %v1641_v13 = vld [vmem:[#allocation14 + $0x100] sm:$0xff] }
 0x279   :  { %4389 = vmatprep.subr.bf16.mxu1 %v4388_v14  ;;  %v1643_v14 = vld [vmem:[#allocation14 + $0x110] sm:$0xff] }
 0x27b   :  { %3831 = vmatmul.mubr.msk.f32.vlgmr.msra.gmra.mrb[12].mxu1 %vm1313_vm3, %v1235_v8  ;;  %3832 = vmatmul.mubr.msk.f32.vlgmr.msra.gmra.mrb[10].mxu0 %vm1313_vm3, %v1235_v8  ;;  %v379_v8 = vlaneseq }
 0x27c   :  { %4391 = vmatpush1.bf16.msra.mxu1 %v4390_v19  ;;  %2225 = vmatprep.mubr.f32.mxu0 %v5535_v0  ;;  %v4422_v19 = vpack.c.bf16 %v1643_v14, %v1641_v13  ;;  %v1669_v14 = vld [vmem:[#allocation14 + $0x1e0] sm:$0xff] }
 0x27d   :  { %4393 = vmatprep.subr.bf16.mxu1 %v4392_v20  ;;  %v5917_v15 = vshrl.u32 %v379_v8, 7  ;;  %v831_v20 = vld [vmem:[%s6282_s4] sm:$0xff]  ;;  %v4450_v17 = vpack.c.bf16 %v1671_v16, %v1669_v14 }
 0x27e   :  { %v1679_v14 = vld [vmem:[#allocation14 + $0x230] sm:$0xff] }
 0x27f   :  { %v5920_v18 = vsub.s32 0, %v5917_v15  ;;  %v5935_v22 = vsub.s32 2, %v5917_v15  ;;  %v5938_v23 = vsub.s32 3, %v5917_v15 }
 0x280   :  { %4395 = vmatpush1.bf16.msra.mxu1 %v4394_v25  ;;  %v1652_v25 = vld [vmem:[#allocation14 + $0x158] sm:$0xff] }
 0x281   :  { %4397 = vmatprep.subr.bf16.mxu1 %v4396_v26  ;;  %v836_v26 = vrot.slane %v831_v20, %v5920_v18  ;;  %v4428_v28 = vpack.c.bf16 %v1652_v25, %v1650_v24  ;;  %v1676_v20 = vld [vmem:[#allocation14 + $0x218] sm:$0xff]  ;;  %v5946_v25 = vsub.s32 1, %v5917_v15 }
 0x282   :  { %v5943_v24 = vld [vmem:[%s6283_s0] sm:$0xff] }
 0x283   :  { %v382_v30 = vrot.slane %v5943_v24, %v5920_v18 }
 0x284   :  { %4399 = vmatpush1.bf16.msra.mxu1 %v4398_v33  ;;  %v939_v33 = vpop.f32.mrb[4].mxu0 }
 0x285   :  { %4401 = vmatprep.subr.bf16.mxu1 %v4400_v34  ;;  %v1654_v34 = vld [vmem:[#allocation14 + $0x168] sm:$0xff]  ;;  %v5926_v36 = vadd.f32 %v939_v33, %v836_v26  ;;  %v5928_v37 = vpop.f32.mrb[5].mxu0  ;;  %v5951_v26 = vld [vmem:[%s6284_s7] sm:$0xff] }
 0x286   :  { %v1276_v31 = vrot.slane %v5951_v26, %v5920_v18  ;;  %v1284_v33 = vrot.slane %v5951_v26, %v5935_v22  ;;  %v5975_v18 = vsub.s32 7, %v5917_v15 }
 0x288   :  { %4403 = vmatpush1.bf16.msra.mxu1 %v4402_v39  ;;  %v4432_v39 = vpack.c.bf16 %v1656_v35, %v1654_v34  ;;  %v386_v34 = vrot.slane %v5943_v24, %v5946_v25  ;;  %v1280_v35 = vrot.slane %v5951_v26, %v5946_v25  ;;  %v410_v16 = vrot.slane %v5943_v24, %v5975_v18 }
 0x289   :  { %4405 = vmatprep.subr.bf16.mxu1 %v4404_v56  ;;  %v1653_v56 = vld [vmem:[#allocation14 + $0x160] sm:$0xff] }
 0x28a   :  { %v4434_v43 = vpack.c.bf16 %v1655_v40, %v1653_v56  ;;  %v5972_v40 = vsub.s32 6, %v5917_v15 }
 0x28c   :  { %4407 = vmatpush1.bf16.msra.mxu1 %v4406_v52  ;;  %v4436_v52 = vpack.c.bf16 %v1660_v42, %v1658_v41 }
 0x28d   :  { %4409 = vmatprep.subr.bf16.mxu1 %v4408_v53  ;;  %v1657_v53 = vld [vmem:[#allocation14 + $0x180] sm:$0xff] }
 0x28e   :  { %v4438_v59 = vpack.c.bf16 %v1659_v54, %v1657_v53 }
 0x290   :  { %4411 = vmatpush1.bf16.msra.mxu1 %v4410_v60  ;;  %v4440_v60 = vpack.c.bf16 %v1664_v57, %v1662_v55 }
 0x291   :  { %4413 = vmatprep.subr.bf16.mxu1 %v4412_v61  ;;  %v1661_v61 = vld [vmem:[#allocation14 + $0x1a0] sm:$0xff] }
 0x292   :  { %v4442_v3 = vpack.c.bf16 %v1663_v63, %v1661_v61 }
 0x294   :  { %4415 = vmatpush1.bf16.msra.mxu1 %v4414_v4  ;;  %v4444_v4 = vpack.c.bf16 %v1668_v2, %v1666_v1  ;;  %v1678_v1 = vld [vmem:[#allocation14 + $0x228] sm:$0xff]  ;;  %v1680_v2 = vld [vmem:[#allocation14 + $0x238] sm:$0xff] }
 0x295   :  { %4417 = vmatprep.subr.bf16.mxu1 %v4416_v5  ;;  %v1665_v5 = vld [vmem:[#allocation14 + $0x1c0] sm:$0xff] }
 0x296   :  { %v4446_v7 = vpack.c.bf16 %v1667_v6, %v1665_v5 }
 0x298   :  { %4419 = vmatpush1.bf16.msra.mxu1 %v4418_v11  ;;  %v1670_v11 = vld [vmem:[#allocation14 + $0x1e8] sm:$0xff] }
 0x299   :  { %4421 = vmatprep.subr.bf16.mxu1 %v4420_v12  ;;  %v1672_v12 = vld [vmem:[#allocation14 + $0x1f8] sm:$0xff] }
 0x29a   :  { %v4448_v13 = vpack.c.bf16 %v1672_v12, %v1670_v11  ;;  %v4456_v12 = vpack.c.bf16 %v1680_v2, %v1678_v1  ;;  %v1690_v1 = vld [vmem:[#allocation14 + $0x288] sm:$0xff] }
 0x29c   :  { %4423 = vmatpush1.bf16.msra.mxu1 %v4422_v19  ;;  %v1674_v19 = vld [vmem:[#allocation14 + $0x208] sm:$0xff] }
 0x29d   :  { %4425 = vmatprep.subr.bf16.mxu1 %v4424_v21  ;;  %v4452_v21 = vpack.c.bf16 %v1676_v20, %v1674_v19  ;;  %v1304_v20 = vrot.slane %v5951_v26, %v5975_v18 }
 0x2a0   :  { %4427 = vmatpush1.bf16.msra.mxu1 %v4426_v27  ;;  %v390_v27 = vrot.slane %v5943_v24, %v5935_v22 }
 0x2a1   :  { %4429 = vmatprep.subr.bf16.mxu1 %v4428_v28  ;;  %v394_v28 = vrot.slane %v5943_v24, %v5938_v23 }
 0x2a3   :  { %v559_v56 = vadd.f32 %v5887_v45, %v394_v28  ;;  %v488_v45 = vadd.f32 %v5895_v49, %v386_v34 }
 0x2a4   :  { %4431 = vmatpush1.bf16.msra.mxu1 %v4430_v38  ;;  %v5930_v9 = vpop.f32.mrb[6].mxu0  ;;  %v1288_v38 = vrot.slane %v5951_v26, %v5938_v23 }
 0x2a5   :  { %4433 = vmatprep.subr.bf16.mxu1 %v4432_v39  ;;  %v5932_v10 = vpop.f32.mrb[7].mxu0  ;;  %v557_v39 = vadd.f32 %v5885_v44, %v390_v27  ;;  %v1673_v44 = vld [vmem:[#allocation14 + $0x200] sm:$0xff]  ;;  %v1684_v27 = vld [vmem:[#allocation14 + $0x258] sm:$0xff] }
 0x2a8   :  { %4435 = vmatpush1.bf16.msra.mxu1 %v4434_v43  ;;  %v486_v43 = vadd.f32 %v5893_v48, %v382_v30 }
 0x2a9   :  { %4437 = vmatprep.subr.bf16.mxu1 %v4436_v52  ;;  %v5979_v52 = vsub.s32 4, %v5917_v15 }
 0x2ab   :  { %v398_v11 = vrot.slane %v5943_v24, %v5979_v52  ;;  %v1292_v49 = vrot.slane %v5951_v26, %v5979_v52 }
 0x2ac   :  { %4439 = vmatpush1.bf16.msra.mxu1 %v4438_v59  ;;  %v1675_v59 = vld [vmem:[#allocation14 + $0x210] sm:$0xff] }
 0x2ad   :  { %4441 = vmatprep.subr.bf16.mxu1 %v4440_v60  ;;  %v5983_v60 = vsub.s32 5, %v5917_v15  ;;  %v1300_v15 = vrot.slane %v5951_v26, %v5972_v40  ;;  %v628_v34 = vadd.f32 %v5912_v29, %v398_v11 }
 0x2af   :  { %v1296_v19 = vrot.slane %v5951_v26, %v5983_v60  ;;  %v1683_v26 = vld [vmem:[#allocation14 + $0x250] sm:$0xff] }
 0x2b0   :  { %4443 = vmatpush1.bf16.msra.mxu1 %v4442_v3 }
 0x2b1   :  { %4445 = vmatprep.subr.bf16.mxu1 %v4444_v4  ;;  %v406_v4 = vrot.slane %v5943_v24, %v5972_v40 }
 0x2b3   :  { %v699_v28 = vadd.f32 %v5889_v46, %v406_v4  ;;  %v1689_v4 = vld [vmem:[#allocation14 + $0x280] sm:$0xff] }
 0x2b4   :  { %4447 = vmatpush1.bf16.msra.mxu1 %v4446_v7  ;;  %v4454_v7 = vpack.c.bf16 %v1675_v59, %v1673_v44 }
 0x2b5   :  { %4449 = vmatprep.subr.bf16.mxu1 %v4448_v13  ;;  %v1677_v13 = vld [vmem:[#allocation14 + $0x220] sm:$0xff] }
 0x2b8   :  { %4451 = vmatpush1.bf16.msra.mxu1 %v4450_v17  ;;  %v402_v17 = vrot.slane %v5943_v24, %v5983_v60 }
 0x2b9   :  { %4453 = vmatprep.subr.bf16.mxu1 %v4452_v21  ;;  %v1682_v21 = vld [vmem:[#allocation14 + $0x248] sm:$0xff] }
 0x346   :  { %v1383_v41 = vpop.f32.mrb[10].mxu1  ;;  %v1454_v42 = vpop.f32.mrb[8].mxu0 }
 0x347   :  { %v1384_v53 = vadd.f32 %v1383_v41, %v1276_v31  ;;  %v1455_v54 = vadd.f32 %v1454_v42, %v1284_v33  ;;  %v1385_v55 = vpop.f32.mrb[11].mxu1  ;;  %v1456_v57 = vpop.f32.mrb[9].mxu0  ;;  %v4458_v33 = vpack.c.bf16 %v1679_v14, %v1677_v13  ;;  %v1681_v41 = vld [vmem:[#allocation14 + $0x240] sm:$0xff]  ;;  %v701_v42 = vadd.f32 %v5891_v47, %v410_v16  ;;  %v1687_v47 = vld [vmem:[#allocation14 + $0x270] sm:$0xff]  ;;  %v1698_v13 = vld [vmem:[#allocation14 + $0x2c8] sm:$0xff] }
 0x348   :  { %v1386_v61 = vadd.f32 %v1385_v55, %v1280_v35  ;;  %v1457_v63 = vadd.f32 %v1456_v57, %v1288_v38  ;;  %v1688_v55 = vld [vmem:[#allocation14 + $0x278] sm:$0xff] }
 0x349   :  { %v1601_v3 = vmul.f32 %v1384_v53, %v486_v43  ;;  %v5985_v48 = vmul.f32 %v1455_v54, %v557_v39  ;;  %v630_v43 = vadd.f32 %v5914_v32, %v402_v17  ;;  %v1686_v54 = vld [vmem:[#allocation14 + $0x268] sm:$0xff]  ;;  %v1692_v32 = vld [vmem:[#allocation14 + $0x298] sm:$0xff] }
 0x34a   :  { %v1602_v5 = vmul.f32 %v1386_v61, %v488_v45  ;;  %v1604_v6 = vmul.f32 %v1457_v63, %v559_v56  ;;  %v4460_v56 = vpack.c.bf16 %v1684_v27, %v1682_v21  ;;  %v4462_v45 = vpack.c.bf16 %v1683_v26, %v1681_v41  ;;  %v1685_v63 = vld [vmem:[#allocation14 + $0x260] sm:$0xff]  ;;  %v1700_v14 = vld [vmem:[#allocation14 + $0x2d8] sm:$0xff]  ;;  %v1702_v21 = vld [vmem:[#allocation14 + $0x2e8] sm:$0xff] }
 0x34b   :  { %v4464_v61 = vpack.c.bf16 %v1688_v55, %v1686_v54  ;;  %v4466_v2 = vpack.c.bf16 %v1687_v47, %v1685_v63  ;;  %v4476_v17 = vpack.c.bf16 %v1700_v14, %v1698_v13  ;;  %v1704_v27 = vld [vmem:[#allocation14 + $0x2f8] sm:$0xff]  ;;  %v1710_v41 = vld [vmem:[#allocation14 + $0x328] sm:$0xff]  ;;  %v1713_v63 = vld [vmem:[#allocation14 + $0x340] sm:$0xff] }
 0x34c   :  { %1929 = vmatprep.mubr.f32.mxu1 %v1602_v5  ;;  %v1691_v5 = vld [vmem:[#allocation14 + $0x290] sm:$0xff]  ;;  %v1712_v26 = vld [vmem:[#allocation14 + $0x338] sm:$0xff]  ;;  %v1714_v54 = vld [vmem:[#allocation14 + $0x348] sm:$0xff] }
 0x34d   :  { %1930 = vmatmul.mubr.f32.vlgmr.msra.gmra.mrb[14].mxu1 %v1601_v3  ;;  %v4468_v3 = vpack.c.bf16 %v1692_v32, %v1690_v1  ;;  %v4470_v11 = vpack.c.bf16 %v1691_v5, %v1689_v4  ;;  %v1716_v55 = vld [vmem:[#allocation14 + $0x358] sm:$0xff]  ;;  %v1715_v47 = vld [vmem:[#allocation14 + $0x350] sm:$0xff]  ;;  %v1718_v1 = vld [vmem:[#allocation14 + $0x368] sm:$0xff] }
 0x34e   :  { %v1525_v30 = vpop.f32.mrb[12].mxu1  ;;  %v1596_v31 = vpop.f32.mrb[10].mxu0  ;;  %4455 = vmatpush1.bf16.msra.mxu1 %v4454_v7  ;;  %2000 = vmatprep.mubr.f32.mxu1 %v1604_v6  ;;  %v1694_v6 = vld [vmem:[#allocation14 + $0x2a8] sm:$0xff]  ;;  %v1696_v7 = vld [vmem:[#allocation14 + $0x2b8] sm:$0xff]  ;;  %v1717_v4 = vld [vmem:[#allocation14 + $0x360] sm:$0xff] }
 0x34f   :  { %v1526_v24 = vadd.f32 %v1525_v30, %v1292_v49  ;;  %v1597_v35 = vadd.f32 %v1596_v31, %v1300_v15  ;;  %v1527_v38 = vpop.f32.mrb[13].mxu1  ;;  %v1598_v39 = vpop.f32.mrb[11].mxu0  ;;  %4457 = vmatprep.subr.bf16.mxu1 %v4456_v12  ;;  %v4472_v49 = vpack.c.bf16 %v1696_v7, %v1694_v6  ;;  %v1693_v15 = vld [vmem:[#allocation14 + $0x2a0] sm:$0xff]  ;;  %v1695_v12 = vld [vmem:[#allocation14 + $0x2b0] sm:$0xff]  ;;  %v4480_v30 = vpack.c.bf16 %v1704_v27, %v1702_v21  ;;  %v1720_v32 = vld [vmem:[#allocation14 + $0x378] sm:$0xff] }
 0x350   :  { %v1528_v46 = vadd.f32 %v1527_v38, %v1296_v19  ;;  %v1599_v53 = vadd.f32 %v1598_v39, %v1304_v20  ;;  %v4474_v16 = vpack.c.bf16 %v1695_v12, %v1693_v15  ;;  %v1697_v19 = vld [vmem:[#allocation14 + $0x2c0] sm:$0xff]  ;;  %v1699_v20 = vld [vmem:[#allocation14 + $0x2d0] sm:$0xff]  ;;  %v1722_v6 = vld [vmem:[#allocation14 + $0x388] sm:$0xff] }
 0x351   :  { %v6007_v57 = vmul.f32 %v1526_v24, %v628_v34  ;;  %v6009_v44 = vmul.f32 %v1597_v35, %v699_v28  ;;  %v4478_v28 = vpack.c.bf16 %v1699_v20, %v1697_v19  ;;  %v1701_v31 = vld [vmem:[#allocation14 + $0x2e0] sm:$0xff]  ;;  %v1706_v34 = vld [vmem:[#allocation14 + $0x308] sm:$0xff]  ;;  %v1708_v24 = vld [vmem:[#allocation14 + $0x318] sm:$0xff] }
 0x352   :  { %v6011_v29 = vmul.f32 %v1528_v46, %v630_v43  ;;  %v6013_v59 = vmul.f32 %v1599_v53, %v701_v42  ;;  %4459 = vmatpush1.bf16.msra.mxu1 %v4458_v33  ;;  %v1703_v33 = vld [vmem:[#allocation14 + $0x2f0] sm:$0xff]  ;;  %v4484_v38 = vpack.c.bf16 %v1708_v24, %v1706_v34  ;;  %v1705_v39 = vld [vmem:[#allocation14 + $0x300] sm:$0xff]  ;;  %v4488_v43 = vpack.c.bf16 %v1712_v26, %v1710_v41  ;;  %v1724_v7 = vld [vmem:[#allocation14 + $0x398] sm:$0xff] }
 0x353   :  { %4461 = vmatprep.subr.bf16.mxu1 %v4460_v56  ;;  %v4482_v35 = vpack.c.bf16 %v1703_v33, %v1701_v31  ;;  %v1707_v56 = vld [vmem:[#allocation14 + $0x310] sm:$0xff]  ;;  %v1709_v46 = vld [vmem:[#allocation14 + $0x320] sm:$0xff]  ;;  %v1726_v13 = vld [vmem:[#allocation14 + $0x3a8] sm:$0xff] }
 0x354   :  { %v4486_v42 = vpack.c.bf16 %v1707_v56, %v1705_v39  ;;  %v1711_v53 = vld [vmem:[#allocation14 + $0x330] sm:$0xff]  ;;  %v1721_v15 = vld [vmem:[#allocation14 + $0x380] sm:$0xff]  ;;  %v1728_v14 = vld [vmem:[#allocation14 + $0x3b8] sm:$0xff] }
 0x355   :  { %v1719_v5 = vld [vmem:[#allocation14 + $0x370] sm:$0xff]  ;;  %v1725_v19 = vld [vmem:[#allocation14 + $0x3a0] sm:$0xff]  ;;  %v1730_v21 = vld [vmem:[#allocation14 + $0x3c8] sm:$0xff] }
 0x356   :  { %4463 = vmatpush1.bf16.msra.mxu1 %v4462_v45  ;;  %v4490_v45 = vpack.c.bf16 %v1711_v53, %v1709_v46  ;;  %v1723_v12 = vld [vmem:[#allocation14 + $0x390] sm:$0xff]  ;;  %v1732_v27 = vld [vmem:[#allocation14 + $0x3d8] sm:$0xff]  ;;  %v1729_v31 = vld [vmem:[#allocation14 + $0x3c0] sm:$0xff] }
 0x357   :  { %4465 = vmatprep.subr.bf16.mxu1 %v4464_v61  ;;  %v4492_v61 = vpack.c.bf16 %v1716_v55, %v1714_v54  ;;  %v1727_v20 = vld [vmem:[#allocation14 + $0x3b0] sm:$0xff]  ;;  %v1734_v34 = vld [vmem:[#allocation14 + $0x3e8] sm:$0xff]  ;;  %v1736_v24 = vld [vmem:[#allocation14 + $0x3f8] sm:$0xff] }
 0x358   :  { %v1731_v33 = vld [vmem:[#allocation14 + $0x3d0] sm:$0xff]  ;;  %v2150_v56 = vld [vmem:[#allocation13] sm:$0xff]  ;;  %v1738_v54 = vld [vmem:[#allocation14 + $0x408] sm:$0xff] }
 0x359   :  { %v2152_v41 = vld [vmem:[#allocation13 + $0x10] sm:$0xff]  ;;  %v4510_v26 = vpack.c.bf16 %v1731_v33, %v1729_v31  ;;  %v1733_v46 = vld [vmem:[#allocation14 + $0x3e0] sm:$0xff]  ;;  %v1740_v55 = vld [vmem:[#allocation14 + $0x418] sm:$0xff] }
 0x35a   :  { %4467 = vmatpush1.bf16.msra.mxu1 %v4466_v2  ;;  %v4494_v2 = vpack.c.bf16 %v1715_v47, %v1713_v63  ;;  %v1735_v53 = vld [vmem:[#allocation14 + $0x3f0] sm:$0xff]  ;;  %v2154_v47 = vld [vmem:[#allocation13 + $0x20] sm:$0xff] }
 0x35b   :  { %4469 = vmatprep.subr.bf16.mxu1 %v4468_v3  ;;  %v4496_v3 = vpack.c.bf16 %v1720_v32, %v1718_v1  ;;  %v2156_v1 = vld [vmem:[#allocation13 + $0x30] sm:$0xff]  ;;  %v4514_v32 = vpack.c.bf16 %v1735_v53, %v1733_v46  ;;  %v1749_v33 = vld [vmem:[#allocation14 + $0x460] sm:$0xff]  ;;  %v1762_v53 = vld [vmem:[#allocation14 + $0x4c8] sm:$0xff] }
 0x35c   :  { %v1759_v46 = vld [vmem:[#allocation14 + $0x4b0] sm:$0xff] }
 0x35e   :  { %4471 = vmatpush1.bf16.msra.mxu1 %v4470_v11  ;;  %v4498_v11 = vpack.c.bf16 %v1719_v5, %v1717_v4  ;;  %v1737_v4 = vld [vmem:[#allocation14 + $0x400] sm:$0xff]  ;;  %v1739_v5 = vld [vmem:[#allocation14 + $0x410] sm:$0xff] }
 0x35f   :  { %4473 = vmatprep.subr.bf16.mxu1 %v4472_v49  ;;  %v4500_v49 = vpack.c.bf16 %v1724_v7, %v1722_v6  ;;  %v1742_v6 = vld [vmem:[#allocation14 + $0x428] sm:$0xff]  ;;  %v1744_v7 = vld [vmem:[#allocation14 + $0x438] sm:$0xff] }
 0x362   :  { %4475 = vmatpush1.bf16.msra.mxu1 %v4474_v16  ;;  %v4502_v16 = vpack.c.bf16 %v1723_v12, %v1721_v15  ;;  %v4520_v15 = vpack.c.bf16 %v1744_v7, %v1742_v6  ;;  %v1741_v12 = vld [vmem:[#allocation14 + $0x420] sm:$0xff]  ;;  %v1772_v6 = vld [vmem:[#allocation14 + $0x518] sm:$0xff] }
 0x363   :  { %4477 = vmatprep.subr.bf16.mxu1 %v4476_v17  ;;  %v4504_v17 = vpack.c.bf16 %v1728_v14, %v1726_v13  ;;  %v1743_v13 = vld [vmem:[#allocation14 + $0x430] sm:$0xff]  ;;  %v1746_v14 = vld [vmem:[#allocation14 + $0x448] sm:$0xff] }
 0x366   :  { %4479 = vmatpush1.bf16.msra.mxu1 %v4478_v28  ;;  %v4506_v28 = vpack.c.bf16 %v1727_v20, %v1725_v19  ;;  %v1745_v20 = vld [vmem:[#allocation14 + $0x440] sm:$0xff] }
 0x367   :  { %4481 = vmatprep.subr.bf16.mxu1 %v4480_v30  ;;  %v4508_v30 = vpack.c.bf16 %v1732_v27, %v1730_v21  ;;  %v1747_v21 = vld [vmem:[#allocation14 + $0x450] sm:$0xff]  ;;  %v1750_v27 = vld [vmem:[#allocation14 + $0x468] sm:$0xff] }
 0x36a   :  { %4483 = vmatpush1.bf16.msra.mxu1 %v4482_v35  ;;  %v2151_v35 = vld [vmem:[#allocation13 + $0x8] sm:$0xff] }
 0x36b   :  { %4485 = vmatprep.subr.bf16.mxu1 %v4484_v38  ;;  %v2153_v38 = vld [vmem:[#allocation13 + $0x18] sm:$0xff] }
 0x36c   :  { %v4644_v39 = vpack.c.bf16 %v2153_v38, %v2151_v35  ;;  %v1756_v35 = vld [vmem:[#allocation14 + $0x498] sm:$0xff] }
 0x36e   :  { %4487 = vmatpush1.bf16.msra.mxu1 %v4486_v42  ;;  %v4646_v42 = vpack.c.bf16 %v2152_v41, %v2150_v56  ;;  %4645 = vmatprep.subr.bf16.mxu0 %v4644_v39  ;;  %v1755_v39 = vld [vmem:[#allocation14 + $0x490] sm:$0xff]  ;;  %v1758_v56 = vld [vmem:[#allocation14 + $0x4a8] sm:$0xff]  ;;  %v1760_v41 = vld [vmem:[#allocation14 + $0x4b8] sm:$0xff] }
 0x36f   :  { %4489 = vmatprep.subr.bf16.mxu1 %v4488_v43  ;;  %v4512_v43 = vpack.c.bf16 %v1736_v24, %v1734_v34  ;;  %v1751_v34 = vld [vmem:[#allocation14 + $0x470] sm:$0xff]  ;;  %v1754_v24 = vld [vmem:[#allocation14 + $0x488] sm:$0xff] }
 0x370   :  { %4647 = vmatpush1.bf16.msra.mxu0 %v4646_v42  ;;  %v4532_v38 = vpack.c.bf16 %v1756_v35, %v1754_v24  ;;  %v4536_v42 = vpack.c.bf16 %v1760_v41, %v1758_v56 }
 0x372   :  { %4491 = vmatpush1.bf16.msra.mxu1 %v4490_v45  ;;  %v2155_v45 = vld [vmem:[#allocation13 + $0x28] sm:$0xff] }
 0x373   :  { %4493 = vmatprep.subr.bf16.mxu1 %v4492_v61  ;;  %v2157_v61 = vld [vmem:[#allocation13 + $0x38] sm:$0xff] }
 0x374   :  { %v4648_v63 = vpack.c.bf16 %v2157_v61, %v2155_v45  ;;  %v1761_v61 = vld [vmem:[#allocation14 + $0x4c0] sm:$0xff] }
 0x376   :  { %4495 = vmatpush1.bf16.msra.mxu1 %v4494_v2  ;;  %v4650_v2 = vpack.c.bf16 %v2156_v1, %v2154_v47  ;;  %4649 = vmatprep.subr.bf16.mxu0 %v4648_v63  ;;  %v1763_v63 = vld [vmem:[#allocation14 + $0x4d0] sm:$0xff]  ;;  %v1766_v47 = vld [vmem:[#allocation14 + $0x4e8] sm:$0xff]  ;;  %v1768_v1 = vld [vmem:[#allocation14 + $0x4f8] sm:$0xff] }
 0x377   :  { %4497 = vmatprep.subr.bf16.mxu1 %v4496_v3  ;;  %v4516_v3 = vpack.c.bf16 %v1740_v55, %v1738_v54  ;;  %v1764_v54 = vld [vmem:[#allocation14 + $0x4d8] sm:$0xff] }
 0x378   :  { %4651 = vmatpush1.bf16.msra.mxu0 %v4650_v2  ;;  %v4540_v45 = vpack.c.bf16 %v1764_v54, %v1762_v53  ;;  %v4544_v2 = vpack.c.bf16 %v1768_v1, %v1766_v47 }
 0x37a   :  { %4499 = vmatpush1.bf16.msra.mxu1 %v4498_v11  ;;  %v4518_v11 = vpack.c.bf16 %v1739_v5, %v1737_v4  ;;  %v1767_v4 = vld [vmem:[#allocation14 + $0x4f0] sm:$0xff]  ;;  %v1770_v5 = vld [vmem:[#allocation14 + $0x508] sm:$0xff] }
 0x37b   :  { %4501 = vmatprep.subr.bf16.mxu1 %v4500_v49  ;;  %v2149_v49 = vld [vmem:[#allocation5] sm:$0xf] }
 0x37c   :  { %3833 = vmatmul.mubr.msk.f32.vlgmr.msra.gmra.mrb[12].mxu0 %vm1313_vm3, %v2149_v49  ;;  %v1769_v49 = vld [vmem:[#allocation14 + $0x500] sm:$0xff] }
 0x37e   :  { %4503 = vmatpush1.bf16.msra.mxu1 %v4502_v16  ;;  %v1748_v16 = vld [vmem:[#allocation14 + $0x458] sm:$0xff] }
 0x37f   :  { %4505 = vmatprep.subr.bf16.mxu1 %v4504_v17  ;;  %v4522_v17 = vpack.c.bf16 %v1743_v13, %v1741_v12  ;;  %v4524_v19 = vpack.c.bf16 %v1748_v16, %v1746_v14  ;;  %v1774_v12 = vld [vmem:[#allocation14 + $0x528] sm:$0xff]  ;;  %v1776_v13 = vld [vmem:[#allocation14 + $0x538] sm:$0xff] }
 0x380   :  { %v4552_v16 = vpack.c.bf16 %v1776_v13, %v1774_v12 }
 0x382   :  { %4507 = vmatpush1.bf16.msra.mxu1 %v4506_v28  ;;  %v1752_v28 = vld [vmem:[#allocation14 + $0x478] sm:$0xff] }
 0x383   :  { %4509 = vmatprep.subr.bf16.mxu1 %v4508_v30  ;;  %v4526_v30 = vpack.c.bf16 %v1747_v21, %v1745_v20  ;;  %v4528_v31 = vpack.c.bf16 %v1752_v28, %v1750_v27  ;;  %v1778_v20 = vld [vmem:[#allocation14 + $0x548] sm:$0xff]  ;;  %v1780_v21 = vld [vmem:[#allocation14 + $0x558] sm:$0xff] }
 0x384   :  { %v4556_v28 = vpack.c.bf16 %v1780_v21, %v1778_v20 }
 0x386   :  { %4511 = vmatpush1.bf16.msra.mxu1 %v4510_v26 }
 0x387   :  { %4513 = vmatprep.subr.bf16.mxu1 %v4512_v43  ;;  %v1757_v43 = vld [vmem:[#allocation14 + $0x4a0] sm:$0xff] }
 0x388   :  { %v4538_v55 = vpack.c.bf16 %v1759_v46, %v1757_v43  ;;  %v1790_v43 = vld [vmem:[#allocation14 + $0x5a8] sm:$0xff]  ;;  %v1792_v46 = vld [vmem:[#allocation14 + $0x5b8] sm:$0xff] }
 0x389   :  { %v4568_v54 = vpack.c.bf16 %v1792_v46, %v1790_v43  ;;  %v1819_v46 = vld [vmem:[#allocation14 + $0x690] sm:$0xff] }
 0x38a   :  { %4515 = vmatpush1.bf16.msra.mxu1 %v4514_v32  ;;  %v4542_v32 = vpack.c.bf16 %v1763_v63, %v1761_v61  ;;  %v1794_v61 = vld [vmem:[#allocation14 + $0x5c8] sm:$0xff]  ;;  %v1796_v63 = vld [vmem:[#allocation14 + $0x5d8] sm:$0xff] }
 0x38b   :  { %4517 = vmatprep.subr.bf16.mxu1 %v4516_v3  ;;  %v1765_v3 = vld [vmem:[#allocation14 + $0x4e0] sm:$0xff]  ;;  %v4572_v1 = vpack.c.bf16 %v1796_v63, %v1794_v61  ;;  %v1823_v63 = vld [vmem:[#allocation14 + $0x6b0] sm:$0xff] }
 0x38c   :  { %v4546_v7 = vpack.c.bf16 %v1767_v4, %v1765_v3  ;;  %v1798_v3 = vld [vmem:[#allocation14 + $0x5e8] sm:$0xff]  ;;  %v1800_v4 = vld [vmem:[#allocation14 + $0x5f8] sm:$0xff]  ;;  %v1821_v61 = vld [vmem:[#allocation14 + $0x6a0] sm:$0xff] }
 0x38d   :  { %2001 = vmatmul.mubr.f32.vlgmr.msra.gmra.mrb[14].mxu1 %v5985_v48  ;;  %v4530_v48 = vpack.c.bf16 %v1751_v34, %v1749_v33  ;;  %v1782_v33 = vld [vmem:[#allocation14 + $0x568] sm:$0xff]  ;;  %v1784_v34 = vld [vmem:[#allocation14 + $0x578] sm:$0xff] }
 0x38e   :  { %4519 = vmatpush1.bf16.msra.mxu1 %v4518_v11  ;;  %2071 = vmatprep.mubr.f32.mxu1 %v6011_v29  ;;  %v1753_v29 = vld [vmem:[#allocation14 + $0x480] sm:$0xff]  ;;  %v4548_v11 = vpack.c.bf16 %v1772_v6, %v1770_v5  ;;  %v4560_v35 = vpack.c.bf16 %v1784_v34, %v1782_v33  ;;  %v4576_v6 = vpack.c.bf16 %v1800_v4, %v1798_v3  ;;  %v1827_v4 = vld [vmem:[#allocation14 + $0x6d0] sm:$0xff] }
 0x38f   :  { %4521 = vmatprep.subr.bf16.mxu1 %v4520_v15  ;;  %v4534_v26 = vpack.c.bf16 %v1755_v39, %v1753_v29  ;;  %v1771_v15 = vld [vmem:[#allocation14 + $0x510] sm:$0xff]  ;;  %v1786_v29 = vld [vmem:[#allocation14 + $0x588] sm:$0xff]  ;;  %v1788_v39 = vld [vmem:[#allocation14 + $0x598] sm:$0xff] }
 0x390   :  { %v4550_v14 = vpack.c.bf16 %v1771_v15, %v1769_v49  ;;  %v4564_v41 = vpack.c.bf16 %v1788_v39, %v1786_v29  ;;  %v1802_v49 = vld [vmem:[#allocation14 + $0x608] sm:$0xff]  ;;  %v1804_v15 = vld [vmem:[#allocation14 + $0x618] sm:$0xff]  ;;  %v1825_v3 = vld [vmem:[#allocation14 + $0x6c0] sm:$0xff] }
 0x391   :  { %v4580_v13 = vpack.c.bf16 %v1804_v15, %v1802_v49  ;;  %v1829_v49 = vld [vmem:[#allocation14 + $0x6e0] sm:$0xff]  ;;  %v1831_v15 = vld [vmem:[#allocation14 + $0x6f0] sm:$0xff] }
 0x392   :  { %4523 = vmatpush1.bf16.msra.mxu1 %v4522_v17  ;;  %v1773_v17 = vld [vmem:[#allocation14 + $0x520] sm:$0xff] }
 0x393   :  { %4525 = vmatprep.subr.bf16.mxu1 %v4524_v19  ;;  %v1775_v19 = vld [vmem:[#allocation14 + $0x530] sm:$0xff] }
 0x394   :  { %v4554_v27 = vpack.c.bf16 %v1775_v19, %v1773_v17  ;;  %v1806_v17 = vld [vmem:[#allocation14 + $0x628] sm:$0xff]  ;;  %v1808_v19 = vld [vmem:[#allocation14 + $0x638] sm:$0xff] }
 0x395   :  { %v4584_v21 = vpack.c.bf16 %v1808_v19, %v1806_v17  ;;  %v1833_v17 = vld [vmem:[#allocation14 + $0x700] sm:$0xff]  ;;  %v1835_v19 = vld [vmem:[#allocation14 + $0x710] sm:$0xff] }
 0x396   :  { %4527 = vmatpush1.bf16.msra.mxu1 %v4526_v30  ;;  %v1777_v30 = vld [vmem:[#allocation14 + $0x540] sm:$0xff] }
 0x397   :  { %4529 = vmatprep.subr.bf16.mxu1 %v4528_v31  ;;  %v1779_v31 = vld [vmem:[#allocation14 + $0x550] sm:$0xff] }
 0x398   :  { %v4558_v24 = vpack.c.bf16 %v1779_v31, %v1777_v30  ;;  %v1810_v30 = vld [vmem:[#allocation14 + $0x648] sm:$0xff]  ;;  %v1812_v31 = vld [vmem:[#allocation14 + $0x658] sm:$0xff] }
 0x399   :  { %v4588_v34 = vpack.c.bf16 %v1812_v31, %v1810_v30  ;;  %v1837_v30 = vld [vmem:[#allocation14 + $0x720] sm:$0xff]  ;;  %v1839_v31 = vld [vmem:[#allocation14 + $0x730] sm:$0xff] }
 0x39a   :  { %4531 = vmatpush1.bf16.msra.mxu1 %v4530_v48  ;;  %v1781_v48 = vld [vmem:[#allocation14 + $0x560] sm:$0xff] }
 0x39b   :  { %4533 = vmatprep.subr.bf16.mxu1 %v4532_v38  ;;  %v1783_v38 = vld [vmem:[#allocation14 + $0x570] sm:$0xff] }
 0x39c   :  { %v4562_v56 = vpack.c.bf16 %v1783_v38, %v1781_v48  ;;  %v1814_v48 = vld [vmem:[#allocation14 + $0x668] sm:$0xff]  ;;  %v1816_v38 = vld [vmem:[#allocation14 + $0x678] sm:$0xff] }
 0x39d   :  { %v4592_v39 = vpack.c.bf16 %v1816_v38, %v1814_v48  ;;  %v1841_v48 = vld [vmem:[#allocation14 + $0x740] sm:$0xff]  ;;  %v1843_v38 = vld [vmem:[#allocation14 + $0x750] sm:$0xff] }
 0x39e   :  { %4535 = vmatpush1.bf16.msra.mxu1 %v4534_v26  ;;  %v1785_v26 = vld [vmem:[#allocation14 + $0x580] sm:$0xff] }
 0x39f   :  { %4537 = vmatprep.subr.bf16.mxu1 %v4536_v42  ;;  %v1787_v42 = vld [vmem:[#allocation14 + $0x590] sm:$0xff] }
 0x3a0   :  { %v4566_v53 = vpack.c.bf16 %v1787_v42, %v1785_v26  ;;  %v1818_v26 = vld [vmem:[#allocation14 + $0x688] sm:$0xff]  ;;  %v1820_v42 = vld [vmem:[#allocation14 + $0x698] sm:$0xff] }
 0x3a1   :  { %v4596_v43 = vpack.c.bf16 %v1820_v42, %v1818_v26  ;;  %v1845_v26 = vld [vmem:[#allocation14 + $0x760] sm:$0xff]  ;;  %v1847_v42 = vld [vmem:[#allocation14 + $0x770] sm:$0xff] }
 0x3a2   :  { %4539 = vmatpush1.bf16.msra.mxu1 %v4538_v55  ;;  %v1789_v55 = vld [vmem:[#allocation14 + $0x5a0] sm:$0xff] }
 0x3a3   :  { %4541 = vmatprep.subr.bf16.mxu1 %v4540_v45  ;;  %v1791_v45 = vld [vmem:[#allocation14 + $0x5b0] sm:$0xff] }
 0x3a4   :  { %v4570_v47 = vpack.c.bf16 %v1791_v45, %v1789_v55 }
 0x3a6   :  { %4543 = vmatpush1.bf16.msra.mxu1 %v4542_v32  ;;  %v1793_v32 = vld [vmem:[#allocation14 + $0x5c0] sm:$0xff] }
 0x3a7   :  { %4545 = vmatprep.subr.bf16.mxu1 %v4544_v2  ;;  %v1795_v2 = vld [vmem:[#allocation14 + $0x5d0] sm:$0xff] }
 0x3a8   :  { %v4574_v5 = vpack.c.bf16 %v1795_v2, %v1793_v32  ;;  %v4602_v32 = vpack.c.bf16 %v1823_v63, %v1821_v61 }
 0x3aa   :  { %4547 = vmatpush1.bf16.msra.mxu1 %v4546_v7  ;;  %v1797_v7 = vld [vmem:[#allocation14 + $0x5e0] sm:$0xff] }
 0x3ab   :  { %4549 = vmatprep.subr.bf16.mxu1 %v4548_v11  ;;  %v1799_v11 = vld [vmem:[#allocation14 + $0x5f0] sm:$0xff] }
 0x3ac   :  { %v4578_v12 = vpack.c.bf16 %v1799_v11, %v1797_v7  ;;  %v4606_v7 = vpack.c.bf16 %v1827_v4, %v1825_v3 }
 0x3ae   :  { %4551 = vmatpush1.bf16.msra.mxu1 %v4550_v14  ;;  %v1801_v14 = vld [vmem:[#allocation14 + $0x600] sm:$0xff] }
 0x3af   :  { %4553 = vmatprep.subr.bf16.mxu1 %v4552_v16  ;;  %v1803_v16 = vld [vmem:[#allocation14 + $0x610] sm:$0xff] }
 0x3b0   :  { %v4582_v20 = vpack.c.bf16 %v1803_v16, %v1801_v14  ;;  %v4610_v14 = vpack.c.bf16 %v1831_v15, %v1829_v49 }
 0x3b2   :  { %4555 = vmatpush1.bf16.msra.mxu1 %v4554_v27  ;;  %v1805_v27 = vld [vmem:[#allocation14 + $0x620] sm:$0xff] }
 0x3b3   :  { %4557 = vmatprep.subr.bf16.mxu1 %v4556_v28  ;;  %v1807_v28 = vld [vmem:[#allocation14 + $0x630] sm:$0xff] }
 0x3b4   :  { %v4586_v33 = vpack.c.bf16 %v1807_v28, %v1805_v27  ;;  %v4614_v27 = vpack.c.bf16 %v1835_v19, %v1833_v17  ;;  %v2316_v19 = vld [vmem:[#allocation16 + $0x8] sm:$0xff] }
 0x3b6   :  { %4559 = vmatpush1.bf16.msra.mxu1 %v4558_v24  ;;  %v1809_v24 = vld [vmem:[#allocation14 + $0x640] sm:$0xff] }
 0x3b7   :  { %4561 = vmatprep.subr.bf16.mxu1 %v4560_v35  ;;  %v1811_v35 = vld [vmem:[#allocation14 + $0x650] sm:$0xff] }
 0x3b8   :  { %v4590_v29 = vpack.c.bf16 %v1811_v35, %v1809_v24  ;;  %v4618_v24 = vpack.c.bf16 %v1839_v31, %v1837_v30  ;;  %v2320_v30 = vld [vmem:[#allocation16 + $0x28] sm:$0xff]  ;;  %v2322_v31 = vld [vmem:[#allocation16 + $0x38] sm:$0xff] }
 0x3ba   :  { %4563 = vmatpush1.bf16.msra.mxu1 %v4562_v56  ;;  %v1813_v56 = vld [vmem:[#allocation14 + $0x660] sm:$0xff] }
 0x3bb   :  { %4565 = vmatprep.subr.bf16.mxu1 %v4564_v41  ;;  %v1815_v41 = vld [vmem:[#allocation14 + $0x670] sm:$0xff] }
 0x3be   :  { %4567 = vmatpush1.bf16.msra.mxu1 %v4566_v53  ;;  %v1822_v53 = vld [vmem:[#allocation14 + $0x6a8] sm:$0xff] }
 0x3bf   :  { %4569 = vmatprep.subr.bf16.mxu1 %v4568_v54  ;;  %v1824_v54 = vld [vmem:[#allocation14 + $0x6b8] sm:$0xff] }
 0x3c0   :  { %v4600_v45 = vpack.c.bf16 %v1824_v54, %v1822_v53  ;;  %v1849_v53 = vld [vmem:[#allocation14 + $0x780] sm:$0xff]  ;;  %v1851_v54 = vld [vmem:[#allocation14 + $0x790] sm:$0xff] }
 0x3c1   :  { %v4630_v61 = vpack.c.bf16 %v1851_v54, %v1849_v53  ;;  %v2334_v53 = vld [vmem:[#allocation16 + $0x98] sm:$0xff] }
 0x3c2   :  { %4571 = vmatpush1.bf16.msra.mxu1 %v4570_v47  ;;  %v1826_v47 = vld [vmem:[#allocation14 + $0x6c8] sm:$0xff] }
 0x3c3   :  { %4573 = vmatprep.subr.bf16.mxu1 %v4572_v1  ;;  %v1828_v1 = vld [vmem:[#allocation14 + $0x6d8] sm:$0xff] }
 0x3c4   :  { %v4604_v2 = vpack.c.bf16 %v1828_v1, %v1826_v47  ;;  %v1853_v47 = vld [vmem:[#allocation14 + $0x7a0] sm:$0xff]  ;;  %v1855_v1 = vld [vmem:[#allocation14 + $0x7b0] sm:$0xff] }
 0x3c5   :  { %v4634_v3 = vpack.c.bf16 %v1855_v1, %v1853_v47  ;;  %v2338_v47 = vld [vmem:[#allocation16 + $0xb8] sm:$0xff] }
 0x3c6   :  { %4575 = vmatpush1.bf16.msra.mxu1 %v4574_v5  ;;  %v1830_v5 = vld [vmem:[#allocation14 + $0x6e8] sm:$0xff] }
 0x3c7   :  { %4577 = vmatprep.subr.bf16.mxu1 %v4576_v6  ;;  %v1832_v6 = vld [vmem:[#allocation14 + $0x6f8] sm:$0xff] }
 0x3c8   :  { %v4608_v11 = vpack.c.bf16 %v1832_v6, %v1830_v5  ;;  %v1857_v5 = vld [vmem:[#allocation14 + $0x7c0] sm:$0xff]  ;;  %v1859_v6 = vld [vmem:[#allocation14 + $0x7d0] sm:$0xff] }
 0x3c9   :  { %v4638_v49 = vpack.c.bf16 %v1859_v6, %v1857_v5  ;;  %v2342_v5 = vld [vmem:[#allocation16 + $0xd8] sm:$0xff] }
 0x3ca   :  { %4579 = vmatpush1.bf16.msra.mxu1 %v4578_v12  ;;  %v1834_v12 = vld [vmem:[#allocation14 + $0x708] sm:$0xff] }
 0x3cb   :  { %4581 = vmatprep.subr.bf16.mxu1 %v4580_v13  ;;  %v1836_v13 = vld [vmem:[#allocation14 + $0x718] sm:$0xff] }
 0x3cc   :  { %v4612_v16 = vpack.c.bf16 %v1836_v13, %v1834_v12  ;;  %v1861_v12 = vld [vmem:[#allocation14 + $0x7e0] sm:$0xff]  ;;  %v1863_v13 = vld [vmem:[#allocation14 + $0x7f0] sm:$0xff] }
 0x3cd   :  { %2072 = vmatmul.mubr.f32.vlgmr.msra.gmra.mrb[14].mxu1 %v6007_v57  ;;  %v4594_v57 = vpack.c.bf16 %v1815_v41, %v1813_v56  ;;  %v4622_v56 = vpack.c.bf16 %v1843_v38, %v1841_v48  ;;  %v2324_v48 = vld [vmem:[#allocation16 + $0x48] sm:$0xff]  ;;  %v2326_v38 = vld [vmem:[#allocation16 + $0x58] sm:$0xff] }
 0x3ce   :  { %4583 = vmatpush1.bf16.msra.mxu1 %v4582_v20  ;;  %2142 = vmatprep.mubr.f32.mxu1 %v6013_v59  ;;  %v1817_v59 = vld [vmem:[#allocation14 + $0x680] sm:$0xff]  ;;  %v1838_v20 = vld [vmem:[#allocation14 + $0x728] sm:$0xff] }
 0x3cf   :  { %4585 = vmatprep.subr.bf16.mxu1 %v4584_v21  ;;  %v4598_v55 = vpack.c.bf16 %v1819_v46, %v1817_v59  ;;  %v1840_v21 = vld [vmem:[#allocation14 + $0x738] sm:$0xff]  ;;  %v4626_v59 = vpack.c.bf16 %v1847_v42, %v1845_v26 }
 0x3d0   :  { %v4616_v28 = vpack.c.bf16 %v1840_v21, %v1838_v20  ;;  %v2318_v20 = vld [vmem:[#allocation16 + $0x18] sm:$0xff]  ;;  %v2315_v21 = vld [vmem:[#allocation16] sm:$0xff] }
 0x3d1   :  { %v2330_v26 = vld [vmem:[#allocation16 + $0x78] sm:$0xff] }
 0x3d2   :  { %4587 = vmatpush1.bf16.msra.mxu1 %v4586_v33  ;;  %v1842_v33 = vld [vmem:[#allocation14 + $0x748] sm:$0xff] }
 0x3d3   :  { %4589 = vmatprep.subr.bf16.mxu1 %v4588_v34  ;;  %v1844_v34 = vld [vmem:[#allocation14 + $0x758] sm:$0xff] }
 0x3d4   :  { %v4620_v35 = vpack.c.bf16 %v1844_v34, %v1842_v33  ;;  %v4656_v34 = vpack.c.bf16 %v2322_v31, %v2320_v30  ;;  %v2347_v31 = vld [vmem:[#allocation16 + $0x100] sm:$0xff] }
 0x3d6   :  { %4591 = vmatpush1.bf16.msra.mxu1 %v4590_v29  ;;  %v1846_v29 = vld [vmem:[#allocation14 + $0x768] sm:$0xff] }
 0x3d7   :  { %4593 = vmatprep.subr.bf16.mxu1 %v4592_v39  ;;  %v1848_v39 = vld [vmem:[#allocation14 + $0x778] sm:$0xff] }
 0x3d8   :  { %v4624_v41 = vpack.c.bf16 %v1848_v39, %v1846_v29  ;;  %v4660_v29 = vpack.c.bf16 %v2326_v38, %v2324_v48  ;;  %v2323_v39 = vld [vmem:[#allocation16 + $0x40] sm:$0xff] }
 0x3da   :  { %4595 = vmatpush1.bf16.msra.mxu1 %v4594_v57  ;;  %v1850_v57 = vld [vmem:[#allocation14 + $0x788] sm:$0xff] }
 0x3db   :  { %4597 = vmatprep.subr.bf16.mxu1 %v4596_v43  ;;  %v1852_v43 = vld [vmem:[#allocation14 + $0x798] sm:$0xff] }
 0x3dc   :  { %v4628_v46 = vpack.c.bf16 %v1852_v43, %v1850_v57  ;;  %v2327_v43 = vld [vmem:[#allocation16 + $0x60] sm:$0xff] }
 0x3de   :  { %4599 = vmatpush1.bf16.msra.mxu1 %v4598_v55  ;;  %v1854_v55 = vld [vmem:[#allocation14 + $0x7a8] sm:$0xff] }
 0x3df   :  { %4601 = vmatprep.subr.bf16.mxu1 %v4600_v45  ;;  %v1856_v45 = vld [vmem:[#allocation14 + $0x7b8] sm:$0xff] }
 0x3e0   :  { %v4632_v63 = vpack.c.bf16 %v1856_v45, %v1854_v55  ;;  %v2331_v45 = vld [vmem:[#allocation16 + $0x80] sm:$0xff] }
 0x3e2   :  { %4603 = vmatpush1.bf16.msra.mxu1 %v4602_v32  ;;  %v1858_v32 = vld [vmem:[#allocation14 + $0x7c8] sm:$0xff] }
 0x3e3   :  { %4605 = vmatprep.subr.bf16.mxu1 %v4604_v2  ;;  %v1860_v2 = vld [vmem:[#allocation14 + $0x7d8] sm:$0xff] }
 0x3e4   :  { %v4636_v4 = vpack.c.bf16 %v1860_v2, %v1858_v32  ;;  %v2335_v2 = vld [vmem:[#allocation16 + $0xa0] sm:$0xff] }
 0x3e6   :  { %4607 = vmatpush1.bf16.msra.mxu1 %v4606_v7  ;;  %v1862_v7 = vld [vmem:[#allocation14 + $0x7e8] sm:$0xff] }
 0x3e7   :  { %4609 = vmatprep.subr.bf16.mxu1 %v4608_v11  ;;  %v1864_v11 = vld [vmem:[#allocation14 + $0x7f8] sm:$0xff] }
 0x3e8   :  { %v4640_v15 = vpack.c.bf16 %v1864_v11, %v1862_v7  ;;  %v2339_v11 = vld [vmem:[#allocation16 + $0xc0] sm:$0xff] }
 0x3ea   :  { %4611 = vmatpush1.bf16.msra.mxu1 %v4610_v14  ;;  %v4642_v14 = vpack.c.bf16 %v1863_v13, %v1861_v12  ;;  %v2346_v12 = vld [vmem:[#allocation16 + $0xf8] sm:$0xff] }
 0x3eb   :  { %4613 = vmatprep.subr.bf16.mxu1 %v4612_v16 }
 0x3ee   :  { %4615 = vmatpush1.bf16.msra.mxu1 %v4614_v27  ;;  %v4652_v27 = vpack.c.bf16 %v2318_v20, %v2316_v19  ;;  %v2343_v19 = vld [vmem:[#allocation16 + $0xe0] sm:$0xff]  ;;  %v2345_v20 = vld [vmem:[#allocation16 + $0xf0] sm:$0xff] }
 0x3ef   :  { %4617 = vmatprep.subr.bf16.mxu1 %v4616_v28  ;;  %v2317_v28 = vld [vmem:[#allocation16 + $0x10] sm:$0xff] }
 0x3f0   :  { %v4654_v33 = vpack.c.bf16 %v2317_v28, %v2315_v21  ;;  %4653 = vmatprep.subr.bf16.mxu0 %v4652_v27  ;;  %v2348_v21 = vld [vmem:[#allocation16 + $0x108] sm:$0xff]  ;;  %v2350_v27 = vld [vmem:[#allocation16 + $0x118] sm:$0xff]  ;;  %v4682_v28 = vpack.c.bf16 %v2345_v20, %v2343_v19 }
 0x3f1   :  { %v4684_v30 = vpack.c.bf16 %v2350_v27, %v2348_v21  ;;  %v2372_v19 = vld [vmem:[#allocation16 + $0x1c8] sm:$0xff]  ;;  %v2374_v20 = vld [vmem:[#allocation16 + $0x1d8] sm:$0xff]  ;;  %v2371_v21 = vld [vmem:[#allocation16 + $0x1c0] sm:$0xff] }
 0x3f2   :  { %4619 = vmatpush1.bf16.msra.mxu1 %v4618_v24  ;;  %v2319_v24 = vld [vmem:[#allocation16 + $0x20] sm:$0xff]  ;;  %4655 = vmatpush1.bf16.msra.mxu0 %v4654_v33  ;;  %v2349_v33 = vld [vmem:[#allocation16 + $0x110] sm:$0xff]  ;;  %v4708_v27 = vpack.c.bf16 %v2374_v20, %v2372_v19  ;;  %v2545_v19 = vld [vmem:[#allocation17 + $0x2b8] sm:$0xff] }
 0x3f3   :  { %4621 = vmatprep.subr.bf16.mxu1 %v4620_v35  ;;  %v2321_v35 = vld [vmem:[#allocation16 + $0x30] sm:$0xff]  ;;  %4657 = vmatprep.subr.bf16.mxu0 %v4656_v34  ;;  %v4686_v34 = vpack.c.bf16 %v2349_v33, %v2347_v31  ;;  %v2378_v31 = vld [vmem:[#allocation16 + $0x1f8] sm:$0xff] }
 0x3f4   :  { %v2553_v20 = vld [vmem:[#allocation17 + $0x2f8] sm:$0xff] }
 0x3f6   :  { %4623 = vmatpush1.bf16.msra.mxu1 %v4622_v56  ;;  %v2325_v56 = vld [vmem:[#allocation16 + $0x50] sm:$0xff] }
 0x3f7   :  { %4625 = vmatprep.subr.bf16.mxu1 %v4624_v41  ;;  %v2328_v41 = vld [vmem:[#allocation16 + $0x68] sm:$0xff]  ;;  %v4662_v42 = vpack.c.bf16 %v2325_v56, %v2323_v39  ;;  %v2354_v56 = vld [vmem:[#allocation16 + $0x138] sm:$0xff] }
 0x3f8   :  { %v4664_v57 = vpack.c.bf16 %v2330_v26, %v2328_v41  ;;  %v2351_v26 = vld [vmem:[#allocation16 + $0x120] sm:$0xff] }
 0x3fa   :  { %4627 = vmatpush1.bf16.msra.mxu1 %v4626_v59  ;;  %v2329_v59 = vld [vmem:[#allocation16 + $0x70] sm:$0xff] }
 0x3fb   :  { %4629 = vmatprep.subr.bf16.mxu1 %v4628_v46  ;;  %v2332_v46 = vld [vmem:[#allocation16 + $0x88] sm:$0xff]  ;;  %v4666_v54 = vpack.c.bf16 %v2329_v59, %v2327_v43  ;;  %v2358_v59 = vld [vmem:[#allocation16 + $0x158] sm:$0xff] }
 0x3fc   :  { %v4668_v55 = vpack.c.bf16 %v2334_v53, %v2332_v46  ;;  %v2356_v43 = vld [vmem:[#allocation16 + $0x148] sm:$0xff]  ;;  %v2355_v53 = vld [vmem:[#allocation16 + $0x140] sm:$0xff] }
 0x3fd   :  { %v4692_v46 = vpack.c.bf16 %v2358_v59, %v2356_v43  ;;  %v2481_v43 = vld [vmem:[#allocation17 + $0xb8] sm:$0xff] }
 0x3fe   :  { %4631 = vmatpush1.bf16.msra.mxu1 %v4630_v61  ;;  %v2333_v61 = vld [vmem:[#allocation16 + $0x90] sm:$0xff]  ;;  %v2489_v59 = vld [vmem:[#allocation17 + $0xf8] sm:$0xff] }
 0x3ff   :  { %4633 = vmatprep.subr.bf16.mxu1 %v4632_v63  ;;  %v2336_v63 = vld [vmem:[#allocation16 + $0xa8] sm:$0xff]  ;;  %v4670_v1 = vpack.c.bf16 %v2333_v61, %v2331_v45  ;;  %v2362_v61 = vld [vmem:[#allocation16 + $0x178] sm:$0xff] }
 0x400   :  { %v4672_v32 = vpack.c.bf16 %v2338_v47, %v2336_v63  ;;  %v2360_v45 = vld [vmem:[#allocation16 + $0x168] sm:$0xff]  ;;  %v2359_v47 = vld [vmem:[#allocation16 + $0x160] sm:$0xff] }
 0x401   :  { %v4696_v63 = vpack.c.bf16 %v2362_v61, %v2360_v45  ;;  %v2497_v45 = vld [vmem:[#allocation17 + $0x138] sm:$0xff] }
 0x402   :  { %4635 = vmatpush1.bf16.msra.mxu1 %v4634_v3  ;;  %v2337_v3 = vld [vmem:[#allocation16 + $0xb0] sm:$0xff]  ;;  %v2505_v61 = vld [vmem:[#allocation17 + $0x178] sm:$0xff] }
 0x403   :  { %4637 = vmatprep.subr.bf16.mxu1 %v4636_v4  ;;  %v2340_v4 = vld [vmem:[#allocation16 + $0xc8] sm:$0xff]  ;;  %v4674_v6 = vpack.c.bf16 %v2337_v3, %v2335_v2  ;;  %v2366_v3 = vld [vmem:[#allocation16 + $0x198] sm:$0xff] }
 0x404   :  { %v4676_v7 = vpack.c.bf16 %v2342_v5, %v2340_v4  ;;  %v2364_v2 = vld [vmem:[#allocation16 + $0x188] sm:$0xff]  ;;  %v2363_v5 = vld [vmem:[#allocation16 + $0x180] sm:$0xff] }
 0x405   :  { %v4700_v4 = vpack.c.bf16 %v2366_v3, %v2364_v2  ;;  %v2513_v2 = vld [vmem:[#allocation17 + $0x1b8] sm:$0xff] }
 0x406   :  { %4639 = vmatpush1.bf16.msra.mxu1 %v4638_v49  ;;  %v2341_v49 = vld [vmem:[#allocation16 + $0xd0] sm:$0xff]  ;;  %v2521_v3 = vld [vmem:[#allocation17 + $0x1f8] sm:$0xff] }
 0x407   :  { %4641 = vmatprep.subr.bf16.mxu1 %v4640_v15  ;;  %v2344_v15 = vld [vmem:[#allocation16 + $0xe8] sm:$0xff]  ;;  %v4678_v13 = vpack.c.bf16 %v2341_v49, %v2339_v11  ;;  %v2370_v49 = vld [vmem:[#allocation16 + $0x1b8] sm:$0xff] }
 0x408   :  { %v2368_v11 = vld [vmem:[#allocation16 + $0x1a8] sm:$0xff] }
 0x40a   :  { %4643 = vmatpush1.bf16.msra.mxu1 %v4642_v14  ;;  %v4680_v14 = vpack.c.bf16 %v2346_v12, %v2344_v15  ;;  %v4704_v15 = vpack.c.bf16 %v2370_v49, %v2368_v11  ;;  %v2367_v12 = vld [vmem:[#allocation16 + $0x1a0] sm:$0xff]  ;;  %v2529_v11 = vld [vmem:[#allocation17 + $0x238] sm:$0xff] }
 0x40b   :  { %v2537_v49 = vld [vmem:[#allocation17 + $0x278] sm:$0xff] }
 0x40d   :  { %2143 = vmatmul.mubr.f32.vlgmr.msra.gmra.mrb[14].mxu1 %v6009_v44  ;;  %v4658_v44 = vpack.c.bf16 %v2321_v35, %v2319_v24 }
 0x40f   :  { %4659 = vmatpush1.bf16.msra.mxu0 %v4658_v44 }
 0x410   :  { %4661 = vmatprep.subr.bf16.mxu0 %v4660_v29 }
 0x413   :  { %4663 = vmatpush1.bf16.msra.mxu0 %v4662_v42  ;;  %v2353_v42 = vld [vmem:[#allocation16 + $0x130] sm:$0xff] }
 0x414   :  { %4665 = vmatprep.subr.bf16.mxu0 %v4664_v57  ;;  %v4690_v57 = vpack.c.bf16 %v2353_v42, %v2351_v26  ;;  %v2464_v26 = vld [vmem:[#allocation17 + $0x30] sm:$0xff] }
 0x415   :  { %v2472_v42 = vld [vmem:[#allocation17 + $0x70] sm:$0xff] }
 0x417   :  { %4667 = vmatpush1.bf16.msra.mxu0 %v4666_v54  ;;  %v2357_v54 = vld [vmem:[#allocation16 + $0x150] sm:$0xff] }
 0x418   :  { %4669 = vmatprep.subr.bf16.mxu0 %v4668_v55  ;;  %v4694_v55 = vpack.c.bf16 %v2357_v54, %v2355_v53  ;;  %v4912_v53 = vpack.c.bf16 %v2489_v59, %v2481_v43  ;;  %v2488_v54 = vld [vmem:[#allocation17 + $0xf0] sm:$0xff] }
 0x419   :  { %v2600_v59 = vld [vmem:[#allocation17 + $0x470] sm:$0xff] }
 0x41b   :  { %4671 = vmatpush1.bf16.msra.mxu0 %v4670_v1  ;;  %v2361_v1 = vld [vmem:[#allocation16 + $0x170] sm:$0xff] }
 0x41c   :  { %4673 = vmatprep.subr.bf16.mxu0 %v4672_v32  ;;  %v4698_v32 = vpack.c.bf16 %v2361_v1, %v2359_v47  ;;  %v4916_v47 = vpack.c.bf16 %v2505_v61, %v2497_v45  ;;  %v2504_v1 = vld [vmem:[#allocation17 + $0x170] sm:$0xff] }
 0x41d   :  { %v2616_v61 = vld [vmem:[#allocation17 + $0x4f0] sm:$0xff] }
 0x41f   :  { %4675 = vmatpush1.bf16.msra.mxu0 %v4674_v6  ;;  %v2365_v6 = vld [vmem:[#allocation16 + $0x190] sm:$0xff] }
 0x420   :  { %4677 = vmatprep.subr.bf16.mxu0 %v4676_v7  ;;  %v4702_v7 = vpack.c.bf16 %v2365_v6, %v2363_v5  ;;  %v4920_v5 = vpack.c.bf16 %v2521_v3, %v2513_v2  ;;  %v2520_v6 = vld [vmem:[#allocation17 + $0x1f0] sm:$0xff] }
 0x421   :  { %v2632_v3 = vld [vmem:[#allocation17 + $0x570] sm:$0xff] }
 0x423   :  { %4679 = vmatpush1.bf16.msra.mxu0 %v4678_v13  ;;  %v2369_v13 = vld [vmem:[#allocation16 + $0x1b0] sm:$0xff] }
 0x424   :  { %4681 = vmatprep.subr.bf16.mxu0 %v4680_v14  ;;  %v4706_v14 = vpack.c.bf16 %v2369_v13, %v2367_v12  ;;  %v4924_v12 = vpack.c.bf16 %v2537_v49, %v2529_v11  ;;  %v2536_v13 = vld [vmem:[#allocation17 + $0x270] sm:$0xff] }
 0x425   :  { %v2648_v49 = vld [vmem:[#allocation17 + $0x5f0] sm:$0xff] }
 0x427   :  { %4683 = vmatpush1.bf16.msra.mxu0 %v4682_v28  ;;  %v2373_v28 = vld [vmem:[#allocation16 + $0x1d0] sm:$0xff] }
 0x428   :  { %4685 = vmatprep.subr.bf16.mxu0 %v4684_v30  ;;  %v2376_v30 = vld [vmem:[#allocation16 + $0x1e8] sm:$0xff]  ;;  %v4710_v33 = vpack.c.bf16 %v2373_v28, %v2371_v21  ;;  %v2544_v21 = vld [vmem:[#allocation17 + $0x2b0] sm:$0xff] }
 0x429   :  { %v2552_v28 = vld [vmem:[#allocation17 + $0x2f0] sm:$0xff] }
 0x42b   :  { %4687 = vmatpush1.bf16.msra.mxu0 %v4686_v34  ;;  %v4712_v34 = vpack.c.bf16 %v2378_v31, %v2376_v30  ;;  %v4930_v30 = vpack.c.bf16 %v2552_v28, %v2544_v21  ;;  %v2561_v31 = vld [vmem:[#allocation17 + $0x338] sm:$0xff] }
 0x44f   :  { %v6021_v16 = vpop.f32.mrb[12].mxu0 }
 0x450   :  { %v6023_v17 = vpop.f32.mrb[13].mxu0  ;;  %vm2232_vm4 = vcmp.gt.f32.partialorder %v6021_v16, 0.5 }
 0x451   :  { %vm2233_vm5 = vcmp.gt.f32.partialorder %v6023_v17, 0.5  ;;  %v2352_v17 = vld [vmem:[#allocation16 + $0x128] sm:$0xff] }
 0x452   :  { %v4688_v41 = vpack.c.bf16 %v2354_v56, %v2352_v17  ;;  %v2465_v17 = vld [vmem:[#allocation17 + $0x38] sm:$0xff] }
 0x453   :  { %v2473_v56 = vld [vmem:[#allocation17 + $0x78] sm:$0xff] }
 0x454   :  { %4689 = vmatprep.subr.bf16.mxu0 %v4688_v41  ;;  %v4908_v41 = vpack.c.bf16 %v2473_v56, %v2465_v17  ;;  %v2584_v56 = vld [vmem:[#allocation17 + $0x3f0] sm:$0xff] }
 0x455   :  { %4691 = vmatpush1.bf16.msra.mxu0 %v4690_v57  ;;  %v4910_v57 = vpack.c.bf16 %v2472_v42, %v2464_v26  ;;  %v2593_v26 = vld [vmem:[#allocation17 + $0x438] sm:$0xff] }
 0x456   :  { %4693 = vmatprep.subr.bf16.mxu0 %v4692_v46  ;;  %4909 = vmatprep.subr.bf16.mxu1 %v4908_v41  ;;  %v2480_v46 = vld [vmem:[#allocation17 + $0xb0] sm:$0xff]  ;;  %v2601_v42 = vld [vmem:[#allocation17 + $0x478] sm:$0xff] }
 0x457   :  { %4911 = vmatpush1.bf16.msra.mxu1 %v4910_v57  ;;  %v2592_v57 = vld [vmem:[#allocation17 + $0x430] sm:$0xff]  ;;  %v4940_v43 = vpack.c.bf16 %v2601_v42, %v2593_v26 }
 0x458   :  { %4913 = vmatprep.subr.bf16.mxu1 %v4912_v53  ;;  %v2609_v53 = vld [vmem:[#allocation17 + $0x4b8] sm:$0xff] }
 0x459   :  { %4695 = vmatpush1.bf16.msra.mxu0 %v4694_v55  ;;  %v4914_v55 = vpack.c.bf16 %v2488_v54, %v2480_v46  ;;  %v4942_v46 = vpack.c.bf16 %v2600_v59, %v2592_v57  ;;  %v2617_v54 = vld [vmem:[#allocation17 + $0x4f8] sm:$0xff] }
 0x45a   :  { %4697 = vmatprep.subr.bf16.mxu0 %v4696_v63  ;;  %v2496_v63 = vld [vmem:[#allocation17 + $0x130] sm:$0xff]  ;;  %v4944_v45 = vpack.c.bf16 %v2617_v54, %v2609_v53  ;;  %v2458_v53 = vld [vmem:[#allocation17] sm:$0xff] }
 0x45b   :  { %4915 = vmatpush1.bf16.msra.mxu1 %v4914_v55  ;;  %v2608_v55 = vld [vmem:[#allocation17 + $0x4b0] sm:$0xff]  ;;  %v2466_v54 = vld [vmem:[#allocation17 + $0x40] sm:$0xff] }
 0x45c   :  { %4917 = vmatprep.subr.bf16.mxu1 %v4916_v47  ;;  %v2625_v47 = vld [vmem:[#allocation17 + $0x538] sm:$0xff] }
 0x45d   :  { %4699 = vmatpush1.bf16.msra.mxu0 %v4698_v32  ;;  %v4918_v32 = vpack.c.bf16 %v2504_v1, %v2496_v63  ;;  %v4946_v63 = vpack.c.bf16 %v2616_v61, %v2608_v55  ;;  %v2633_v1 = vld [vmem:[#allocation17 + $0x578] sm:$0xff]  ;;  %v2475_v55 = vld [vmem:[#allocation17 + $0x88] sm:$0xff] }
 0x45e   :  { %4701 = vmatprep.subr.bf16.mxu0 %v4700_v4  ;;  %v2512_v4 = vld [vmem:[#allocation17 + $0x1b0] sm:$0xff]  ;;  %v4948_v2 = vpack.c.bf16 %v2633_v1, %v2625_v47 }
 0x45f   :  { %4919 = vmatpush1.bf16.msra.mxu1 %v4918_v32  ;;  %v2624_v32 = vld [vmem:[#allocation17 + $0x530] sm:$0xff] }
 0x460   :  { %4921 = vmatprep.subr.bf16.mxu1 %v4920_v5  ;;  %v2641_v5 = vld [vmem:[#allocation17 + $0x5b8] sm:$0xff] }
 0x461   :  { %4703 = vmatpush1.bf16.msra.mxu0 %v4702_v7  ;;  %v4922_v7 = vpack.c.bf16 %v2520_v6, %v2512_v4  ;;  %v4950_v4 = vpack.c.bf16 %v2632_v3, %v2624_v32  ;;  %v2649_v6 = vld [vmem:[#allocation17 + $0x5f8] sm:$0xff]  ;;  %v2474_v32 = vld [vmem:[#allocation17 + $0x80] sm:$0xff] }
 0x462   :  { %4705 = vmatprep.subr.bf16.mxu0 %v4704_v15  ;;  %v2528_v15 = vld [vmem:[#allocation17 + $0x230] sm:$0xff]  ;;  %v4952_v11 = vpack.c.bf16 %v2649_v6, %v2641_v5  ;;  %v2490_v5 = vld [vmem:[#allocation17 + $0x100] sm:$0xff] }
 0x463   :  { %4923 = vmatpush1.bf16.msra.mxu1 %v4922_v7  ;;  %v2640_v7 = vld [vmem:[#allocation17 + $0x5b0] sm:$0xff]  ;;  %v2498_v6 = vld [vmem:[#allocation17 + $0x140] sm:$0xff] }
 0x464   :  { %4925 = vmatprep.subr.bf16.mxu1 %v4924_v12  ;;  %v6036_v12 = vand.u32 127, %v379_v8 }
 0x465   :  { %4707 = vmatpush1.bf16.msra.mxu0 %v4706_v14  ;;  %v4926_v14 = vpack.c.bf16 %v2536_v13, %v2528_v15  ;;  %v4954_v15 = vpack.c.bf16 %v2648_v49, %v2640_v7  ;;  %v2507_v7 = vld [vmem:[#allocation17 + $0x188] sm:$0xff]  ;;  %v4726_v49 = vpack.c.bf16 %v2498_v6, %v2490_v5 }
 0x466   :  { %4709 = vmatprep.subr.bf16.mxu0 %v4708_v27  ;;  %v4928_v27 = vpack.c.bf16 %v2553_v20, %v2545_v19  ;;  %v2238_v13 = vadd.s32 128, %v6036_v12  ;;  %vm2241_vm8 = vcmp.lt.s32.totalorder %v6036_v12, 64  ;;  %vm2249_vm9 = vcmp.ge.s32.totalorder %v6036_v12, 64  ;;  %v2627_v5 = vld [vmem:[#allocation17 + $0x548] sm:$0xff] }
 0x467   :  { %4927 = vmatpush1.bf16.msra.mxu1 %v4926_v14  ;;  %v3834_v20 = vsel %vm2241_vm8, 1.0, %v5535_v0  ;;  %v3835_v21 = vsel %vm2249_vm9, 1.0, %v5535_v0  ;;  %vm3427_vm13 = vcmp.ge.s32.totalorder %v6036_v12, 32  ;;  %vm3431_vm14 = vcmp.lt.s32.totalorder %v6036_v12, 96 }
 0x468   :  { %4929 = vmatprep.subr.bf16.mxu1 %v4928_v27  ;;  %vm2262_vm10 = vcmp.lt.s32.totalorder %v2238_v13, 192  ;;  %vm2270_vm11 = vcmp.ge.s32.totalorder %v2238_v13, 192  ;;  %v2506_v13 = vld [vmem:[#allocation17 + $0x180] sm:$0xff]  ;;  %vm3428_vm15 = vmand %vm3427_vm13, %vm2241_vm8  ;;  %vm3435_vm2 = vcmp.ge.s32.totalorder %v6036_v12, 96 }
 0x469   :  { %4711 = vmatpush1.bf16.msra.mxu0 %v4710_v33  ;;  %v2569_v33 = vld [vmem:[#allocation17 + $0x378] sm:$0xff]  ;;  %v3836_v8 = vsel %vm2262_vm10, 1.0, %v5535_v0  ;;  %vm3432_vm0 = vmand %vm2249_vm9, %vm3431_vm14 }
 0x46a   :  { %4713 = vmatprep.subr.bf16.mxu0 %v4712_v34  ;;  %v2560_v34 = vld [vmem:[#allocation17 + $0x330] sm:$0xff] }
 0x46b   :  { %4931 = vmatpush1.bf16.msra.mxu1 %v4930_v30 }
 0x4e0   :  { %v2144_v24 = vpop.f32.mrb[14].mxu1 }
 0x4e1   :  { %v6027_v35 = vsel %vm2232_vm4, -1e+30, %v2144_v24  ;;  %v2146_v48 = vpop.f32.mrb[15].mxu1  ;;  %v2375_v24 = vld [vmem:[#allocation16 + $0x1e0] sm:$0xff] }
 0x4e2   :  { %v6029_v38 = vsel %vm2233_vm5, -1e+30, %v2146_v48  ;;  %v2280_v44 = vsel %vm2279_vm6, %v6027_v35, -inf  ;;  %v2288_v39 = vsel %vm2287_vm7, %v6027_v35, -inf  ;;  %v2377_v48 = vld [vmem:[#allocation16 + $0x1f0] sm:$0xff] }
 0x4e3   :  { %2281 = vmax.xlane.f32.xlu0 %v2280_v44  ;;  %v2295_v29 = vsel %vm2279_vm6, %v6029_v38, -inf  ;;  %v2302_v16 = vsel %vm2287_vm7, %v6029_v38, -inf  ;;  %v4714_v44 = vpack.c.bf16 %v2377_v48, %v2375_v24  ;;  %v4932_v24 = vpack.c.bf16 %v2569_v33, %v2561_v31  ;;  %v2568_v48 = vld [vmem:[#allocation17 + $0x370] sm:$0xff] }
 0x4e4   :  { %2296 = vmax.xlane.f32.xlu1 %v2295_v29  ;;  %v2459_v29 = vld [vmem:[#allocation17 + $0x8] sm:$0xff] }
 0x4e5   :  { %4715 = vmatpush1.bf16.msra.mxu0 %v4714_v44  ;;  %v4934_v44 = vpack.c.bf16 %v2568_v48, %v2560_v34  ;;  %4933 = vmatprep.subr.bf16.mxu1 %v4932_v24  ;;  %v3837_v34 = vsel %vm2270_vm11, 1.0, %v5535_v0 }
 0x4e7   :  { %2289 = vmax.xlane.f32.xlu0 %v2288_v39  ;;  %v2467_v39 = vld [vmem:[#allocation17 + $0x48] sm:$0xff]  ;;  %4935 = vmatpush1.bf16.msra.mxu1 %v4934_v44 }
 0x4e8   :  { %2303 = vmax.xlane.f32.xlu1 %v2302_v16  ;;  %v4716_v16 = vpack.c.bf16 %v2467_v39, %v2459_v29  ;;  %v2577_v29 = vld [vmem:[#allocation17 + $0x3b8] sm:$0xff] }
 0x4e9   :  { %v2585_v39 = vld [vmem:[#allocation17 + $0x3f8] sm:$0xff] }
 0x4ea   :  { %4717 = vmatprep.subr.bf16.mxu0 %v4716_v16  ;;  %v2576_v16 = vld [vmem:[#allocation17 + $0x3b0] sm:$0xff]  ;;  %v4936_v17 = vpack.c.bf16 %v2585_v39, %v2577_v29 }
 0x4eb   :  { %v4938_v41 = vpack.c.bf16 %v2584_v56, %v2576_v16 }
 0x4ec   :  { %4937 = vmatprep.subr.bf16.mxu1 %v4936_v17 }
 0x4ed   :  { %4939 = vmatpush1.bf16.msra.mxu1 %v4938_v41 }
 0x4ee   :  { %4941 = vmatprep.subr.bf16.mxu1 %v4940_v43 }
 0x4f1   :  { %4943 = vmatpush1.bf16.msra.mxu1 %v4942_v46 }
 0x4f2   :  { %4945 = vmatprep.subr.bf16.mxu1 %v4944_v45  ;;  %v2483_v45 = vld [vmem:[#allocation17 + $0xc8] sm:$0xff] }
 0x4f3   :  { %v4720_v1 = vpack.c.bf16 %v2483_v45, %v2475_v55  ;;  %v2586_v45 = vld [vmem:[#allocation17 + $0x400] sm:$0xff] }
 0x4f5   :  { %4947 = vmatpush1.bf16.msra.mxu1 %v4946_v63  ;;  %v4718_v63 = vpack.c.bf16 %v2466_v54, %v2458_v53  ;;  %v2595_v53 = vld [vmem:[#allocation17 + $0x448] sm:$0xff] }
 0x4f6   :  { %4949 = vmatprep.subr.bf16.mxu1 %v4948_v2  ;;  %v2482_v2 = vld [vmem:[#allocation17 + $0xc0] sm:$0xff] }
 0x4f7   :  { %v4722_v3 = vpack.c.bf16 %v2482_v2, %v2474_v32  ;;  %v2611_v32 = vld [vmem:[#allocation17 + $0x4c8] sm:$0xff] }
 0x4f9   :  { %4951 = vmatpush1.bf16.msra.mxu1 %v4950_v4 }
 0x4fa   :  { %4953 = vmatprep.subr.bf16.mxu1 %v4952_v11  ;;  %v2515_v11 = vld [vmem:[#allocation17 + $0x1c8] sm:$0xff] }
 0x4fd   :  { %4955 = vmatpush1.bf16.msra.mxu1 %v4954_v15  ;;  %v4728_v15 = vpack.c.bf16 %v2515_v11, %v2507_v7  ;;  %v2618_v11 = vld [vmem:[#allocation17 + $0x500] sm:$0xff] }
 0x570   :  { %v2282_v14 = vpop.xlane.xlu0 %2281 }
 0x571   :  { %v2297_v19 = vpop.xlane.xlu1 %2296  ;;  %v2283_v28 = vmul.f32 %v3834_v20, %v2282_v14  ;;  %v2284_v30 = vmul.f32 0.0, %v2282_v14  ;;  %v2514_v14 = vld [vmem:[#allocation17 + $0x1c0] sm:$0xff]  ;;  %v2531_v20 = vld [vmem:[#allocation17 + $0x248] sm:$0xff] }
 0x572   :  { %v2298_v48 = vmul.f32 0.0, %v2297_v19  ;;  %v2299_v44 = vmul.f32 %v3836_v8, %v2297_v19  ;;  %v2523_v19 = vld [vmem:[#allocation17 + $0x208] sm:$0xff] }
 0x573   :  { %v4732_v8 = vpack.c.bf16 %v2531_v20, %v2523_v19  ;;  %v2634_v20 = vld [vmem:[#allocation17 + $0x580] sm:$0xff] }
 0x574   :  { %v2290_v27 = vpop.xlane.xlu0 %2289 }
 0x575   :  { %v2291_v31 = vmul.f32 %v3835_v21, %v2290_v27  ;;  %v2292_v33 = vmul.f32 0.0, %v2290_v27  ;;  %v2304_v24 = vpop.xlane.xlu1 %2303  ;;  %v4730_v21 = vpack.c.bf16 %v2514_v14, %v2506_v13  ;;  %v2522_v27 = vld [vmem:[#allocation17 + $0x200] sm:$0xff]  ;;  %v2643_v13 = vld [vmem:[#allocation17 + $0x5c8] sm:$0xff] }
 0x576   :  { %v2305_v56 = vmul.f32 0.0, %v2304_v24  ;;  %v2306_v41 = vmul.f32 %v3837_v34, %v2304_v24  ;;  %v2538_v24 = vld [vmem:[#allocation17 + $0x280] sm:$0xff] }
 0x577   :  { %v2293_v29 = vadd.f32 %v2291_v31, %v2283_v28  ;;  %v2294_v39 = vadd.f32 %v2292_v33, %v2284_v30  ;;  %v2530_v28 = vld [vmem:[#allocation17 + $0x240] sm:$0xff]  ;;  %v2539_v30 = vld [vmem:[#allocation17 + $0x288] sm:$0xff] }
 0x578   :  { %v2547_v31 = vld [vmem:[#allocation17 + $0x2c8] sm:$0xff]  ;;  %v4734_v33 = vpack.c.bf16 %v2530_v28, %v2522_v27 }
 0x579   :  { %v2300_v16 = vadd.f32 %v2298_v48, %v2293_v29  ;;  %v2301_v17 = vadd.f32 %v2299_v44, %v2294_v39  ;;  %v4736_v34 = vpack.c.bf16 %v2547_v31, %v2539_v30  ;;  %v2546_v48 = vld [vmem:[#allocation17 + $0x2c0] sm:$0xff]  ;;  %v2555_v44 = vld [vmem:[#allocation17 + $0x308] sm:$0xff] }
 0x57a   :  { %v2563_v29 = vld [vmem:[#allocation17 + $0x348] sm:$0xff]  ;;  %v4738_v39 = vpack.c.bf16 %v2546_v48, %v2538_v24  ;;  %v2650_v31 = vld [vmem:[#allocation17 + $0x600] sm:$0xff]  ;;  %v2665_v48 = vld [vmem:[#allocation17 + $0x678] sm:$0xff] }
 0x57b   :  { %v2307_v26 = vadd.f32 %v2305_v56, %v2300_v16  ;;  %v2308_v42 = vadd.f32 %v2306_v41, %v2301_v17  ;;  %v4740_v16 = vpack.c.bf16 %v2563_v29, %v2555_v44  ;;  %v2554_v17 = vld [vmem:[#allocation17 + $0x300] sm:$0xff]  ;;  %v2571_v41 = vld [vmem:[#allocation17 + $0x388] sm:$0xff]  ;;  %v2656_v44 = vld [vmem:[#allocation17 + $0x630] sm:$0xff] }
 0x57c   :  { %v2562_v56 = vld [vmem:[#allocation17 + $0x340] sm:$0xff]  ;;  %v2651_v27 = vld [vmem:[#allocation17 + $0x608] sm:$0xff]  ;;  %v2664_v29 = vld [vmem:[#allocation17 + $0x670] sm:$0xff] }
 0x57d   :  { %v2309_v57 = vsub.f32 %v6027_v35, %v2307_v26  ;;  %v2310_v43 = vsub.f32 %v6029_v38, %v2308_v42  ;;  %v2491_v35 = vld [vmem:[#allocation17 + $0x108] sm:$0xff]  ;;  %v4742_v42 = vpack.c.bf16 %v2562_v56, %v2554_v17 }
 0x57e   :  { %v2499_v38 = vld [vmem:[#allocation17 + $0x148] sm:$0xff] }
 0x57f   :  { %v2311_v59 = vmul.f32 1.442695, %v2309_v57  ;;  %v2313_v46 = vmul.f32 1.442695, %v2310_v43  ;;  %v4724_v4 = vpack.c.bf16 %v2499_v38, %v2491_v35  ;;  %v2579_v26 = vld [vmem:[#allocation17 + $0x3c8] sm:$0xff]  ;;  %v2570_v43 = vld [vmem:[#allocation17 + $0x380] sm:$0xff] }
 0x580   :  { %v4744_v57 = vpack.c.bf16 %v2579_v26, %v2571_v41  ;;  %v2602_v38 = vld [vmem:[#allocation17 + $0x480] sm:$0xff]  ;;  %v2659_v28 = vld [vmem:[#allocation17 + $0x648] sm:$0xff] }
 0x581   :  { %5179 = vpow2.f32 %v2311_v59  ;;  %v2578_v59 = vld [vmem:[#allocation17 + $0x3c0] sm:$0xff]  ;;  %v4764_v30 = vpack.c.bf16 %v2659_v28, %v2651_v27  ;;  %v2667_v17 = vld [vmem:[#allocation17 + $0x688] sm:$0xff]  ;;  %v2712_v28 = vld [vmem:[#allocation17 + $0x7f0] sm:$0xff] }
 0x582   :  { %5181 = vpow2.f32 %v2313_v46  ;;  %v2587_v46 = vld [vmem:[#allocation17 + $0x408] sm:$0xff]  ;;  %v4746_v54 = vpack.c.bf16 %v2578_v59, %v2570_v43  ;;  %v2666_v26 = vld [vmem:[#allocation17 + $0x680] sm:$0xff]  ;;  %v2681_v59 = vld [vmem:[#allocation17 + $0x6f8] sm:$0xff] }
 0x583   :  { %v4748_v55 = vpack.c.bf16 %v2595_v53, %v2587_v46  ;;  %v2675_v56 = vld [vmem:[#allocation17 + $0x6c8] sm:$0xff]  ;;  %v2672_v46 = vld [vmem:[#allocation17 + $0x6b0] sm:$0xff] }
 0x584   :  { %v4768_v41 = vpack.c.bf16 %v2675_v56, %v2667_v17  ;;  %v2680_v53 = vld [vmem:[#allocation17 + $0x6f0] sm:$0xff]  ;;  %v2477_v56 = vld [vmem:[#allocation17 + $0x98] sm:$0xff] }
 0x58b   :  { %v6051_v61 = vpop.eup %5179 }
 0x58c   :  { %v6053_v47 = vpop.eup %5181 }
 0x58d   :  { %2443 = vmatprep.mubr.f32.mxu0 %v6053_v47 }
 0x58e   :  { %2444 = vmatmul.mubr.f32.vlgmr.msra.gmra.mrb[14].mxu0 %v6051_v61 }
 0x58f   :  { %4719 = vmatpush1.bf16.msra.mxu0 %v4718_v63  ;;  %v2594_v63 = vld [vmem:[#allocation17 + $0x440] sm:$0xff] }
 0x590   :  { %4721 = vmatprep.subr.bf16.mxu0 %v4720_v1  ;;  %v2603_v1 = vld [vmem:[#allocation17 + $0x488] sm:$0xff]  ;;  %v4750_v2 = vpack.c.bf16 %v2594_v63, %v2586_v45 }
 0x591   :  { %v4752_v35 = vpack.c.bf16 %v2611_v32, %v2603_v1  ;;  %v2683_v45 = vld [vmem:[#allocation17 + $0x708] sm:$0xff]  ;;  %v2682_v1 = vld [vmem:[#allocation17 + $0x700] sm:$0xff] }
 0x592   :  { %v2691_v63 = vld [vmem:[#allocation17 + $0x748] sm:$0xff] }
 0x593   :  { %4723 = vmatpush1.bf16.msra.mxu0 %v4722_v3  ;;  %v2610_v3 = vld [vmem:[#allocation17 + $0x4c0] sm:$0xff]  ;;  %v4772_v32 = vpack.c.bf16 %v2691_v63, %v2683_v45  ;;  %v2492_v45 = vld [vmem:[#allocation17 + $0x110] sm:$0xff] }
 0x594   :  { %4725 = vmatprep.subr.bf16.mxu0 %v4724_v4  ;;  %v2619_v4 = vld [vmem:[#allocation17 + $0x508] sm:$0xff]  ;;  %v4754_v6 = vpack.c.bf16 %v2610_v3, %v2602_v38  ;;  %v2697_v38 = vld [vmem:[#allocation17 + $0x778] sm:$0xff]  ;;  %v2500_v63 = vld [vmem:[#allocation17 + $0x150] sm:$0xff] }
 0x595   :  { %v4756_v7 = vpack.c.bf16 %v2627_v5, %v2619_v4  ;;  %v2688_v5 = vld [vmem:[#allocation17 + $0x730] sm:$0xff] }
 0x597   :  { %4727 = vmatpush1.bf16.msra.mxu0 %v4726_v49  ;;  %v2626_v49 = vld [vmem:[#allocation17 + $0x540] sm:$0xff] }
 0x598   :  { %4729 = vmatprep.subr.bf16.mxu0 %v4728_v15  ;;  %v2635_v15 = vld [vmem:[#allocation17 + $0x588] sm:$0xff]  ;;  %v4758_v14 = vpack.c.bf16 %v2626_v49, %v2618_v11 }
 0x599   :  { %v4760_v19 = vpack.c.bf16 %v2643_v13, %v2635_v15  ;;  %v2707_v49 = vld [vmem:[#allocation17 + $0x7c8] sm:$0xff]  ;;  %v2698_v15 = vld [vmem:[#allocation17 + $0x780] sm:$0xff] }
 0x59a   :  { %v2706_v13 = vld [vmem:[#allocation17 + $0x7c0] sm:$0xff] }
 0x59b   :  { %4731 = vmatpush1.bf16.msra.mxu0 %v4730_v21  ;;  %v2642_v21 = vld [vmem:[#allocation17 + $0x5c0] sm:$0xff] }
 0x59c   :  { %4733 = vmatprep.subr.bf16.mxu0 %v4732_v8  ;;  %v4762_v8 = vpack.c.bf16 %v2642_v21, %v2634_v20  ;;  %v2713_v20 = vld [vmem:[#allocation17 + $0x7f8] sm:$0xff]  ;;  %v2704_v21 = vld [vmem:[#allocation17 + $0x7b0] sm:$0xff] }
 0x59f   :  { %4735 = vmatpush1.bf16.msra.mxu0 %v4734_v33  ;;  %v2658_v33 = vld [vmem:[#allocation17 + $0x640] sm:$0xff] }
 0x5a0   :  { %4737 = vmatprep.subr.bf16.mxu0 %v4736_v34  ;;  %v2657_v34 = vld [vmem:[#allocation17 + $0x638] sm:$0xff]  ;;  %v4766_v24 = vpack.c.bf16 %v2658_v33, %v2650_v31 }
 0x5a1   :  { %v2461_v31 = vld [vmem:[#allocation17 + $0x18] sm:$0xff] }
 0x5a2   :  { %v2469_v33 = vld [vmem:[#allocation17 + $0x58] sm:$0xff] }
 0x5a3   :  { %4739 = vmatpush1.bf16.msra.mxu0 %v4738_v39  ;;  %v4956_v39 = vpack.c.bf16 %v2665_v48, %v2657_v34  ;;  %v4780_v34 = vpack.c.bf16 %v2469_v33, %v2461_v31  ;;  %v2556_v31 = vld [vmem:[#allocation17 + $0x310] sm:$0xff] }
 0x5a4   :  { %4741 = vmatprep.subr.bf16.mxu0 %v4740_v16  ;;  %v4958_v16 = vpack.c.bf16 %v2664_v29, %v2656_v44  ;;  %v2564_v33 = vld [vmem:[#allocation17 + $0x350] sm:$0xff] }
 0x5a5   :  { %4957 = vmatprep.subr.bf16.mxu1 %v4956_v39  ;;  %v2460_v39 = vld [vmem:[#allocation17 + $0x10] sm:$0xff] }
 0x5a6   :  { %4959 = vmatpush1.bf16.msra.mxu1 %v4958_v16  ;;  %v2468_v16 = vld [vmem:[#allocation17 + $0x50] sm:$0xff] }
 0x5a7   :  { %4743 = vmatpush1.bf16.msra.mxu0 %v4742_v42  ;;  %v2674_v42 = vld [vmem:[#allocation17 + $0x6c0] sm:$0xff] }
 0x5a8   :  { %4745 = vmatprep.subr.bf16.mxu0 %v4744_v57  ;;  %v2673_v57 = vld [vmem:[#allocation17 + $0x6b8] sm:$0xff]  ;;  %v4770_v43 = vpack.c.bf16 %v2674_v42, %v2666_v26 }
 0x5ab   :  { %4747 = vmatpush1.bf16.msra.mxu0 %v4746_v54  ;;  %v4960_v54 = vpack.c.bf16 %v2681_v59, %v2673_v57  ;;  %v4782_v57 = vpack.c.bf16 %v2468_v16, %v2460_v39  ;;  %v2580_v39 = vld [vmem:[#allocation17 + $0x3d0] sm:$0xff]  ;;  %v2589_v16 = vld [vmem:[#allocation17 + $0x418] sm:$0xff] }
 0x5ac   :  { %4749 = vmatprep.subr.bf16.mxu0 %v4748_v55  ;;  %v4962_v55 = vpack.c.bf16 %v2680_v53, %v2672_v46  ;;  %v2476_v46 = vld [vmem:[#allocation17 + $0x90] sm:$0xff] }
 0x5ad   :  { %4961 = vmatprep.subr.bf16.mxu1 %v4960_v54  ;;  %v2484_v53 = vld [vmem:[#allocation17 + $0xd0] sm:$0xff]  ;;  %v2493_v54 = vld [vmem:[#allocation17 + $0x118] sm:$0xff] }
 0x5ae   :  { %4963 = vmatpush1.bf16.msra.mxu1 %v4962_v55  ;;  %v2501_v55 = vld [vmem:[#allocation17 + $0x158] sm:$0xff] }
 0x5af   :  { %4751 = vmatpush1.bf16.msra.mxu0 %v4750_v2  ;;  %v2690_v2 = vld [vmem:[#allocation17 + $0x740] sm:$0xff] }
 0x5b0   :  { %4753 = vmatprep.subr.bf16.mxu0 %v4752_v35  ;;  %v2689_v35 = vld [vmem:[#allocation17 + $0x738] sm:$0xff]  ;;  %v4774_v3 = vpack.c.bf16 %v2690_v2, %v2682_v1  ;;  %v4790_v2 = vpack.c.bf16 %v2500_v63, %v2492_v45 }
 0x5b1   :  { %v4964_v4 = vpack.c.bf16 %v2697_v38, %v2689_v35  ;;  %v2509_v1 = vld [vmem:[#allocation17 + $0x198] sm:$0xff]  ;;  %v2508_v38 = vld [vmem:[#allocation17 + $0x190] sm:$0xff] }
 0x5b2   :  { %v2629_v45 = vld [vmem:[#allocation17 + $0x558] sm:$0xff] }
 0x5b3   :  { %4755 = vmatpush1.bf16.msra.mxu0 %v4754_v6  ;;  %v2696_v6 = vld [vmem:[#allocation17 + $0x770] sm:$0xff]  ;;  %4965 = vmatprep.subr.bf16.mxu1 %v4964_v4  ;;  %v2525_v4 = vld [vmem:[#allocation17 + $0x218] sm:$0xff] }
 0x5b4   :  { %4757 = vmatprep.subr.bf16.mxu0 %v4756_v7  ;;  %v2699_v7 = vld [vmem:[#allocation17 + $0x788] sm:$0xff]  ;;  %v4966_v11 = vpack.c.bf16 %v2696_v6, %v2688_v5  ;;  %v2533_v5 = vld [vmem:[#allocation17 + $0x258] sm:$0xff] }
 0x5b6   :  { %4967 = vmatpush1.bf16.msra.mxu1 %v4966_v11  ;;  %v2524_v11 = vld [vmem:[#allocation17 + $0x210] sm:$0xff] }
 0x5b7   :  { %4759 = vmatpush1.bf16.msra.mxu0 %v4758_v14  ;;  %v4776_v14 = vpack.c.bf16 %v2707_v49, %v2699_v7  ;;  %v4796_v7 = vpack.c.bf16 %v2533_v5, %v2525_v4  ;;  %v2532_v49 = vld [vmem:[#allocation17 + $0x250] sm:$0xff] }
 0x5b8   :  { %4761 = vmatprep.subr.bf16.mxu0 %v4760_v19  ;;  %v2705_v19 = vld [vmem:[#allocation17 + $0x7b8] sm:$0xff]  ;;  %v2636_v5 = vld [vmem:[#allocation17 + $0x590] sm:$0xff] }
 0x5b9   :  { %v4968_v27 = vpack.c.bf16 %v2713_v20, %v2705_v19  ;;  %v2540_v20 = vld [vmem:[#allocation17 + $0x290] sm:$0xff] }
 0x5bb   :  { %4763 = vmatpush1.bf16.msra.mxu0 %v4762_v8  ;;  %v4778_v8 = vpack.c.bf16 %v2706_v13, %v2698_v15  ;;  %4969 = vmatprep.subr.bf16.mxu1 %v4968_v27  ;;  %v2541_v15 = vld [vmem:[#allocation17 + $0x298] sm:$0xff] }
 0x5bc   :  { %4765 = vmatprep.subr.bf16.mxu0 %v4764_v30  ;;  %v4970_v30 = vpack.c.bf16 %v2712_v28, %v2704_v21  ;;  %v2549_v13 = vld [vmem:[#allocation17 + $0x2d8] sm:$0xff]  ;;  %v2548_v21 = vld [vmem:[#allocation17 + $0x2d0] sm:$0xff] }
 0x5bd   :  { %v4800_v19 = vpack.c.bf16 %v2549_v13, %v2541_v15  ;;  %v2565_v27 = vld [vmem:[#allocation17 + $0x358] sm:$0xff]  ;;  %v4802_v28 = vpack.c.bf16 %v2548_v21, %v2540_v20  ;;  %v2652_v13 = vld [vmem:[#allocation17 + $0x610] sm:$0xff] }
 0x5be   :  { %4971 = vmatpush1.bf16.msra.mxu1 %v4970_v30  ;;  %v2677_v20 = vld [vmem:[#allocation17 + $0x6d8] sm:$0xff] }
 0x5bf   :  { %4767 = vmatpush1.bf16.msra.mxu0 %v4766_v24 }
 0x5c0   :  { %4769 = vmatprep.subr.bf16.mxu0 %v4768_v41  ;;  %v2485_v41 = vld [vmem:[#allocation17 + $0xd8] sm:$0xff] }
 0x5c1   :  { %v4784_v59 = vpack.c.bf16 %v2485_v41, %v2477_v56 }
 0x5c3   :  { %4771 = vmatpush1.bf16.msra.mxu0 %v4770_v43 }
 0x5c4   :  { %4773 = vmatprep.subr.bf16.mxu0 %v4772_v32  ;;  %v2517_v32 = vld [vmem:[#allocation17 + $0x1d8] sm:$0xff] }
 0x5c5   :  { %v4792_v35 = vpack.c.bf16 %v2517_v32, %v2509_v1  ;;  %v2620_v32 = vld [vmem:[#allocation17 + $0x510] sm:$0xff] }
 0x5c7   :  { %4775 = vmatpush1.bf16.msra.mxu0 %v4774_v3  ;;  %v2516_v3 = vld [vmem:[#allocation17 + $0x1d0] sm:$0xff] }
 0x5c8   :  { %4777 = vmatprep.subr.bf16.mxu0 %v4776_v14  ;;  %v4794_v6 = vpack.c.bf16 %v2516_v3, %v2508_v38  ;;  %v4798_v14 = vpack.c.bf16 %v2532_v49, %v2524_v11  ;;  %v2645_v38 = vld [vmem:[#allocation17 + $0x5d8] sm:$0xff] }
 0x5c9   :  { %v2661_v11 = vld [vmem:[#allocation17 + $0x658] sm:$0xff] }
 0x5cb   :  { %4779 = vmatpush1.bf16.msra.mxu0 %v4778_v8  ;;  %v2557_v8 = vld [vmem:[#allocation17 + $0x318] sm:$0xff] }
 0x5cc   :  { %4781 = vmatprep.subr.bf16.mxu0 %v4780_v34  ;;  %v4804_v30 = vpack.c.bf16 %v2565_v27, %v2557_v8  ;;  %v2573_v34 = vld [vmem:[#allocation17 + $0x398] sm:$0xff]  ;;  %v2668_v27 = vld [vmem:[#allocation17 + $0x690] sm:$0xff] }
 0x661   :  { %v2445_v24 = vpop.f32.mrb[14].mxu0 }
 0x662   :  { %v2450_v48 = vmax.f32 %v2445_v24, 1e-30  ;;  %v2447_v44 = vpop.f32.mrb[15].mxu0  ;;  %v2581_v24 = vld [vmem:[#allocation17 + $0x3d8] sm:$0xff] }
 0x663   :  { %v2451_v29 = vmax.f32 %v2447_v44, 1e-30  ;;  %v4808_v44 = vpack.c.bf16 %v2581_v24, %v2573_v34  ;;  %v2684_v24 = vld [vmem:[#allocation17 + $0x710] sm:$0xff] }
 0x664   :  { %5183 = vrcp.f32 %v2450_v48  ;;  %v4806_v48 = vpack.c.bf16 %v2564_v33, %v2556_v31  ;;  %v2693_v31 = vld [vmem:[#allocation17 + $0x758] sm:$0xff] }
 0x665   :  { %5185 = vrcp.f32 %v2451_v29  ;;  %v2572_v29 = vld [vmem:[#allocation17 + $0x390] sm:$0xff] }
 0x666   :  { %v4810_v56 = vpack.c.bf16 %v2580_v39, %v2572_v29  ;;  %v2709_v29 = vld [vmem:[#allocation17 + $0x7d8] sm:$0xff] }
 0x66e   :  { %v5184_v17 = vpop.eup %5183 }
 0x66f   :  { %v5186_v26 = vpop.eup %5185  ;;  %v6061_v43 = vmul.f32 %v5184_v17, %v6051_v61  ;;  %v4788_v61 = vpack.c.bf16 %v2501_v55, %v2493_v54  ;;  %v2597_v17 = vld [vmem:[#allocation17 + $0x458] sm:$0xff]  ;;  %v2604_v55 = vld [vmem:[#allocation17 + $0x490] sm:$0xff] }
 0x670   :  { %v6058_v42 = vmul.f32 %v5186_v26, %v6053_v47  ;;  %v4786_v47 = vpack.c.bf16 %v2484_v53, %v2476_v46  ;;  %v4812_v41 = vpack.c.bf16 %v2597_v17, %v2589_v16  ;;  %v2588_v26 = vld [vmem:[#allocation17 + $0x410] sm:$0xff]  ;;  %v2613_v46 = vld [vmem:[#allocation17 + $0x4d8] sm:$0xff] }
 0x671   :  { %v2700_v17 = vld [vmem:[#allocation17 + $0x790] sm:$0xff] }
 0x672   :  { %2778 = vmatprep.mubr.f32.mxu0 %v6058_v42  ;;  %2991 = vmatprep.mubr.f32.mxu1 %v6058_v42 }
 0x673   :  { %2779 = vmatmul.mubr.f32.vlgmr.msra.gmra.mrb[16].mxu0 %v6061_v43  ;;  %2992 = vmatmul.mubr.f32.vlgmr.msra.gmra.mrb[16].mxu1 %v6061_v43 }
 0x674   :  { %4783 = vmatpush1.bf16.msra.mxu0 %v4782_v57  ;;  %2849 = vmatprep.mubr.f32.mxu0 %v6058_v42  ;;  %v2596_v57 = vld [vmem:[#allocation17 + $0x450] sm:$0xff] }
 0x675   :  { %4785 = vmatprep.subr.bf16.mxu0 %v4784_v59  ;;  %v2605_v59 = vld [vmem:[#allocation17 + $0x498] sm:$0xff]  ;;  %v4814_v53 = vpack.c.bf16 %v2596_v57, %v2588_v26  ;;  %v2471_v26 = vld [vmem:[#allocation17 + $0x68] sm:$0xff] }
 0x676   :  { %v4816_v54 = vpack.c.bf16 %v2613_v46, %v2605_v59  ;;  %v2462_v46 = vld [vmem:[#allocation17 + $0x20] sm:$0xff] }
 0x678   :  { %4787 = vmatpush1.bf16.msra.mxu0 %v4786_v47  ;;  %v2612_v47 = vld [vmem:[#allocation17 + $0x4d0] sm:$0xff] }
 0x679   :  { %4789 = vmatprep.subr.bf16.mxu0 %v4788_v61  ;;  %v2621_v61 = vld [vmem:[#allocation17 + $0x518] sm:$0xff]  ;;  %v4818_v63 = vpack.c.bf16 %v2612_v47, %v2604_v55  ;;  %v2487_v55 = vld [vmem:[#allocation17 + $0xe8] sm:$0xff] }
 0x67a   :  { %v4820_v1 = vpack.c.bf16 %v2629_v45, %v2621_v61  ;;  %v2478_v45 = vld [vmem:[#allocation17 + $0xa0] sm:$0xff] }
 0x67c   :  { %4791 = vmatpush1.bf16.msra.mxu0 %v4790_v2  ;;  %v2628_v2 = vld [vmem:[#allocation17 + $0x550] sm:$0xff] }
 0x67d   :  { %4793 = vmatprep.subr.bf16.mxu0 %v4792_v35  ;;  %v2637_v35 = vld [vmem:[#allocation17 + $0x598] sm:$0xff]  ;;  %v4822_v3 = vpack.c.bf16 %v2628_v2, %v2620_v32  ;;  %v2503_v32 = vld [vmem:[#allocation17 + $0x168] sm:$0xff] }
 0x67e   :  { %v4824_v4 = vpack.c.bf16 %v2645_v38, %v2637_v35  ;;  %v2494_v38 = vld [vmem:[#allocation17 + $0x120] sm:$0xff] }
 0x680   :  { %4795 = vmatpush1.bf16.msra.mxu0 %v4794_v6  ;;  %v2644_v6 = vld [vmem:[#allocation17 + $0x5d0] sm:$0xff] }
 0x681   :  { %4797 = vmatprep.subr.bf16.mxu0 %v4796_v7  ;;  %v2653_v7 = vld [vmem:[#allocation17 + $0x618] sm:$0xff]  ;;  %v4826_v49 = vpack.c.bf16 %v2644_v6, %v2636_v5  ;;  %v2519_v5 = vld [vmem:[#allocation17 + $0x1e8] sm:$0xff] }
 0x682   :  { %v4828_v15 = vpack.c.bf16 %v2661_v11, %v2653_v7  ;;  %v2510_v11 = vld [vmem:[#allocation17 + $0x1a0] sm:$0xff] }
 0x684   :  { %4799 = vmatpush1.bf16.msra.mxu0 %v4798_v14  ;;  %v2660_v14 = vld [vmem:[#allocation17 + $0x650] sm:$0xff] }
 0x685   :  { %4801 = vmatprep.subr.bf16.mxu0 %v4800_v19  ;;  %v2669_v19 = vld [vmem:[#allocation17 + $0x698] sm:$0xff]  ;;  %v4830_v21 = vpack.c.bf16 %v2660_v14, %v2652_v13  ;;  %v2535_v13 = vld [vmem:[#allocation17 + $0x268] sm:$0xff] }
 0x686   :  { %v4832_v8 = vpack.c.bf16 %v2677_v20, %v2669_v19  ;;  %v2534_v20 = vld [vmem:[#allocation17 + $0x260] sm:$0xff] }
 0x688   :  { %4803 = vmatpush1.bf16.msra.mxu0 %v4802_v28  ;;  %v2676_v28 = vld [vmem:[#allocation17 + $0x6d0] sm:$0xff] }
 0x689   :  { %4805 = vmatprep.subr.bf16.mxu0 %v4804_v30  ;;  %v2685_v30 = vld [vmem:[#allocation17 + $0x718] sm:$0xff]  ;;  %v4834_v33 = vpack.c.bf16 %v2676_v28, %v2668_v27 }
 0x68a   :  { %v4836_v34 = vpack.c.bf16 %v2693_v31, %v2685_v30  ;;  %v2542_v30 = vld [vmem:[#allocation17 + $0x2a0] sm:$0xff] }
 0x68b   :  { %v2550_v31 = vld [vmem:[#allocation17 + $0x2e0] sm:$0xff] }
 0x68c   :  { %4807 = vmatpush1.bf16.msra.mxu0 %v4806_v48  ;;  %v2692_v48 = vld [vmem:[#allocation17 + $0x750] sm:$0xff] }
 0x68d   :  { %4809 = vmatprep.subr.bf16.mxu0 %v4808_v44  ;;  %v2701_v44 = vld [vmem:[#allocation17 + $0x798] sm:$0xff]  ;;  %v4838_v39 = vpack.c.bf16 %v2692_v48, %v2684_v24  ;;  %v4866_v24 = vpack.c.bf16 %v2550_v31, %v2542_v30 }
 0x68e   :  { %v4840_v16 = vpack.c.bf16 %v2709_v29, %v2701_v44  ;;  %v2558_v44 = vld [vmem:[#allocation17 + $0x320] sm:$0xff] }
 0x68f   :  { %v2566_v29 = vld [vmem:[#allocation17 + $0x360] sm:$0xff] }
 0x690   :  { %4811 = vmatpush1.bf16.msra.mxu0 %v4810_v56  ;;  %v2708_v56 = vld [vmem:[#allocation17 + $0x7d0] sm:$0xff] }
 0x691   :  { %4813 = vmatprep.subr.bf16.mxu0 %v4812_v41  ;;  %v2463_v41 = vld [vmem:[#allocation17 + $0x28] sm:$0xff]  ;;  %v4842_v57 = vpack.c.bf16 %v2708_v56, %v2700_v17  ;;  %v4870_v17 = vpack.c.bf16 %v2566_v29, %v2558_v44 }
 0x692   :  { %v4844_v59 = vpack.c.bf16 %v2471_v26, %v2463_v41  ;;  %v2574_v41 = vld [vmem:[#allocation17 + $0x3a0] sm:$0xff] }
 0x693   :  { %v2582_v26 = vld [vmem:[#allocation17 + $0x3e0] sm:$0xff] }
 0x694   :  { %4815 = vmatpush1.bf16.msra.mxu0 %v4814_v53  ;;  %v2470_v53 = vld [vmem:[#allocation17 + $0x60] sm:$0xff] }
 0x695   :  { %4817 = vmatprep.subr.bf16.mxu0 %v4816_v54  ;;  %v2479_v54 = vld [vmem:[#allocation17 + $0xa8] sm:$0xff]  ;;  %v4846_v47 = vpack.c.bf16 %v2470_v53, %v2462_v46  ;;  %v4874_v46 = vpack.c.bf16 %v2582_v26, %v2574_v41 }
 0x696   :  { %v4848_v61 = vpack.c.bf16 %v2487_v55, %v2479_v54  ;;  %v2590_v54 = vld [vmem:[#allocation17 + $0x420] sm:$0xff] }
 0x697   :  { %v2598_v55 = vld [vmem:[#allocation17 + $0x460] sm:$0xff] }
 0x698   :  { %4819 = vmatpush1.bf16.msra.mxu0 %v4818_v63  ;;  %v2486_v63 = vld [vmem:[#allocation17 + $0xe0] sm:$0xff] }
 0x699   :  { %4821 = vmatprep.subr.bf16.mxu0 %v4820_v1  ;;  %v2495_v1 = vld [vmem:[#allocation17 + $0x128] sm:$0xff]  ;;  %v4850_v2 = vpack.c.bf16 %v2486_v63, %v2478_v45  ;;  %v4878_v45 = vpack.c.bf16 %v2598_v55, %v2590_v54 }
 0x69a   :  { %v4852_v35 = vpack.c.bf16 %v2503_v32, %v2495_v1  ;;  %v2606_v1 = vld [vmem:[#allocation17 + $0x4a0] sm:$0xff] }
 0x69b   :  { %v2614_v32 = vld [vmem:[#allocation17 + $0x4e0] sm:$0xff] }
 0x69c   :  { %4823 = vmatpush1.bf16.msra.mxu0 %v4822_v3  ;;  %v2502_v3 = vld [vmem:[#allocation17 + $0x160] sm:$0xff] }
 0x69d   :  { %4825 = vmatprep.subr.bf16.mxu0 %v4824_v4  ;;  %v2511_v4 = vld [vmem:[#allocation17 + $0x1a8] sm:$0xff]  ;;  %v4854_v6 = vpack.c.bf16 %v2502_v3, %v2494_v38  ;;  %v4882_v38 = vpack.c.bf16 %v2614_v32, %v2606_v1 }
 0x69e   :  { %v4856_v7 = vpack.c.bf16 %v2519_v5, %v2511_v4  ;;  %v2622_v4 = vld [vmem:[#allocation17 + $0x520] sm:$0xff] }
 0x69f   :  { %v2630_v5 = vld [vmem:[#allocation17 + $0x560] sm:$0xff] }
 0x6a0   :  { %4827 = vmatpush1.bf16.msra.mxu0 %v4826_v49  ;;  %v2518_v49 = vld [vmem:[#allocation17 + $0x1e0] sm:$0xff] }
 0x6a1   :  { %4829 = vmatprep.subr.bf16.mxu0 %v4828_v15  ;;  %v2527_v15 = vld [vmem:[#allocation17 + $0x228] sm:$0xff]  ;;  %v4858_v14 = vpack.c.bf16 %v2518_v49, %v2510_v11  ;;  %v4886_v11 = vpack.c.bf16 %v2630_v5, %v2622_v4 }
 0x6a2   :  { %v4860_v19 = vpack.c.bf16 %v2535_v13, %v2527_v15  ;;  %v2638_v15 = vld [vmem:[#allocation17 + $0x5a0] sm:$0xff] }
 0x6a3   :  { %v2646_v13 = vld [vmem:[#allocation17 + $0x5e0] sm:$0xff] }
 0x6a4   :  { %4831 = vmatpush1.bf16.msra.mxu0 %v4830_v21  ;;  %v2543_v21 = vld [vmem:[#allocation17 + $0x2a8] sm:$0xff] }
 0x6a5   :  { %4833 = vmatprep.subr.bf16.mxu0 %v4832_v8  ;;  %v2551_v8 = vld [vmem:[#allocation17 + $0x2e8] sm:$0xff] }
 0x6a6   :  { %v4864_v28 = vpack.c.bf16 %v2551_v8, %v2543_v21  ;;  %v2654_v21 = vld [vmem:[#allocation17 + $0x620] sm:$0xff] }
 0x6a7   :  { %v2662_v8 = vld [vmem:[#allocation17 + $0x660] sm:$0xff] }
 0x6a8   :  { %4835 = vmatpush1.bf16.msra.mxu0 %v4834_v33  ;;  %v2559_v33 = vld [vmem:[#allocation17 + $0x328] sm:$0xff]  ;;  %v4894_v30 = vpack.c.bf16 %v2662_v8, %v2654_v21  ;;  %v3014_v8 = vld [vmem:[#allocation19 + $0x40] sm:$0xff] }
 0x6a9   :  { %4837 = vmatprep.subr.bf16.mxu0 %v4836_v34  ;;  %v2567_v34 = vld [vmem:[#allocation17 + $0x368] sm:$0xff] }
 0x6aa   :  { %v4868_v48 = vpack.c.bf16 %v2567_v34, %v2559_v33  ;;  %v2670_v33 = vld [vmem:[#allocation17 + $0x6a0] sm:$0xff] }
 0x6ab   :  { %v2678_v34 = vld [vmem:[#allocation17 + $0x6e0] sm:$0xff] }
 0x6ac   :  { %4839 = vmatpush1.bf16.msra.mxu0 %v4838_v39  ;;  %v2575_v39 = vld [vmem:[#allocation17 + $0x3a8] sm:$0xff]  ;;  %v4898_v44 = vpack.c.bf16 %v2678_v34, %v2670_v33  ;;  %v3016_v34 = vld [vmem:[#allocation19 + $0x50] sm:$0xff] }
 0x6ad   :  { %4841 = vmatprep.subr.bf16.mxu0 %v4840_v16  ;;  %v2583_v16 = vld [vmem:[#allocation17 + $0x3e8] sm:$0xff] }
 0x6ae   :  { %v4872_v56 = vpack.c.bf16 %v2583_v16, %v2575_v39  ;;  %v2686_v39 = vld [vmem:[#allocation17 + $0x720] sm:$0xff] }
 0x6af   :  { %v2694_v16 = vld [vmem:[#allocation17 + $0x760] sm:$0xff] }
 0x6b0   :  { %4843 = vmatpush1.bf16.msra.mxu0 %v4842_v57  ;;  %v2591_v57 = vld [vmem:[#allocation17 + $0x428] sm:$0xff]  ;;  %v4902_v41 = vpack.c.bf16 %v2694_v16, %v2686_v39  ;;  %v3018_v16 = vld [vmem:[#allocation19 + $0x60] sm:$0xff] }
 0x6b1   :  { %4845 = vmatprep.subr.bf16.mxu0 %v4844_v59  ;;  %v2599_v59 = vld [vmem:[#allocation17 + $0x468] sm:$0xff] }
 0x6b2   :  { %v4876_v53 = vpack.c.bf16 %v2599_v59, %v2591_v57  ;;  %v2702_v57 = vld [vmem:[#allocation17 + $0x7a0] sm:$0xff] }
 0x6b3   :  { %2850 = vmatmul.mubr.f32.vlgmr.msra.gmra.mrb[18].mxu0 %v6061_v43  ;;  %v2710_v59 = vld [vmem:[#allocation17 + $0x7e0] sm:$0xff] }
 0x6b4   :  { %4847 = vmatpush1.bf16.msra.mxu0 %v4846_v47  ;;  %2920 = vmatprep.mubr.f32.mxu0 %v6058_v42  ;;  %v2526_v42 = vld [vmem:[#allocation17 + $0x220] sm:$0xff]  ;;  %v2607_v47 = vld [vmem:[#allocation17 + $0x4a8] sm:$0xff]  ;;  %v4906_v54 = vpack.c.bf16 %v2710_v59, %v2702_v57  ;;  %v3020_v59 = vld [vmem:[#allocation19 + $0x70] sm:$0xff] }
 0x6b5   :  { %4849 = vmatprep.subr.bf16.mxu0 %v4848_v61  ;;  %v4862_v27 = vpack.c.bf16 %v2534_v20, %v2526_v42  ;;  %v2615_v61 = vld [vmem:[#allocation17 + $0x4e8] sm:$0xff]  ;;  %v4890_v42 = vpack.c.bf16 %v2646_v13, %v2638_v15 }
 0x6b6   :  { %v4880_v63 = vpack.c.bf16 %v2615_v61, %v2607_v47  ;;  %v3006_v47 = vld [vmem:[#allocation19] sm:$0xff]  ;;  %v3007_v61 = vld [vmem:[#allocation19 + $0x8] sm:$0xff] }
 0x6b7   :  { %v4974_v1 = vpack.c.bf16 %v3007_v61, %v3006_v47  ;;  %v3086_v61 = vld [vmem:[#allocation19 + $0x280] sm:$0xff] }
 0x6b8   :  { %4851 = vmatpush1.bf16.msra.mxu0 %v4850_v2  ;;  %v2623_v2 = vld [vmem:[#allocation17 + $0x528] sm:$0xff] }
 0x6b9   :  { %4853 = vmatprep.subr.bf16.mxu0 %v4852_v35  ;;  %v2631_v35 = vld [vmem:[#allocation17 + $0x568] sm:$0xff] }
 0x6ba   :  { %v4884_v3 = vpack.c.bf16 %v2631_v35, %v2623_v2  ;;  %v3008_v2 = vld [vmem:[#allocation19 + $0x10] sm:$0xff]  ;;  %v3009_v35 = vld [vmem:[#allocation19 + $0x18] sm:$0xff] }
 0x6bb   :  { %v4978_v4 = vpack.c.bf16 %v3009_v35, %v3008_v2  ;;  %v3088_v35 = vld [vmem:[#allocation19 + $0x290] sm:$0xff] }
 0x6bc   :  { %4855 = vmatpush1.bf16.msra.mxu0 %v4854_v6  ;;  %v2639_v6 = vld [vmem:[#allocation17 + $0x5a8] sm:$0xff] }
 0x6bd   :  { %4857 = vmatprep.subr.bf16.mxu0 %v4856_v7  ;;  %v2647_v7 = vld [vmem:[#allocation17 + $0x5e8] sm:$0xff] }
 0x6be   :  { %v4888_v49 = vpack.c.bf16 %v2647_v7, %v2639_v6  ;;  %v3010_v6 = vld [vmem:[#allocation19 + $0x20] sm:$0xff]  ;;  %v3011_v7 = vld [vmem:[#allocation19 + $0x28] sm:$0xff] }
 0x6bf   :  { %v4982_v15 = vpack.c.bf16 %v3011_v7, %v3010_v6  ;;  %v3090_v6 = vld [vmem:[#allocation19 + $0x2a0] sm:$0xff]  ;;  %v3091_v7 = vld [vmem:[#allocation19 + $0x2a8] sm:$0xff] }
 0x6c0   :  { %4859 = vmatpush1.bf16.msra.mxu0 %v4858_v14  ;;  %v2655_v14 = vld [vmem:[#allocation17 + $0x628] sm:$0xff] }
 0x6c1   :  { %4861 = vmatprep.subr.bf16.mxu0 %v4860_v19  ;;  %v2663_v19 = vld [vmem:[#allocation17 + $0x668] sm:$0xff] }
 0x6c2   :  { %v4892_v20 = vpack.c.bf16 %v2663_v19, %v2655_v14  ;;  %v3012_v14 = vld [vmem:[#allocation19 + $0x30] sm:$0xff]  ;;  %v3013_v19 = vld [vmem:[#allocation19 + $0x38] sm:$0xff] }
 0x6c3   :  { %v4986_v21 = vpack.c.bf16 %v3013_v19, %v3012_v14  ;;  %v3092_v14 = vld [vmem:[#allocation19 + $0x2b0] sm:$0xff]  ;;  %v3093_v19 = vld [vmem:[#allocation19 + $0x2b8] sm:$0xff] }
 0x6c4   :  { %4863 = vmatpush1.bf16.msra.mxu0 %v4862_v27  ;;  %v2671_v27 = vld [vmem:[#allocation17 + $0x6a8] sm:$0xff] }
 0x6c5   :  { %4865 = vmatprep.subr.bf16.mxu0 %v4864_v28  ;;  %v2679_v28 = vld [vmem:[#allocation17 + $0x6e8] sm:$0xff] }
 0x6c6   :  { %v4896_v31 = vpack.c.bf16 %v2679_v28, %v2671_v27  ;;  %v3015_v27 = vld [vmem:[#allocation19 + $0x48] sm:$0xff]  ;;  %v3032_v28 = vld [vmem:[#allocation19 + $0xd0] sm:$0xff] }
 0x6c8   :  { %4867 = vmatpush1.bf16.msra.mxu0 %v4866_v24  ;;  %v2687_v24 = vld [vmem:[#allocation17 + $0x728] sm:$0xff] }
 0x6c9   :  { %4869 = vmatprep.subr.bf16.mxu0 %v4868_v48  ;;  %v2695_v48 = vld [vmem:[#allocation17 + $0x768] sm:$0xff] }
 0x6ca   :  { %v4900_v29 = vpack.c.bf16 %v2695_v48, %v2687_v24  ;;  %v3017_v24 = vld [vmem:[#allocation19 + $0x58] sm:$0xff]  ;;  %v3034_v48 = vld [vmem:[#allocation19 + $0xe0] sm:$0xff] }
 0x6cc   :  { %4871 = vmatpush1.bf16.msra.mxu0 %v4870_v17  ;;  %v2703_v17 = vld [vmem:[#allocation17 + $0x7a8] sm:$0xff] }
 0x6cd   :  { %4873 = vmatprep.subr.bf16.mxu0 %v4872_v56  ;;  %v2711_v56 = vld [vmem:[#allocation17 + $0x7e8] sm:$0xff] }
 0x6ce   :  { %v4904_v26 = vpack.c.bf16 %v2711_v56, %v2703_v17  ;;  %v3019_v17 = vld [vmem:[#allocation19 + $0x68] sm:$0xff]  ;;  %v3036_v56 = vld [vmem:[#allocation19 + $0xf0] sm:$0xff] }
 0x6d0   :  { %4875 = vmatpush1.bf16.msra.mxu0 %v4874_v46  ;;  %v3022_v46 = vld [vmem:[#allocation19 + $0x80] sm:$0xff] }
 0x6d1   :  { %4877 = vmatprep.subr.bf16.mxu0 %v4876_v53  ;;  %v3023_v53 = vld [vmem:[#allocation19 + $0x88] sm:$0xff] }
 0x6d2   :  { %v4972_v55 = vpack.c.bf16 %v3023_v53, %v3022_v46  ;;  %v3021_v46 = vld [vmem:[#allocation19 + $0x78] sm:$0xff]  ;;  %v3054_v53 = vld [vmem:[#allocation19 + $0x180] sm:$0xff] }
 0x6d4   :  { %4879 = vmatpush1.bf16.msra.mxu0 %v4878_v45  ;;  %v3024_v45 = vld [vmem:[#allocation19 + $0x90] sm:$0xff] }
 0x6d5   :  { %4881 = vmatprep.subr.bf16.mxu0 %v4880_v63  ;;  %v3025_v63 = vld [vmem:[#allocation19 + $0x98] sm:$0xff] }
 0x6d6   :  { %v4976_v32 = vpack.c.bf16 %v3025_v63, %v3024_v45  ;;  %v3087_v45 = vld [vmem:[#allocation19 + $0x288] sm:$0xff] }
 0x6d7   :  { %v5036_v63 = vpack.c.bf16 %v3087_v45, %v3086_v61  ;;  %v3039_v61 = vld [vmem:[#allocation19 + $0x108] sm:$0xff] }
 0x6d8   :  { %4883 = vmatpush1.bf16.msra.mxu0 %v4882_v38  ;;  %v3026_v38 = vld [vmem:[#allocation19 + $0xa0] sm:$0xff] }
 0x6d9   :  { %4885 = vmatprep.subr.bf16.mxu0 %v4884_v3  ;;  %v3027_v3 = vld [vmem:[#allocation19 + $0xa8] sm:$0xff]  ;;  %5037 = vmatprep.subr.bf16.mxu1 %v5036_v63  ;;  %v3056_v63 = vld [vmem:[#allocation19 + $0x190] sm:$0xff] }
 0x6da   :  { %v4980_v5 = vpack.c.bf16 %v3027_v3, %v3026_v38  ;;  %v3089_v38 = vld [vmem:[#allocation19 + $0x298] sm:$0xff]  ;;  %v3072_v3 = vld [vmem:[#allocation19 + $0x210] sm:$0xff] }
 0x6dc   :  { %4887 = vmatpush1.bf16.msra.mxu0 %v4886_v11  ;;  %v3028_v11 = vld [vmem:[#allocation19 + $0xb0] sm:$0xff] }
 0x6dd   :  { %4889 = vmatprep.subr.bf16.mxu0 %v4888_v49  ;;  %v3029_v49 = vld [vmem:[#allocation19 + $0xb8] sm:$0xff] }
 0x6de   :  { %v4984_v13 = vpack.c.bf16 %v3029_v49, %v3028_v11  ;;  %v5044_v49 = vpack.c.bf16 %v3091_v7, %v3090_v6 }
 0x6e0   :  { %4891 = vmatpush1.bf16.msra.mxu0 %v4890_v42  ;;  %v3030_v42 = vld [vmem:[#allocation19 + $0xc0] sm:$0xff] }
 0x6e1   :  { %4893 = vmatprep.subr.bf16.mxu0 %v4892_v20  ;;  %v3031_v20 = vld [vmem:[#allocation19 + $0xc8] sm:$0xff] }
 0x6e4   :  { %4895 = vmatpush1.bf16.msra.mxu0 %v4894_v30  ;;  %v3033_v30 = vld [vmem:[#allocation19 + $0xd8] sm:$0xff] }
 0x6e5   :  { %4897 = vmatprep.subr.bf16.mxu0 %v4896_v31  ;;  %v4990_v31 = vpack.c.bf16 %v3015_v27, %v3014_v8  ;;  %v4992_v33 = vpack.c.bf16 %v3033_v30, %v3032_v28  ;;  %v3094_v8 = vld [vmem:[#allocation19 + $0x2c0] sm:$0xff]  ;;  %v3095_v27 = vld [vmem:[#allocation19 + $0x2c8] sm:$0xff] }
 0x6e6   :  { %v5052_v30 = vpack.c.bf16 %v3095_v27, %v3094_v8  ;;  %v3060_v8 = vld [vmem:[#allocation19 + $0x1b0] sm:$0xff]  ;;  %v3061_v27 = vld [vmem:[#allocation19 + $0x1b8] sm:$0xff] }
 0x6e8   :  { %4899 = vmatpush1.bf16.msra.mxu0 %v4898_v44  ;;  %v3035_v44 = vld [vmem:[#allocation19 + $0xe8] sm:$0xff] }
 0x6e9   :  { %4901 = vmatprep.subr.bf16.mxu0 %v4900_v29  ;;  %v4994_v29 = vpack.c.bf16 %v3017_v24, %v3016_v34  ;;  %v4996_v39 = vpack.c.bf16 %v3035_v44, %v3034_v48  ;;  %v3096_v34 = vld [vmem:[#allocation19 + $0x2d0] sm:$0xff]  ;;  %v3097_v24 = vld [vmem:[#allocation19 + $0x2d8] sm:$0xff] }
 0x6ea   :  { %v5056_v44 = vpack.c.bf16 %v3097_v24, %v3096_v34  ;;  %v3062_v34 = vld [vmem:[#allocation19 + $0x1c0] sm:$0xff]  ;;  %v3063_v24 = vld [vmem:[#allocation19 + $0x1c8] sm:$0xff] }
 0x6ec   :  { %4903 = vmatpush1.bf16.msra.mxu0 %v4902_v41  ;;  %v3037_v41 = vld [vmem:[#allocation19 + $0xf8] sm:$0xff] }
 0x6ed   :  { %4905 = vmatprep.subr.bf16.mxu0 %v4904_v26  ;;  %v4998_v26 = vpack.c.bf16 %v3019_v17, %v3018_v16  ;;  %v5000_v57 = vpack.c.bf16 %v3037_v41, %v3036_v56  ;;  %v3098_v16 = vld [vmem:[#allocation19 + $0x2e0] sm:$0xff]  ;;  %v3099_v17 = vld [vmem:[#allocation19 + $0x2e8] sm:$0xff] }
 0x6ee   :  { %v5060_v41 = vpack.c.bf16 %v3099_v17, %v3098_v16  ;;  %v3064_v16 = vld [vmem:[#allocation19 + $0x1d0] sm:$0xff]  ;;  %v3065_v17 = vld [vmem:[#allocation19 + $0x1d8] sm:$0xff] }
 0x6f0   :  { %4907 = vmatpush1.bf16.msra.mxu0 %v4906_v54  ;;  %v3055_v54 = vld [vmem:[#allocation19 + $0x188] sm:$0xff] }
 0x6f1   :  { %4973 = vmatprep.subr.bf16.mxu0 %v4972_v55  ;;  %v5002_v55 = vpack.c.bf16 %v3021_v46, %v3020_v59  ;;  %v5004_v47 = vpack.c.bf16 %v3055_v54, %v3054_v53  ;;  %v6074_v59 = vld [vmem:[%s6282_s4] sm:$0xff] }
 0x6f2   :  { %v860_v46 = vrot.slane %v6074_v59, %v5972_v40  ;;  %v864_v54 = vrot.slane %v6074_v59, %v5975_v18 }
 0x6f3   :  { %2921 = vmatmul.mubr.f32.vlgmr.msra.gmra.mrb[20].mxu0 %v6061_v43  ;;  %v4988_v43 = vpack.c.bf16 %v3031_v20, %v3030_v42  ;;  %v5048_v20 = vpack.c.bf16 %v3093_v19, %v3092_v14  ;;  %v3041_v14 = vld [vmem:[#allocation19 + $0x118] sm:$0xff]  ;;  %v3058_v19 = vld [vmem:[#allocation19 + $0x1a0] sm:$0xff] }
 0x6f4   :  { %4975 = vmatpush3.bf16.msra.mxu0 %v4974_v1  ;;  %v3070_v1 = vld [vmem:[#allocation19 + $0x200] sm:$0xff]  ;;  %v1153_v45 = vadd.f32 %v5901_v58, %v860_v46 }
 0x6f5   :  { %4977 = vmatprep.subr.bf16.mxu0 %v4976_v32  ;;  %v3071_v32 = vld [vmem:[#allocation19 + $0x208] sm:$0xff]  ;;  %v3066_v46 = vld [vmem:[#allocation19 + $0x1e0] sm:$0xff] }
 0x6f6   :  { %v5038_v2 = vpack.c.bf16 %v3071_v32, %v3070_v1  ;;  %v3100_v1 = vld [vmem:[#allocation19 + $0x2f0] sm:$0xff]  ;;  %v3101_v32 = vld [vmem:[#allocation19 + $0x2f8] sm:$0xff] }
 0x6f7   :  { %v5064_v18 = vpack.c.bf16 %v3101_v32, %v3100_v1 }
 0x6f8   :  { %4979 = vmatpush3.bf16.msra.mxu0 %v4978_v4  ;;  %v5040_v4 = vpack.c.bf16 %v3089_v38, %v3088_v35  ;;  %5039 = vmatpush3.bf16.msra.mxu1 %v5038_v2  ;;  %v1155_v2 = vadd.f32 %v5903_v62, %v864_v54 }
 0x6f9   :  { %4981 = vmatprep.subr.bf16.mxu0 %v4980_v5  ;;  %v3073_v5 = vld [vmem:[#allocation19 + $0x218] sm:$0xff] }
 0x6fa   :  { %v5042_v11 = vpack.c.bf16 %v3073_v5, %v3072_v3  ;;  %5041 = vmatprep.subr.bf16.mxu1 %v5040_v4  ;;  %v3057_v3 = vld [vmem:[#allocation19 + $0x198] sm:$0xff]  ;;  %v3084_v4 = vld [vmem:[#allocation19 + $0x270] sm:$0xff] }
 0x6fb   :  { %v3085_v5 = vld [vmem:[#allocation19 + $0x278] sm:$0xff]  ;;  %v5008_v62 = vpack.c.bf16 %v3057_v3, %v3056_v63 }
 0x6fc   :  { %4983 = vmatpush3.bf16.msra.mxu0 %v4982_v15  ;;  %v3074_v15 = vld [vmem:[#allocation19 + $0x220] sm:$0xff]  ;;  %5043 = vmatpush3.bf16.msra.mxu1 %v5042_v11  ;;  %v5066_v11 = vpack.c.bf16 %v3085_v5, %v3084_v4  ;;  %v3069_v63 = vld [vmem:[#allocation19 + $0x1f8] sm:$0xff]  ;;  %v844_v4 = vrot.slane %v6074_v59, %v5935_v22  ;;  %v848_v5 = vrot.slane %v6074_v59, %v5938_v23 }
 0x6fd   :  { %4985 = vmatprep.subr.bf16.mxu0 %v4984_v13  ;;  %v3075_v13 = vld [vmem:[#allocation19 + $0x228] sm:$0xff]  ;;  %5045 = vmatprep.subr.bf16.mxu1 %v5044_v49  ;;  %v3122_v22 = vld [vmem:[#allocation19 + $0x3a0] sm:$0xff] }
 0x6fe   :  { %v5046_v42 = vpack.c.bf16 %v3075_v13, %v3074_v15  ;;  %v3106_v23 = vld [vmem:[#allocation19 + $0x320] sm:$0xff] }
 0x700   :  { %4987 = vmatpush3.bf16.msra.mxu0 %v4986_v21  ;;  %v3076_v21 = vld [vmem:[#allocation19 + $0x230] sm:$0xff]  ;;  %5047 = vmatpush3.bf16.msra.mxu1 %v5046_v42  ;;  %v3059_v42 = vld [vmem:[#allocation19 + $0x1a8] sm:$0xff] }
 0x701   :  { %4989 = vmatprep.subr.bf16.mxu0 %v4988_v43  ;;  %v3077_v43 = vld [vmem:[#allocation19 + $0x238] sm:$0xff]  ;;  %5049 = vmatprep.subr.bf16.mxu1 %v5048_v20  ;;  %v5012_v20 = vpack.c.bf16 %v3059_v42, %v3058_v19 }
 0x702   :  { %v5050_v28 = vpack.c.bf16 %v3077_v43, %v3076_v21  ;;  %v3042_v21 = vld [vmem:[#allocation19 + $0x120] sm:$0xff]  ;;  %v3043_v43 = vld [vmem:[#allocation19 + $0x128] sm:$0xff] }
 0x704   :  { %4991 = vmatpush3.bf16.msra.mxu0 %v4990_v31  ;;  %v3078_v31 = vld [vmem:[#allocation19 + $0x240] sm:$0xff]  ;;  %5051 = vmatpush3.bf16.msra.mxu1 %v5050_v28  ;;  %v5014_v28 = vpack.c.bf16 %v3043_v43, %v3042_v21  ;;  %v3105_v21 = vld [vmem:[#allocation19 + $0x318] sm:$0xff]  ;;  %v3123_v43 = vld [vmem:[#allocation19 + $0x3a8] sm:$0xff] }
 0x705   :  { %4993 = vmatprep.subr.bf16.mxu0 %v4992_v33  ;;  %v3079_v33 = vld [vmem:[#allocation19 + $0x248] sm:$0xff]  ;;  %5053 = vmatprep.subr.bf16.mxu1 %v5052_v30  ;;  %v5016_v30 = vpack.c.bf16 %v3061_v27, %v3060_v8  ;;  %v3124_v27 = vld [vmem:[#allocation19 + $0x3b0] sm:$0xff] }
 0x706   :  { %v5054_v48 = vpack.c.bf16 %v3079_v33, %v3078_v31  ;;  %v3044_v31 = vld [vmem:[#allocation19 + $0x130] sm:$0xff]  ;;  %v3045_v33 = vld [vmem:[#allocation19 + $0x138] sm:$0xff]  ;;  %v3107_v8 = vld [vmem:[#allocation19 + $0x328] sm:$0xff] }
 0x708   :  { %4995 = vmatpush3.bf16.msra.mxu0 %v4994_v29  ;;  %v3080_v29 = vld [vmem:[#allocation19 + $0x250] sm:$0xff]  ;;  %5055 = vmatpush3.bf16.msra.mxu1 %v5054_v48  ;;  %v5018_v48 = vpack.c.bf16 %v3045_v33, %v3044_v31 }
 0x709   :  { %4997 = vmatprep.subr.bf16.mxu0 %v4996_v39  ;;  %v3081_v39 = vld [vmem:[#allocation19 + $0x258] sm:$0xff]  ;;  %5057 = vmatprep.subr.bf16.mxu1 %v5056_v44  ;;  %v5020_v44 = vpack.c.bf16 %v3063_v24, %v3062_v34  ;;  %v3108_v33 = vld [vmem:[#allocation19 + $0x330] sm:$0xff]  ;;  %v3126_v24 = vld [vmem:[#allocation19 + $0x3c0] sm:$0xff] }
 0x70a   :  { %v5058_v56 = vpack.c.bf16 %v3081_v39, %v3080_v29  ;;  %v3046_v29 = vld [vmem:[#allocation19 + $0x140] sm:$0xff]  ;;  %v3047_v39 = vld [vmem:[#allocation19 + $0x148] sm:$0xff]  ;;  %v3109_v34 = vld [vmem:[#allocation19 + $0x338] sm:$0xff] }
 0x70c   :  { %4999 = vmatpush3.bf16.msra.mxu0 %v4998_v26  ;;  %v3082_v26 = vld [vmem:[#allocation19 + $0x260] sm:$0xff]  ;;  %5059 = vmatpush3.bf16.msra.mxu1 %v5058_v56  ;;  %v5022_v56 = vpack.c.bf16 %v3047_v39, %v3046_v29  ;;  %v3111_v39 = vld [vmem:[#allocation19 + $0x348] sm:$0xff] }
 0x70d   :  { %5001 = vmatprep.subr.bf16.mxu0 %v5000_v57  ;;  %v3083_v57 = vld [vmem:[#allocation19 + $0x268] sm:$0xff]  ;;  %5061 = vmatprep.subr.bf16.mxu1 %v5060_v41  ;;  %v5024_v41 = vpack.c.bf16 %v3065_v17, %v3064_v16  ;;  %v3128_v16 = vld [vmem:[#allocation19 + $0x3d0] sm:$0xff]  ;;  %v3129_v17 = vld [vmem:[#allocation19 + $0x3d8] sm:$0xff] }
 0x70e   :  { %v5062_v53 = vpack.c.bf16 %v3083_v57, %v3082_v26  ;;  %v3048_v26 = vld [vmem:[#allocation19 + $0x150] sm:$0xff]  ;;  %v3049_v57 = vld [vmem:[#allocation19 + $0x158] sm:$0xff] }
 0x70f   :  { %v5026_v54 = vpack.c.bf16 %v3049_v57, %v3048_v26  ;;  %v3112_v26 = vld [vmem:[#allocation19 + $0x350] sm:$0xff]  ;;  %v3113_v57 = vld [vmem:[#allocation19 + $0x358] sm:$0xff] }
 0x710   :  { %5003 = vmatpush3.bf16.msra.mxu0 %v5002_v55  ;;  %v840_v55 = vrot.slane %v6074_v59, %v5946_v25  ;;  %5063 = vmatpush3.bf16.msra.mxu1 %v5062_v53  ;;  %v3067_v53 = vld [vmem:[#allocation19 + $0x1e8] sm:$0xff] }
 0x711   :  { %5005 = vmatprep.subr.bf16.mxu0 %v5004_v47  ;;  %v3038_v47 = vld [vmem:[#allocation19 + $0x100] sm:$0xff]  ;;  %5065 = vmatprep.subr.bf16.mxu1 %v5064_v18 }
 0x712   :  { %v942_v40 = vadd.f32 %v5928_v37, %v840_v55  ;;  %v5006_v13 = vpack.c.bf16 %v3039_v61, %v3038_v47  ;;  %v3040_v37 = vld [vmem:[#allocation19 + $0x110] sm:$0xff]  ;;  %v5028_v55 = vpack.c.bf16 %v3067_v53, %v3066_v46  ;;  %v3050_v47 = vld [vmem:[#allocation19 + $0x160] sm:$0xff]  ;;  %v3051_v61 = vld [vmem:[#allocation19 + $0x168] sm:$0xff] }
 0x713   :  { %v5030_v1 = vpack.c.bf16 %v3051_v61, %v3050_v47  ;;  %v3130_v46 = vld [vmem:[#allocation19 + $0x3e0] sm:$0xff]  ;;  %v3131_v53 = vld [vmem:[#allocation19 + $0x3e8] sm:$0xff] }
 0x714   :  { %5067 = vmatpush3.bf16.msra.mxu1 %v5066_v11  ;;  %v1013_v11 = vadd.f32 %v5899_v51, %v848_v5  ;;  %v5076_v51 = vpack.c.bf16 %v3123_v43, %v3122_v22  ;;  %v3114_v47 = vld [vmem:[#allocation19 + $0x360] sm:$0xff]  ;;  %v3115_v61 = vld [vmem:[#allocation19 + $0x368] sm:$0xff] }
 0x746   :  { %v2780_v35 = vpop.f32.mrb[16].mxu0  ;;  %v2993_v38 = vpop.f32.mrb[16].mxu1 }
 0x747   :  { %v2998_v25 = vmul.f32 %v2780_v35, %v5926_v36  ;;  %v6086_v6 = vmul.f32 %v2993_v38, %v1153_v45  ;;  %v2782_v7 = vpop.f32.mrb[17].mxu0  ;;  %v2995_v58 = vpop.f32.mrb[17].mxu1  ;;  %v5010_v36 = vpack.c.bf16 %v3041_v14, %v3040_v37  ;;  %v3068_v45 = vld [vmem:[#allocation19 + $0x1f0] sm:$0xff]  ;;  %v3118_v35 = vld [vmem:[#allocation19 + $0x380] sm:$0xff]  ;;  %v3119_v38 = vld [vmem:[#allocation19 + $0x388] sm:$0xff] }
 0x748   :  { %v2999_v49 = vmul.f32 %v2782_v7, %v942_v40  ;;  %v6088_v15 = vmul.f32 %v2995_v58, %v1155_v2  ;;  %v5032_v32 = vpack.c.bf16 %v3069_v63, %v3068_v45  ;;  %v3052_v2 = vld [vmem:[#allocation19 + $0x170] sm:$0xff]  ;;  %v3053_v40 = vld [vmem:[#allocation19 + $0x178] sm:$0xff]  ;;  %v5068_v18 = vpack.c.bf16 %v3119_v38, %v3118_v35  ;;  %v3102_v7 = vld [vmem:[#allocation19 + $0x300] sm:$0xff] }
 0x749   :  { %v5034_v3 = vpack.c.bf16 %v3053_v40, %v3052_v2  ;;  %v3103_v58 = vld [vmem:[#allocation19 + $0x308] sm:$0xff]  ;;  %v3132_v45 = vld [vmem:[#allocation19 + $0x3f0] sm:$0xff]  ;;  %v3133_v63 = vld [vmem:[#allocation19 + $0x3f8] sm:$0xff]  ;;  %v852_v38 = vrot.slane %v6074_v59, %v5979_v52 }
 0x74a   :  { %3205 = vmatprep.mubr.f32.mxu0 %v2999_v49  ;;  %v5070_v42 = vpack.c.bf16 %v3103_v58, %v3102_v7  ;;  %v3116_v2 = vld [vmem:[#allocation19 + $0x370] sm:$0xff]  ;;  %v3117_v40 = vld [vmem:[#allocation19 + $0x378] sm:$0xff] }
 0x74b   :  { %3206 = vmatmul.mubr.f32.vlgmr.msra.gmra.mrb[22].mxu0 %v2998_v25  ;;  %v1011_v25 = vadd.f32 %v5897_v50, %v844_v4  ;;  %v5098_v35 = vpack.c.bf16 %v3117_v40, %v3116_v2  ;;  %v3838_v52 = vld [vmem:[%s6240_s14] ss:$0 sm:$0xff]  ;;  %v3528_v2 = vld [vmem:[#allocation20] sm:$0xff]  ;;  %v3529_v40 = vld [vmem:[#allocation20 + $0x8] sm:$0xff] }
 0x74c   :  { %5007 = vmatpush3.bf16.msra.mxu0 %v5006_v13  ;;  %v3120_v13 = vld [vmem:[#allocation19 + $0x390] sm:$0xff] }
 0x74d   :  { %5009 = vmatprep.subr.bf16.mxu0 %v5008_v62  ;;  %v3121_v62 = vld [vmem:[#allocation19 + $0x398] sm:$0xff] }
 0x750   :  { %5011 = vmatpush3.bf16.msra.mxu0 %v5010_v36  ;;  %v5072_v36 = vpack.c.bf16 %v3121_v62, %v3120_v13 }
 0x751   :  { %5013 = vmatprep.subr.bf16.mxu0 %v5012_v20  ;;  %v3104_v20 = vld [vmem:[#allocation19 + $0x310] sm:$0xff] }
 0x752   :  { %v5074_v50 = vpack.c.bf16 %v3105_v21, %v3104_v20 }
 0x754   :  { %5015 = vmatpush3.bf16.msra.mxu0 %v5014_v28  ;;  %v3125_v28 = vld [vmem:[#allocation19 + $0x3b8] sm:$0xff] }
 0x755   :  { %5017 = vmatprep.subr.bf16.mxu0 %v5016_v30  ;;  %v5078_v30 = vpack.c.bf16 %v3107_v8, %v3106_v23  ;;  %v5080_v31 = vpack.c.bf16 %v3125_v28, %v3124_v27 }
 0x758   :  { %5019 = vmatpush3.bf16.msra.mxu0 %v5018_v48  ;;  %v3127_v48 = vld [vmem:[#allocation19 + $0x3c8] sm:$0xff] }
 0x759   :  { %5021 = vmatprep.subr.bf16.mxu0 %v5020_v44  ;;  %v5082_v44 = vpack.c.bf16 %v3109_v34, %v3108_v33  ;;  %v5084_v29 = vpack.c.bf16 %v3127_v48, %v3126_v24  ;;  %v6126_v33 = vsel %vm3428_vm15, 1.0, %v5535_v0  ;;  %v6129_v24 = vsel %vm3432_vm0, 1.0, %v5535_v0 }
 0x75c   :  { %5023 = vmatpush3.bf16.msra.mxu0 %v5022_v56 }
 0x75d   :  { %5025 = vmatprep.subr.bf16.mxu0 %v5024_v41  ;;  %v5088_v41 = vpack.c.bf16 %v3129_v17, %v3128_v16  ;;  %v6139_v17 = vsel %vm3435_vm2, 1.0, %v5535_v0 }
 0x760   :  { %5027 = vmatpush3.bf16.msra.mxu0 %v5026_v54  ;;  %v5090_v54 = vpack.c.bf16 %v3113_v57, %v3112_v26 }
 0x761   :  { %5029 = vmatprep.subr.bf16.mxu0 %v5028_v55  ;;  %v5092_v55 = vpack.c.bf16 %v3131_v53, %v3130_v46 }
 0x764   :  { %5031 = vmatpush3.bf16.msra.mxu0 %v5030_v1  ;;  %v5094_v1 = vpack.c.bf16 %v3115_v61, %v3114_v47 }
 0x765   :  { %5033 = vmatprep.subr.bf16.mxu0 %v5032_v32  ;;  %v5096_v32 = vpack.c.bf16 %v3133_v63, %v3132_v45 }
 0x768   :  { %5035 = vmatpush3.bf16.msra.mxu0 %v5034_v3  ;;  %v856_v3 = vrot.slane %v6074_v59, %v5983_v60 }
 0x769   :  { %5069 = vmatprep.subr.bf16.mxu0 %v5068_v18  ;;  %v1082_v18 = vadd.f32 %v5930_v9, %v852_v38  ;;  %v3530_v38 = vld [vmem:[#allocation20 + $0x10] sm:$0xff] }
 0x76a   :  { %v1084_v4 = vadd.f32 %v5932_v10, %v856_v3  ;;  %v3531_v3 = vld [vmem:[#allocation20 + $0x18] sm:$0xff] }
 0x786   :  { %v2851_v49 = vpop.f32.mrb[18].mxu0 }
 0x787   :  { %v3000_v37 = vmul.f32 %v2851_v49, %v1011_v25  ;;  %v2853_v14 = vpop.f32.mrb[19].mxu0 }
 0x788   :  { %v3001_v19 = vmul.f32 %v2853_v14, %v1013_v11 }
 0x78a   :  { %3275 = vmatprep.mubr.f32.mxu0 %v3001_v19 }
 0x78b   :  { %3276 = vmatmul.mubr.f32.vlgmr.msra.gmra.mrb[24].mxu0 %v3000_v37 }
 0x78c   :  { %5071 = vmatpush3.bf16.msra.mxu0 %v5070_v42  ;;  %3415 = vmatprep.mubr.f32.mxu0 %v6088_v15  ;;  %v3110_v15 = vld [vmem:[#allocation19 + $0x340] sm:$0xff] }
 0x78d   :  { %5073 = vmatprep.subr.bf16.mxu0 %v5072_v36  ;;  %v5086_v56 = vpack.c.bf16 %v3111_v39, %v3110_v15 }
 0x790   :  { %5075 = vmatpush3.bf16.msra.mxu0 %v5074_v50 }
 0x791   :  { %5077 = vmatprep.subr.bf16.mxu0 %v5076_v51 }
 0x794   :  { %5079 = vmatpush3.bf16.msra.mxu0 %v5078_v30 }
 0x795   :  { %5081 = vmatprep.subr.bf16.mxu0 %v5080_v31 }
 0x798   :  { %5083 = vmatpush3.bf16.msra.mxu0 %v5082_v44 }
 0x799   :  { %5085 = vmatprep.subr.bf16.mxu0 %v5084_v29 }
 0x79c   :  { %5087 = vmatpush3.bf16.msra.mxu0 %v5086_v56 }
 0x79d   :  { %5089 = vmatprep.subr.bf16.mxu0 %v5088_v41 }
 0x7a0   :  { %5091 = vmatpush3.bf16.msra.mxu0 %v5090_v54 }
 0x7a1   :  { %5093 = vmatprep.subr.bf16.mxu0 %v5092_v55 }
 0x7a4   :  { %5095 = vmatpush3.bf16.msra.mxu0 %v5094_v1 }
 0x7a5   :  { %5097 = vmatprep.subr.bf16.mxu0 %v5096_v32 }
 0x7a8   :  { %5099 = vmatpush3.bf16.msra.mxu0 %v5098_v35  ;;  %v5101_v35 = vpack.c.bf16 %v3529_v40, %v3528_v2 }
 0x7ab   :  { %3416 = vmatmul.mubr.f32.vlgmr.msra.gmra.mrb[26].mxu0 %v6086_v6 }
 0x7ac   :  { %4097 = vmatprep.mubr.msk.f32.mxu0 %vm5536_vm1, %v5535_v0 }
 0x7c6   :  { %v2922_v5 = vpop.f32.mrb[20].mxu0 }
 0x7c7   :  { %v3002_v25 = vmul.f32 %v2922_v5, %v1082_v18  ;;  %v2924_v7 = vpop.f32.mrb[21].mxu0  ;;  %v5104_v18 = vpack.c.bf16 %v3531_v3, %v3530_v38  ;;  %v3533_v5 = vld [vmem:[#allocation20 + $0x28] sm:$0xff]  ;;  %v3843_v38 = vld [vmem:[%s6242_s16] ss:$0 sm:$0xff] }
 0x7c8   :  { %v3003_v58 = vmul.f32 %v2924_v7, %v1084_v4  ;;  %v3532_v4 = vld [vmem:[#allocation20 + $0x20] sm:$0xff]  ;;  %v3534_v7 = vld [vmem:[#allocation20 + $0x30] sm:$0xff] }
 0x7ca   :  { %3345 = vmatprep.mubr.f32.mxu1 %v3003_v58  ;;  %v3535_v58 = vld [vmem:[#allocation20 + $0x38] sm:$0xff] }
 0x7cb   :  { %3346 = vmatmul.mubr.f32.vlgmr.msra.gmra.mrb[18].mxu1 %v3002_v25  ;;  %v5107_v25 = vpack.c.bf16 %v3533_v5, %v3532_v4 }
 0x7cc   :  { %4062 = vmatprep.mubr.msk.f32.mxu1 %vm5536_vm1, %v5535_v0  ;;  %vm3423_vm1 = vcmp.lt.s32.totalorder %v6036_v12, 32  ;;  %v5539_v12 = vmov 0.0|0.0  }
 0x7cd   :  { %v6132_v48 = vsel %vm3423_vm1, 1.0, %v5535_v0  ;;  %5100 = vmatprep.subr.bf16.mxu1 %v5539_v12  ;;  %5124 = vmatprep.subr.bf16.mxu0 %v5539_v12 }
 0x7ce   :  { %5102 = vmatpush3.bf16.msra.mxu1 %v5101_v35 }
 0x7cf   :  { %5103 = vmatprep.subr.bf16.mxu1 %v5539_v12 }
 0x7d2   :  { %5105 = vmatpush3.bf16.msra.mxu1 %v5104_v18  ;;  %v3844_v18 = vld [vmem:[%s6243_s17] ss:$0 sm:$0xff] }
 0x7d3   :  { %5106 = vmatprep.subr.bf16.mxu1 %v5539_v12 }
 0x7d6   :  { %5108 = vmatpush3.bf16.msra.mxu1 %v5107_v25  ;;  %v3636_v25 = vld [vmem:[#allocation22 + $0x70] sm:$0xff] }
 0x7d7   :  { %5109 = vmatprep.subr.bf16.mxu1 %v5539_v12 }
 0x81e   :  { %v3883_v6 = vpop.f32.mrb[22].mxu0 }
 0x81f   :  { %v3884_v11 = vpop.f32.mrb[23].mxu0 }
 0x820   :  { %v3885_v49 = vadd.f32 %v3884_v11, %v3883_v6  ;;  %v5110_v6 = vpack.c.bf16 %v3535_v58, %v3534_v7  ;;  %v3536_v11 = vld [vmem:[#allocation20 + $0x40] sm:$0xff]  ;;  %v3637_v7 = vld [vmem:[#allocation22 + $0x78] sm:$0xff] }
 0x821   :  { %v5146_v58 = vpack.c.bf16 %v3637_v7, %v3636_v25 }
 0x822   :  { %v3208_v59 = vadd.f32 %v3885_v49, %v3838_v52  ;;  %5111 = vmatpush3.bf16.msra.mxu1 %v5110_v6  ;;  %v3537_v49 = vld [vmem:[#allocation20 + $0x48] sm:$0xff]  ;;  %v3538_v52 = vld [vmem:[#allocation20 + $0x50] sm:$0xff] }
 0x823   :  { %5112 = vmatprep.subr.bf16.mxu1 %v5539_v12  ;;  %v3845_v6 = vld [vmem:[%s6245_s19] ss:$0 sm:$0xff] }
 0x85e   :  { %v3918_v60 = vpop.f32.mrb[24].mxu0 }
 0x85f   :  { %v3919_v9 = vpop.f32.mrb[25].mxu0 }
 0x860   :  { %v3920_v10 = vadd.f32 %v3919_v9, %v3918_v60  ;;  %v5113_v60 = vpack.c.bf16 %v3537_v49, %v3536_v11  ;;  %v3539_v9 = vld [vmem:[#allocation20 + $0x58] sm:$0xff] }
 0x862   :  { %v3278_v13 = vadd.f32 %v3920_v10, %v3208_v59  ;;  %5114 = vmatpush3.bf16.msra.mxu1 %v5113_v60  ;;  %v5116_v59 = vpack.c.bf16 %v3539_v9, %v3538_v52  ;;  %v3540_v10 = vld [vmem:[#allocation20 + $0x60] sm:$0xff] }
 0x863   :  { %5115 = vmatprep.subr.bf16.mxu1 %v5539_v12 }
 0x866   :  { %5117 = vmatpush3.bf16.msra.mxu1 %v5116_v59 }
 0x867   :  { %5118 = vmatprep.subr.bf16.mxu1 %v5539_v12 }
 0x87e   :  { %v3988_v62 = vpop.f32.mrb[26].mxu0 }
 0x87f   :  { %v3989_v37 = vpop.f32.mrb[27].mxu0 }
 0x880   :  { %v3990_v14 = vadd.f32 %v3989_v37, %v3988_v62  ;;  %v3542_v37 = vld [vmem:[#allocation20 + $0x70] sm:$0xff] }
 0x89e   :  { %v3953_v19 = vpop.f32.mrb[18].mxu1 }
 0x89f   :  { %v3954_v42 = vpop.f32.mrb[19].mxu1 }
 0x8a0   :  { %v3955_v36 = vadd.f32 %v3954_v42, %v3953_v19  ;;  %v3622_v42 = vld [vmem:[#allocation22] sm:$0xff] }
 0x8a2   :  { %v3348_v20 = vadd.f32 %v3955_v36, %v3278_v13  ;;  %v3541_v13 = vld [vmem:[#allocation20 + $0x68] sm:$0xff] }
 0x8a3   :  { %v5119_v62 = vpack.c.bf16 %v3541_v13, %v3540_v10  ;;  %v3623_v36 = vld [vmem:[#allocation22 + $0x8] sm:$0xff] }
 0x8a4   :  { %v3418_v21 = vadd.f32 %v3990_v14, %v3348_v20  ;;  %v3543_v14 = vld [vmem:[#allocation20 + $0x78] sm:$0xff]  ;;  %v3624_v20 = vld [vmem:[#allocation22 + $0x10] sm:$0xff] }
 0x8a5   :  { %5120 = vmatpush3.bf16.msra.mxu1 %v5119_v62  ;;  %v5122_v19 = vpack.c.bf16 %v3543_v14, %v3542_v37 }
 0x8a6   :  { %3457 = vrot.lane.b32.xlu1 %v3418_v21, %s5519_s29  ;;  %3448 = vrot.lane.b32.xlu0 %v3418_v21, %s5537_s6  ;;  %v3440_v22 = vsel %vm3439_vm12, %v3418_v21, 0.0 }
 0x8a7   :  { %5121 = vmatprep.subr.bf16.mxu1 %v5539_v12 }
 0x8a9   :  { %5123 = vmatpush3.bf16.msra.mxu1 %v5122_v19 }
 0x8aa   :  { %3466 = vrot.lane.b32.xlu1 %v3418_v21, %s5538_s8 }
 0x8ce   :  { %3441 = vadd.xlane.f32.xlu1 %v3440_v22  ;;  %v3625_v22 = vld [vmem:[#allocation22 + $0x18] sm:$0xff] }
 0x918   :  { %v3458_v43 = vpop.permute.xlu1 %3457  ;;  %v3449_v50 = vpop.permute.xlu0 %3448 }
 0x919   :  { %v3451_v51 = vsel %vm3439_vm12, %v3449_v50, 0.0  ;;  %v3460_v23 = vsel %vm3439_vm12, %v3458_v43, 0.0  ;;  %v5128_v43 = vpack.c.bf16 %v3625_v22, %v3624_v20  ;;  %v3626_v50 = vld [vmem:[#allocation22 + $0x20] sm:$0xff] }
 0x91a   :  { %3452 = vadd.xlane.f32.xlu0 %v3451_v51  ;;  %v3627_v51 = vld [vmem:[#allocation22 + $0x28] sm:$0xff] }
 0x91c   :  { %v3467_v8 = vpop.permute.xlu1 %3466 }
 0x91d   :  { %v3469_v27 = vsel %vm3439_vm12, %v3467_v8, 0.0  ;;  %v3628_v8 = vld [vmem:[#allocation22 + $0x30] sm:$0xff] }
 0x91e   :  { %3461 = vadd.xlane.f32.xlu0 %v3460_v23  ;;  %v5131_v23 = vpack.c.bf16 %v3627_v51, %v3626_v50 }
 0x922   :  { %3470 = vadd.xlane.f32.xlu0 %v3469_v27  ;;  %v3629_v27 = vld [vmem:[#allocation22 + $0x38] sm:$0xff] }
 0x95b   :  { %v3442_v28 = vpop.xlane.xlu1 %3441 }
 0x95c   :  { %v3444_v34 = vmul.f32 0.03125, %v3442_v28  ;;  %v5134_v28 = vpack.c.bf16 %v3629_v27, %v3628_v8 }
 0x95e   :  { %v3445_v39 = vmul.f32 %v6132_v48, %v3444_v34 }
 0x9a7   :  { %v3453_v30 = vpop.xlane.xlu0 %3452 }
 0x9a8   :  { %v3454_v31 = vmul.f32 0.03125, %v3453_v30  ;;  %v3630_v30 = vld [vmem:[#allocation22 + $0x40] sm:$0xff] }
 0x9aa   :  { %v3455_v29 = vmul.f32 %v6126_v33, %v3454_v31  ;;  %v3631_v31 = vld [vmem:[#allocation22 + $0x48] sm:$0xff] }
 0x9ab   :  { %v3462_v44 = vpop.xlane.xlu0 %3461  ;;  %v5137_v34 = vpack.c.bf16 %v3631_v31, %v3630_v30 }
 0x9ac   :  { %v3463_v15 = vmul.f32 0.03125, %v3462_v44  ;;  %v3456_v41 = vadd.f32 %v3455_v29, %v3445_v39  ;;  %v3632_v44 = vld [vmem:[#allocation22 + $0x50] sm:$0xff]  ;;  %v3633_v29 = vld [vmem:[#allocation22 + $0x58] sm:$0xff]  ;;  %v3634_v39 = vld [vmem:[#allocation22 + $0x60] sm:$0xff] }
 0x9ae   :  { %v3464_v16 = vmul.f32 %v6129_v24, %v3463_v15  ;;  %v5140_v15 = vpack.c.bf16 %v3633_v29, %v3632_v44 }
 0x9af   :  { %v3471_v56 = vpop.xlane.xlu0 %3470 }
 0x9b0   :  { %v3472_v26 = vmul.f32 0.03125, %v3471_v56  ;;  %v3465_v57 = vadd.f32 %v3464_v16, %v3456_v41  ;;  %v3635_v16 = vld [vmem:[#allocation22 + $0x68] sm:$0xff] }
 0x9b1   :  { %v5143_v56 = vpack.c.bf16 %v3635_v16, %v3634_v39 }
 0x9b2   :  { %v3473_v46 = vmul.f32 %v6139_v17, %v3472_v26 }
 0x9b4   :  { %v3474_v53 = vadd.f32 %v3473_v46, %v3465_v57 }
 0x9b6   :  { %v6142_v54 = vsub.f32 %v3418_v21, %v3474_v53  ;;  %v5125_v21 = vpack.c.bf16 %v3623_v36, %v3622_v42 }
 0x9b8   :  { %v3476_v55 = vmul.f32 %v6142_v54, %v6142_v54  ;;  %5126 = vmatpush3.bf16.msra.mxu0 %v5125_v21 }
 0x9b9   :  { %5127 = vmatprep.subr.bf16.mxu0 %v5539_v12 }
 0x9ba   :  { %3493 = vrot.lane.b32.xlu0 %v3476_v55, %s5519_s29  ;;  %3484 = vrot.lane.b32.xlu1 %v3476_v55, %s5537_s6  ;;  %v3477_v0 = vsel %vm3439_vm12, %v3476_v55, 0.0 }
 0x9bc   :  { %5129 = vmatpush3.bf16.msra.mxu0 %v5128_v43 }
 0x9bd   :  { %5130 = vmatprep.subr.bf16.mxu0 %v5539_v12 }
 0x9be   :  { %3502 = vrot.lane.b32.xlu1 %v3476_v55, %s5538_s8 }
 0x9c0   :  { %5132 = vmatpush3.bf16.msra.mxu0 %v5131_v23 }
 0x9c1   :  { %5133 = vmatprep.subr.bf16.mxu0 %v5539_v12 }
 0x9c4   :  { %5135 = vmatpush3.bf16.msra.mxu0 %v5134_v28 }
 0x9c5   :  { %5136 = vmatprep.subr.bf16.mxu0 %v5539_v12 }
 0x9c8   :  { %5138 = vmatpush3.bf16.msra.mxu0 %v5137_v34 }
 0x9c9   :  { %5139 = vmatprep.subr.bf16.mxu0 %v5539_v12 }
 0x9cc   :  { %5141 = vmatpush3.bf16.msra.mxu0 %v5140_v15 }
 0x9cd   :  { %5142 = vmatprep.subr.bf16.mxu0 %v5539_v12 }
 0x9d0   :  { %5144 = vmatpush3.bf16.msra.mxu0 %v5143_v56 }
 0x9d1   :  { %5145 = vmatprep.subr.bf16.mxu0 %v5539_v12 }
 0x9d4   :  { %5147 = vmatpush3.bf16.msra.mxu0 %v5146_v58 }
 0x9e2   :  { %3478 = vadd.xlane.f32.xlu1 %v3477_v0 }
 0xa2c   :  { %v3485_v47 = vpop.permute.xlu1 %3484  ;;  %v3494_v45 = vpop.permute.xlu0 %3493 }
 0xa2d   :  { %v3487_v61 = vsel %vm3439_vm12, %v3485_v47, 0.0  ;;  %v3496_v1 = vsel %vm3439_vm12, %v3494_v45, 0.0 }
 0xa2e   :  { %3488 = vadd.xlane.f32.xlu0 %v3487_v61 }
 0xa30   :  { %v3503_v63 = vpop.permute.xlu1 %3502 }
 0xa31   :  { %v3505_v32 = vsel %vm3439_vm12, %v3503_v63, 0.0 }
 0xa32   :  { %3497 = vadd.xlane.f32.xlu0 %v3496_v1  ;;  %3506 = vadd.xlane.f32.xlu1 %v3505_v32 }
 0xa6f   :  { %v3479_v41 = vpop.xlane.xlu1 %3478 }
 0xa70   :  { %v3480_v57 = vmul.f32 0.03125, %v3479_v41 }
 0xa72   :  { %v3481_v47 = vmul.f32 %v6132_v48, %v3480_v57 }
 0xabb   :  { %v3489_v26 = vpop.xlane.xlu0 %3488 }
 0xabc   :  { %v3490_v46 = vmul.f32 0.03125, %v3489_v26 }
 0xabe   :  { %v3491_v53 = vmul.f32 %v6126_v33, %v3490_v46 }
 0xabf   :  { %v3498_v55 = vpop.xlane.xlu0 %3497  ;;  %v3507_v0 = vpop.xlane.xlu1 %3506 }
 0xac0   :  { %v3499_v61 = vmul.f32 0.03125, %v3498_v55  ;;  %v3508_v45 = vmul.f32 0.03125, %v3507_v0  ;;  %v3492_v63 = vadd.f32 %v3491_v53, %v3481_v47 }
 0xac2   :  { %v3500_v1 = vmul.f32 %v6129_v24, %v3499_v61  ;;  %v3509_v2 = vmul.f32 %v6139_v17, %v3508_v45 }
 0xac4   :  { %v3501_v32 = vadd.f32 %v3500_v1, %v3492_v63 }
 0xac6   :  { %v3510_v40 = vadd.f32 %v3509_v2, %v3501_v32 }
 0xac8   :  { %v3511_v12 = vadd.f32 1e-05, %v3510_v40 }
 0xaca   :  { %5187 = vrsqrt.f32 %v3511_v12 }
 0xad4   :  { %v5188_v35 = vpop.eup %5187 }
 0xad5   :  { %v3513_v3 = vmul.f32 %v5188_v35, %v6142_v54  ;;  %v3846_v54 = vld [vmem:[%s6247_s21] ss:$0 sm:$0xff] }
 0xad7   :  { %v3520_v4 = vmul.f32 %v3843_v38, %v3513_v3 }
 0xad9   :  { %v3527_v5 = vadd.f32 %v3844_v18, %v3520_v4 }
 0xadb   :  { %4063 = vmatmul.mubr.f32.vlgmr.msra.gmra.mrb[20].mxu1 %v3527_v5 }
 0xbae   :  { %v3617_v11 = vpop.f32.mrb[20].mxu1 }
 0xbaf   :  { %v3618_v49 = vadd.f32 %v3845_v6, %v3617_v11  ;;  %v4064_v52 = vpop.f32.mrb[21].mxu1 }
 0xbb1   :  { %v3621_v60 = vmax.f32 %v3618_v49, 0.0 }
 0xbb3   :  { %4098 = vmatmul.mubr.f32.vlgmr.msra.gmra.mrb[28].mxu0 %v3621_v60 }
 0xc86   :  { %v3711_v9 = vpop.f32.mrb[28].mxu0 }
 0xc87   :  { %v3712_v59 = vadd.f32 %v3846_v54, %v3711_v9  ;;  %v4099_v10 = vpop.f32.mrb[29].mxu0 }
 0xc89   :  { %v3715_v13 = vadd.f32 %v3712_v59, %v3527_v5 }
 0xc8b   :  { %3734 = vrot.lane.b32.xlu1 %v3715_v13, %s5519_s29  ;;  %3725 = vrot.lane.b32.xlu0 %v3715_v13, %s5537_s6  ;;  %v3718_v62 = vsel %vm3439_vm12, %v3715_v13, 0.0 }
 0xc8f   :  { %3743 = vrot.lane.b32.xlu1 %v3715_v13, %s5538_s8 }
 0xcb3   :  { %3719 = vadd.xlane.f32.xlu1 %v3718_v62 }
 0xcfd   :  { %v3735_v37 = vpop.permute.xlu1 %3734  ;;  %v3726_v14 = vpop.permute.xlu0 %3725 }
 0xcfe   :  { %v3728_v19 = vsel %vm3439_vm12, %v3726_v14, 0.0  ;;  %v3737_v42 = vsel %vm3439_vm12, %v3735_v37, 0.0 }
 0xcff   :  { %3729 = vadd.xlane.f32.xlu0 %v3728_v19 }
 0xd01   :  { %v3744_v36 = vpop.permute.xlu1 %3743 }
 0xd02   :  { %v3746_v20 = vsel %vm3439_vm12, %v3744_v36, 0.0 }
 0xd03   :  { %3738 = vadd.xlane.f32.xlu0 %v3737_v42 }
 0xd07   :  { %3747 = vadd.xlane.f32.xlu0 %v3746_v20 }
 0xd40   :  { %v3720_v21 = vpop.xlane.xlu1 %3719 }
 0xd41   :  { %v3721_v50 = vmul.f32 0.03125, %v3720_v21 }
 0xd43   :  { %v3722_v27 = vmul.f32 %v6132_v48, %v3721_v50 }
 0xd8c   :  { %v3730_v22 = vpop.xlane.xlu0 %3729 }
 0xd8d   :  { %v3731_v43 = vmul.f32 0.03125, %v3730_v22 }
 0xd8f   :  { %v3732_v23 = vmul.f32 %v6126_v33, %v3731_v43 }
 0xd90   :  { %v3739_v51 = vpop.xlane.xlu0 %3738 }
 0xd91   :  { %v3740_v8 = vmul.f32 0.03125, %v3739_v51  ;;  %v3733_v31 = vadd.f32 %v3732_v23, %v3722_v27 }
 0xd93   :  { %v3741_v28 = vmul.f32 %v6129_v24, %v3740_v8 }
 0xd94   :  { %v3748_v30 = vpop.xlane.xlu0 %3747 }
 0xd95   :  { %v3749_v34 = vmul.f32 0.03125, %v3748_v30  ;;  %v3742_v44 = vadd.f32 %v3741_v28, %v3733_v31 }
 0xd97   :  { %v3750_v29 = vmul.f32 %v6139_v17, %v3749_v34 }
 0xd99   :  { %v3751_v15 = vadd.f32 %v3750_v29, %v3742_v44 }
 0xd9b   :  { %v3752_v39 = vsub.f32 %v3715_v13, %v3751_v15 }
 0xd9d   :  { %v3753_v16 = vmul.f32 %v3752_v39, %v3752_v39 }
 0xd9f   :  { %3770 = vrot.lane.b32.xlu1 %v3753_v16, %s5519_s29  ;;  %3761 = vrot.lane.b32.xlu0 %v3753_v16, %s5537_s6  ;;  %v3754_v56 = vsel %vm3439_vm12, %v3753_v16, 0.0 }
 0xda3   :  { %3779 = vrot.lane.b32.xlu0 %v3753_v16, %s5538_s8 }
 0xdc3   :  { %3755 = vadd.xlane.f32.xlu1 %v3754_v56 }
 0xe11   :  { %v3762_v41 = vpop.permute.xlu0 %3761  ;;  %v3771_v57 = vpop.permute.xlu1 %3770 }
 0xe12   :  { %v3764_v26 = vsel %vm3439_vm12, %v3762_v41, 0.0  ;;  %v3773_v55 = vsel %vm3439_vm12, %v3771_v57, 0.0 }
 0xe13   :  { %3765 = vadd.xlane.f32.xlu1 %v3764_v26 }
 0xe15   :  { %v3780_v46 = vpop.permute.xlu0 %3779 }
 0xe16   :  { %v3782_v53 = vsel %vm3439_vm12, %v3780_v46, 0.0 }
 0xe17   :  { %3783 = vadd.xlane.f32.xlu0 %v3782_v53  ;;  %3774 = vadd.xlane.f32.xlu1 %v3773_v55 }
 0xe50   :  { %v3756_v0 = vpop.xlane.xlu1 %3755 }
 0xe51   :  { %v3757_v61 = vmul.f32 0.03125, %v3756_v0 }
 0xe53   :  { %v3758_v2 = vmul.f32 %v6132_v48, %v3757_v61  ;;  %v3848_v48 = vld [vmem:[%s6285_s23] ss:$0 sm:$0xff] }
 0xea0   :  { %v3766_v47 = vpop.xlane.xlu1 %3765 }
 0xea1   :  { %v3767_v45 = vmul.f32 0.03125, %v3766_v47 }
 0xea3   :  { %v3768_v63 = vmul.f32 %v6126_v33, %v3767_v45  ;;  %v3847_v33 = vld [vmem:[%s6248_s22] ss:$0 sm:$0xff] }
 0xea4   :  { %v3784_v1 = vpop.xlane.xlu0 %3783  ;;  %v3775_v32 = vpop.xlane.xlu1 %3774 }
 0xea5   :  { %v3785_v40 = vmul.f32 0.03125, %v3784_v1  ;;  %v3776_v12 = vmul.f32 0.03125, %v3775_v32  ;;  %v3769_v35 = vadd.f32 %v3768_v63, %v3758_v2 }
 0xea7   :  { %v3777_v38 = vmul.f32 %v6129_v24, %v3776_v12  ;;  %v3786_v3 = vmul.f32 %v6139_v17, %v3785_v40 }
 0xea9   :  { %v3778_v18 = vadd.f32 %v3777_v38, %v3769_v35 }
 0xeab   :  { %v3787_v4 = vadd.f32 %v3786_v3, %v3778_v18 }
 0xead   :  { %v3788_v5 = vadd.f32 1e-05, %v3787_v4 }
 0xeaf   :  { %5189 = vrsqrt.f32 %v3788_v5 }
 0xeb9   :  { %v5190_v25 = vpop.eup %5189 }
 0xeba   :  { %v3790_v7 = vmul.f32 %v5190_v25, %v3752_v39 }
 0xebc   :  { %v3797_v58 = vmul.f32 %v3847_v33, %v3790_v7 }
 0xebe   :  { %v3804_v24 = vadd.f32 %v3848_v48, %v3797_v58 }
 0xec0   :  { %3805 = vst [vmem:[#allocation23] sm:$0xf] %v3804_v24 }
 0xec1   :  { %5489 = shalt.err (!%p5486_p10)
}
 0xec2   :  { %s6286_s4 = sld [smem:[#allocation42_spill]] }
 0xec8   :  { %s5490_s25 = scalar_lea.hbm %s6286_s4, 64 }
 0xec9   :  { %p5491_p11 = scmp.ne.s32.totalorder %s6286_s4, %s5490_s25  ;;  %p5494_p12 = scmp.lt.u32.totalorder %s5490_s25, %s6286_s4 }
 0xecb   :  { %p5496_p13 = pnand %p5494_p12, %p5491_p11 }
 0xecd   :  { %5499 = shalt.err (!%p5496_p13)
}
 0xece   :  { %3815 = dma.vmem_to_hbm [thread:$0]  %s3813_s3, 64, %s6286_s4, [#allocation4]  }
 0xecf   :  { %5514 = dma.done.wait [#allocation4], 64  }
 0xed0   :  { %5515 = vsyncadd [#allocation4], 4294967232 }
 0xed1   :  { %3819 = vsyncpa [#allocation3], 1 }
 0xed2   :  { %3820 = vsyncpa [#allocation6], 1 }
 0xed3   :  { %3821 = vsyncpa [#allocation9], 1 }
 0xed4   :  { %3822 = vsyncpa [#allocation12], 1 }
 0xed5   :  { %3823 = vsyncpa [#allocation15], 1 }
 0xed6   :  { %3824 = vsyncpa [#allocation18], 1 }
 0xed7   :  { %3825 = vsyncpa [#allocation21], 1 }
 0xed8   :  { %3826 = vsyncpa [#allocation4], 1 }

</bundles_post_ra>
